<compile_context>
chip_gen: v5e
topology: v5e:2x2
jax: 0.10.0
libtpu: 0.0.40
codegen_flags: <defaults>
</compile_context>

<pallas_src>
import functools

import jax
import jax.numpy as jnp
from jax import lax
from jax.experimental import pallas as pl
from jax.experimental.pallas import tpu as pltpu


def _diar_kernel(x_ref, w1_ref, b1_ref, w2_ref, b2_ref, o_ref, *, context):
    # x_ref : (1, 3072, TM)        NCW time tile (no wrapper transpose)
    # w1_ref: (3072, U_pad)        b1_ref: (1, U_pad)
    # w2_ref: (U_pad, S_pad)       b2_ref: (1, S_pad)
    # o_ref : (1, TM // context, S_pad)
    x = x_ref[0]                                               # (3072, TM)

    # hidden = relu(x^T @ W1 + b1)   -- transposed-LHS MXU matmul, f32 acc
    h = lax.dot_general(
        x, w1_ref[...],
        dimension_numbers=(((0,), (0,)), ((), ())),
        preferred_element_type=jnp.float32)                    # (TM, U_pad)
    h = jnp.maximum(h + b1_ref[...], 0.0)

    # AvgPool1d(kernel=stride=context) over time, tile-local (TM % context == 0)
    tm, u = h.shape
    tc = tm // context
    pooled = h.reshape(tc, context, u).sum(axis=1) * (1.0 / context)

    # final Linear(n_units, num_speakers), lane-padded output
    logits = jnp.dot(pooled, w2_ref[...],
                     preferred_element_type=jnp.float32) + b2_ref[...]
    o_ref[0] = logits.astype(o_ref.dtype)


def _choose_time_tile(T, context, max_tile):
    # Largest tile that divides T, is a multiple of `context`, keeps the
    # pooled sublane dim a multiple of 8, and keeps the lane dim 128-aligned.
    for cand in (2048, 1024, 512, 384, 256, 128):
        if cand > max_tile:
            continue
        if T % cand == 0 and cand % context == 0 and (cand // context) % 8 == 0:
            return cand
    return T  # full-extent block: always layout-legal, just un-tiled


def titanet_diarization_head(encoded, w1, b1, w2, b2, context, *,
                             max_time_tile=1024):
    """encoded: (B, 3072, T) f32 (NCW) -> logits (B, T//context, num_speakers)."""
    B, D, T = encoded.shape
    assert D == w1.shape[0]
    assert T % context == 0, "AvgPool1d drops remainder; use T % context == 0 here"

    n_units = w1.shape[1]
    n_spk = w2.shape[1]
    LANE = 128
    u_pad = ((n_units + LANE - 1) // LANE) * LANE
    s_pad = ((n_spk + LANE - 1) // LANE) * LANE

    # Zero-pad the tiny weight matrices so vregs / MXU tiles / output stores
    # are lane-dense.  Padded hidden columns stay exactly 0 through the ReLU
    # (zero weights, zero bias), so padding does not change the real logits.
    w1p = jnp.zeros((D, u_pad), jnp.float32).at[:, :n_units].set(w1)
    b1p = jnp.zeros((1, u_pad), jnp.float32).at[:, :n_units].set(
        b1.reshape(1, -1))
    w2p = jnp.zeros((u_pad, s_pad), jnp.float32).at[:n_units, :n_spk].set(w2)
    b2p = jnp.zeros((1, s_pad), jnp.float32).at[:, :n_spk].set(
        b2.reshape(1, -1))

    TM = _choose_time_tile(T, context, max_time_tile)
    assert T % TM == 0 and TM % context == 0
    tc_tile = TM // context
    Tc = T // context

    kernel = functools.partial(_diar_kernel, context=context)

    out = pl.pallas_call(
        kernel,
        out_shape=jax.ShapeDtypeStruct((B, Tc, s_pad), jnp.float32),
        grid_spec=pltpu.PrefetchScalarGridSpec(
            num_scalar_prefetch=0,
            grid=(B, T // TM),
            in_specs=[
                pl.BlockSpec((1, D, TM), lambda b, t: (b, 0, t)),   # x (NCW tile)
                pl.BlockSpec((D, u_pad), lambda b, t: (0, 0)),      # W1 (resident)
                pl.BlockSpec((1, u_pad), lambda b, t: (0, 0)),      # b1
                pl.BlockSpec((u_pad, s_pad), lambda b, t: (0, 0)),  # W2
                pl.BlockSpec((1, s_pad), lambda b, t: (0, 0)),      # b2
            ],
            out_specs=pl.BlockSpec((1, tc_tile, s_pad),
                                   lambda b, t: (b, t, 0)),
        ),
        compiler_params=pltpu.CompilerParams(
            dimension_semantics=("parallel", "parallel"),
            vmem_limit_bytes=32 * 1024 * 1024),
    )(encoded, w1p, b1p, w2p, b2p)

    return out[:, :, :n_spk]


def _reference(encoded, w1, b1, w2, b2, context):
    x = jnp.transpose(encoded, (0, 2, 1))                      # (B, T, 3072)
    h = jax.nn.relu(x @ w1 + b1.reshape(1, 1, -1))             # (B, T, n_units)
    B, T, U = h.shape
    pooled = h.reshape(B, T // context, context, U).mean(axis=2)
    return pooled @ w2 + b2.reshape(1, 1, -1)


if __name__ == "__main__":
    # small, module-consistent shapes (encoder feature dim 3072 is fixed by
    # the titanet_large encoder; T kept modest, tiled at 128 to exercise the
    # 2-D grid and tile-local pooling).
    B = 2            # batch
    T = 256          # encoder time steps
    D_ENC = 3072     # titanet encoder feature dim (fixed by the module)
    N_UNITS = 64     # n_units
    N_SPK = 15       # num_speakers (module default)
    CONTEXT = 2      # AvgPool1d kernel size

    key = jax.random.PRNGKey(0)
    k_enc, k_w1, k_b1, k_w2, k_b2 = jax.random.split(key, 5)

    # synthetic stand-in for the titanet encoder output (B, 3072, T)
    encoded = jax.random.normal(k_enc, (B, D_ENC, T), dtype=jnp.float32)

    # deterministic parameter init (Linear weights stored as (in, out))
    w1 = jax.random.normal(k_w1, (D_ENC, N_UNITS), dtype=jnp.float32) * 0.02
    b1 = jax.random.normal(k_b1, (N_UNITS,), dtype=jnp.float32) * 0.02
    w2 = jax.random.normal(k_w2, (N_UNITS, N_SPK), dtype=jnp.float32) * 0.02
    b2 = jax.random.normal(k_b2, (N_SPK,), dtype=jnp.float32) * 0.02

    logits = titanet_diarization_head(encoded, w1, b1, w2, b2, CONTEXT,
                                      max_time_tile=128)
    logits = jax.block_until_ready(logits)

    ref = _reference(encoded, w1, b1, w2, b2, CONTEXT)
    assert logits.shape == (B, T // CONTEXT, N_SPK)
    assert jnp.allclose(logits, ref, atol=1e-4, rtol=1e-4), \
        float(jnp.max(jnp.abs(logits - ref)))

    print("KERNEL_OK")
</pallas_src>

<mosaic_0001>
module attributes {stable_mosaic.version = 11 : i64} {
  func.func @_diar_kernel(%arg0: i32, %arg1: i32, %arg2: memref<1x3072x128xf32, #tpu.memory_space<vmem>>, %arg3: memref<3072x128xf32, #tpu.memory_space<vmem>>, %arg4: memref<1x128xf32, #tpu.memory_space<vmem>>, %arg5: memref<128x128xf32, #tpu.memory_space<vmem>>, %arg6: memref<1x128xf32, #tpu.memory_space<vmem>>, %arg7: memref<1x64x128xf32, #tpu.memory_space<vmem>>) attributes {dimension_semantics = [#tpu.dimension_semantics<parallel>, #tpu.dimension_semantics<parallel>], iteration_bounds = array<i64: 2, 2>, scalar_prefetch = 0 : i64, scratch_operands = 0 : i64, tpu.core_type = #tpu.core_type<tc>, window_params = [{transform_indices = @transform_0, window_bounds = array<i64: 1, 3072, 128>}, {pipeline_mode = #tpu.pipeline_mode<synchronous>, transform_indices = @transform_1, window_bounds = array<i64: 3072, 128>}, {pipeline_mode = #tpu.pipeline_mode<synchronous>, transform_indices = @transform_2, window_bounds = array<i64: 1, 128>}, {pipeline_mode = #tpu.pipeline_mode<synchronous>, transform_indices = @transform_3, window_bounds = array<i64: 128, 128>}, {pipeline_mode = #tpu.pipeline_mode<synchronous>, transform_indices = @transform_4, window_bounds = array<i64: 1, 128>}, {transform_indices = @transform_5, window_bounds = array<i64: 1, 64, 128>}]} {
    %c0 = arith.constant 0 : index
    %c0_0 = arith.constant 0 : index
    %c0_1 = arith.constant 0 : index
    %0 = vector.load %arg2[%c0, %c0_0, %c0_1] : memref<1x3072x128xf32, #tpu.memory_space<vmem>>, vector<1x3072x128xf32>
    %1 = vector.shape_cast %0 : vector<1x3072x128xf32> to vector<3072x128xf32>
    %c0_2 = arith.constant 0 : index
    %c0_3 = arith.constant 0 : index
    %2 = vector.load %arg3[%c0_2, %c0_3] : memref<3072x128xf32, #tpu.memory_space<vmem>>, vector<3072x128xf32>
    %cst = arith.constant dense<0.000000e+00> : vector<128x128xf32>
    %3 = tpu.matmul %1, %2, %cst {dimension_numbers = #tpu.dot_dimension_numbers<[0], [0], [1], [1], [0, 1, 1, 1], [], []>} : vector<3072x128xf32>, vector<3072x128xf32>, vector<128x128xf32> -> vector<128x128xf32>
    %c0_4 = arith.constant 0 : index
    %c0_5 = arith.constant 0 : index
    %4 = vector.load %arg4[%c0_4, %c0_5] : memref<1x128xf32, #tpu.memory_space<vmem>>, vector<1x128xf32>
    %5 = vector.broadcast %4 : vector<1x128xf32> to vector<128x128xf32>
    %6 = arith.addf %3, %5 : vector<128x128xf32>
    %cst_6 = arith.constant 0.000000e+00 : f32
    %7 = vector.broadcast %cst_6 : f32 to vector<128x128xf32>
    %8 = arith.maximumf %6, %7 : vector<128x128xf32>
    %9 = vector.shape_cast %8 : vector<128x128xf32> to vector<64x2x128xf32>
    %cst_7 = arith.constant dense<0.000000e+00> : vector<64x128xf32>
    %10 = vector.multi_reduction <add>, %9, %cst_7 [1] : vector<64x2x128xf32> to vector<64x128xf32>
    %cst_8 = arith.constant 5.000000e-01 : f32
    %11 = vector.broadcast %cst_8 : f32 to vector<64x128xf32>
    %12 = arith.mulf %10, %11 : vector<64x128xf32>
    %c0_9 = arith.constant 0 : index
    %c0_10 = arith.constant 0 : index
    %13 = vector.load %arg5[%c0_9, %c0_10] : memref<128x128xf32, #tpu.memory_space<vmem>>, vector<128x128xf32>
    %cst_11 = arith.constant dense<0.000000e+00> : vector<64x128xf32>
    %14 = tpu.matmul %12, %13, %cst_11 {dimension_numbers = #tpu.dot_dimension_numbers<[1], [0], [0], [1], [0, 0, 1, 1], [], []>} : vector<64x128xf32>, vector<128x128xf32>, vector<64x128xf32> -> vector<64x128xf32>
    %c0_12 = arith.constant 0 : index
    %c0_13 = arith.constant 0 : index
    %15 = vector.load %arg6[%c0_12, %c0_13] : memref<1x128xf32, #tpu.memory_space<vmem>>, vector<1x128xf32>
    %16 = vector.broadcast %15 : vector<1x128xf32> to vector<64x128xf32>
    %17 = arith.addf %14, %16 : vector<64x128xf32>
    %c0_14 = arith.constant 0 : index
    %c0_15 = arith.constant 0 : index
    %c0_16 = arith.constant 0 : index
    %18 = vector.load %arg7[%c0_14, %c0_15, %c0_16] : memref<1x64x128xf32, #tpu.memory_space<vmem>>, vector<1x64x128xf32>
    %19 = vector.shape_cast %18 : vector<1x64x128xf32> to vector<64x128xf32>
    %20 = vector.shape_cast %17 : vector<64x128xf32> to vector<1x64x128xf32>
    tpu.vector_store %arg7[%c0_14, %c0_15, %c0_16], %20 {strides = array<i32>} : memref<1x64x128xf32, #tpu.memory_space<vmem>>, vector<1x64x128xf32>,
    return
  }
  func.func @transform_0(%arg0: i32, %arg1: i32) -> (i32, i32, i32) {
    %c0_i32 = arith.constant 0 : i32
    %c0_i32_0 = arith.constant 0 : i32
    return %arg0, %c0_i32, %arg1 : i32, i32, i32
  }
  func.func @transform_1(%arg0: i32, %arg1: i32) -> (i32, i32) {
    %c0_i32 = arith.constant 0 : i32
    %c0_i32_0 = arith.constant 0 : i32
    %c0_i32_1 = arith.constant 0 : i32
    return %c0_i32, %c0_i32_0 : i32, i32
  }
  func.func @transform_2(%arg0: i32, %arg1: i32) -> (i32, i32) {
    %c0_i32 = arith.constant 0 : i32
    %c0_i32_0 = arith.constant 0 : i32
    %c0_i32_1 = arith.constant 0 : i32
    return %c0_i32, %c0_i32_0 : i32, i32
  }
  func.func @transform_3(%arg0: i32, %arg1: i32) -> (i32, i32) {
    %c0_i32 = arith.constant 0 : i32
    %c0_i32_0 = arith.constant 0 : i32
    %c0_i32_1 = arith.constant 0 : i32
    return %c0_i32, %c0_i32_0 : i32, i32
  }
  func.func @transform_4(%arg0: i32, %arg1: i32) -> (i32, i32) {
    %c0_i32 = arith.constant 0 : i32
    %c0_i32_0 = arith.constant 0 : i32
    %c0_i32_1 = arith.constant 0 : i32
    return %c0_i32, %c0_i32_0 : i32, i32
  }
  func.func @transform_5(%arg0: i32, %arg1: i32) -> (i32, i32, i32) {
    %c0_i32 = arith.constant 0 : i32
    %c0_i32_0 = arith.constant 0 : i32
    return %arg0, %arg1, %c0_i32 : i32, i32, i32
  }
}

</mosaic_0001>

<bundles_post_ra>
// kernel: tpu_custom_call.1
= control target key start
LH: loop header
LB: loop body
LE: loop exit
PB: predicated region body
PF: predicated region fallthrough
CT: control target
= control target key end

     0   :  { %s8367_s0 = inlined_call_operand.hbm [shape: f32[2,3072,256], index: 0, kind: input, shape index: {}]   ;;  %s8368_s1 = inlined_call_operand.hbm [shape: f32[3072,128], index: 1, kind: input, shape index: {}]   ;;  %s8369_s2 = inlined_call_operand.hbm [shape: f32[1,128], index: 2, kind: input, shape index: {}]   ;;  %s8370_s3 = inlined_call_operand.hbm [shape: f32[128,128], index: 3, kind: input, shape index: {}]   ;;  %s8371_s4 = inlined_call_operand.hbm [shape: f32[1,128], index: 4, kind: input, shape index: {}]   ;;  %s8372_s5 = inlined_call_operand.hbm [shape: f32[2,128,128], index: 5, kind: output, shape index: {}]  }
   0x1   :  { %8380 = sst [smem:[#allocation21_spill]] %s8368_s1 }
   0x2   :  { %8381 = sst [smem:[#allocation22_spill]] %s8369_s2 }
   0x3   :  { %8382 = sst [smem:[#allocation23_spill]] %s8370_s3 }
   0x4   :  { %8383 = sst [smem:[#allocation24_spill]] %s8371_s4 }
   0x5   :  { %10 = vsyncpa [#allocation3], 0 }
   0x6   :  { %12 = vsyncpa [#allocation3 + $0x1], 0 }
   0x7   :  { %13 = vsyncpa [#allocation6], 0 }
   0x8   :  { %14 = vsyncpa [#allocation9], 0 }
   0x9   :  { %15 = vsyncpa [#allocation4], 0 }
   0xa   :  { %17 = vsyncpa [#allocation4 + $0x1], 0  ;;  %s6043_s18 = smov 0   ;;  %s6045_s19 = smov 0  }
   0xb   :  { %s6047_s20 = smov 0   ;;  %s6049_s21 = smov 0  }
   0xc   :  { %s6051_s22 = smov 0   ;;  %s6053_s23 = smov 0  }
   0xd   :  { %s6055_s24 = smov 0   ;;  %s6057_s25 = smov 0  }
   0xe LB: > { %8384 = sst [smem:[#allocation16_spill]] %s5962_s18  ;;  %s4415_s26 = sadd.s32 4294967295, %s5990_s25   ;;  %s5990_s25 = sphi %s6057_s25, %s23_s25   ;;  %s5986_s24 = sphi %s6055_s24, %s8407_s24   ;;  %s5982_s23 = sphi %s6053_s23, %s8412_s23   ;;  %s5978_s22 = sphi %s6051_s22, %s8405_s22   ;;  %s5974_s21 = sphi %s6049_s21, %s8411_s21   ;;  %s5970_s20 = sphi %s6047_s20, %s8410_s20   ;;  %s5966_s19 = sphi %s6045_s19, %s8409_s19   ;;  %s5962_s18 = sphi %s6043_s18, %s8408_s18  }
   0xf   : > { %8385 = sst [smem:[#allocation17_spill]] %s5986_s24  ;;  %s4416_s27 = sadd.s32 4294967294, %s5990_s25  }
  0x10   : > { %p57_p0 = scmp.ne.s32.totalorder %s5966_s19, %s5962_s18  ;;  %p6087_p1 = scmp.eq.s32.totalorder %s4415_s26, 0 }
  0x11   : > { %p6091_p2 = scmp.eq.s32.totalorder %s4415_s26, 3  ;;  %p173_p3 = scmp.eq.s32.totalorder %s4416_s27, 3 }
  0x12   : > { %p6097_p4 = por %p6087_p1, %p57_p0  ;;  %p4417_p5 = scmp.ge.s32.totalorder %s5990_s25, 1 }
  0x13   : > { %p6102_p6 = por %p173_p3, %p57_p0  ;;  %p180_p7 = scmp.lt.s32.totalorder %s5990_s25, 5 }
  0x14   : > { %s8391_s1 = sld [smem:[#allocation21_spill]]  ;;  %s5992_s11 = smov [#allocation5]  }
  0x15   : > { %s8389_s6 = scalar_select %p6102_p6, 1, 0 }
  0x16   : > { %p6110_p8 = pnand %p4417_p5, %p180_p7  ;;  %s193_s12 = sshll.u32 %s5992_s11, 4  ;;  %s194_s12 = int_to_ptr.vmem [resolvable:$true] %s193_s12 }
  0x17   : > { %8390 = sst [smem:[#allocation18_spill]] %s8389_s6  ;;  %s8373_s17 = smov 128  }
  0x18   : > { %p4956_p9 = pneg %p6110_p8  ;;  %s8394_s3 = sld [smem:[#allocation23_spill]] }
  0x19   : > { %s8374_s26 = smov 8   ;;  %s5995_s27 = smov [#allocation8]  }
  0x1a   : > { %s191_s9 = sshll.u32 %s8391_s1, 4  ;;  %p6118_p10 = pnand %p4956_p9, %p6087_p1  ;;  %s192_s9 = int_to_ptr.hbm [resolvable:$true] %s191_s9 }
  0x1b   : > { %s219_s7 = sshll.u32 %s5995_s27, 4  ;;  %s8395_s2 = sld [smem:[#allocation22_spill]]  ;;  %s220_s7 = int_to_ptr.vmem [resolvable:$true] %s219_s7 }
  0x1c   : > { %4959 = dma.hbm_to_vmem [thread:$0]  (!%p6118_p10), %s192_s9, 49152, %s194_s12, [#allocation6], %s8373_s17, %s8373_s17, %s8374_s26  }
  0x1d   : > { %s8396_s4 = sld [smem:[#allocation24_spill]]  ;;  %s5996_s27 = smov [#allocation7]  }
  0x1e   : > { %s217_s16 = sshll.u32 %s8394_s3, 4  ;;  %s208_s8 = sshll.u32 %s5996_s27, 4  ;;  %s218_s16 = int_to_ptr.hbm [resolvable:$true] %s217_s16  ;;  %s209_s8 = int_to_ptr.vmem [resolvable:$true] %s208_s8 }
  0x1f   : > { %4965 = dma.hbm_to_vmem [thread:$0]  (!%p6118_p10), %s218_s16, 2048, %s220_s7, [#allocation9], %s8373_s17, %s8373_s17, %s8374_s26  }
  0x20   : > { %s5997_s11 = smov [#allocation10]   ;;  %s32_s16 = sadd.s32 1, %s5982_s23 }
  0x21   : > { %s206_s14 = sshll.u32 %s8395_s2, 4  ;;  %s234_s1 = sshll.u32 %s5997_s11, 4  ;;  %s207_s14 = int_to_ptr.hbm [resolvable:$true] %s206_s14  ;;  %s235_s1 = int_to_ptr.vmem [resolvable:$true] %s234_s1 }
  0x22   : > { %4962 = dma.hbm_to_vmem [thread:$0]  (!%p6118_p10), %s207_s14, 16, %s209_s8, [#allocation6]  }
  0x23   : > { %s232_s15 = sshll.u32 %s8396_s4, 4  ;;  %s35_s7 = sadd.s32 1, %s5986_s24  ;;  %s233_s15 = int_to_ptr.hbm [resolvable:$true] %s232_s15 }
  0x24   : > { %4968 = dma.hbm_to_vmem [thread:$0]  (!%p6118_p10), %s233_s15, 16, %s235_s1, [#allocation9]  }
  0x25   : > { %p33_p11 = scmp.ge.s32.totalorder %s32_s16, 2  ;;  %s44_s9 = sadd.s32 1, %s5970_s20 }
  0x26   : > { %p51_p12 = scmp.ne.s32.totalorder %s5970_s20, %s5966_s19  ;;  %p52_p13 = scmp.eq.s32.totalorder %s5990_s25, 0 }
  0x27   : > { %s8414_s16 = smov (%p33_p11, %s32_s16), 0  ;;  %s8416_s7 = smov (!%p33_p11, %s35_s7), %s5986_s24 }
  0x28   : > { %8397 = sst [smem:[#allocation19_spill]] %s8414_s16  ;;  %s40_s14 = ssub.s32 %s5982_s23, %s8414_s16 }
  0x29   : > { %p6156_p0 = por %p52_p13, %p51_p12  ;;  %p37_p3 = scmp.ge.s32.totalorder %s8416_s7, 2 }
  0x2a   : > { %p6162_p5 = por %p6091_p2, %p51_p12  ;;  %p4981_p7 = scmp.lt.s32.totalorder %s5990_s25, 4 }
  0x2b   : > { %s245_s13 = sand.u32 1, %s5970_s20   ;;  %s8418_s7 = smov (%p37_p3, %s8416_s7), 0 }
  0x2c   : > { %8400 = sst [smem:[#allocation20_spill]] %s8418_s7  ;;  %s4933_s15 = smul.u32 3072, %s245_s13 }
  0x2d   : > { %s39_s27 = ssub.s32 %s5986_s24, %s8418_s7  ;;  %s4934_s8 = smul.u32 768, %s5986_s24 }
  0x2e   : > { %s41_s11 = sor.u32 %s40_s14, %s39_s27  ;;  %s249_s2 = scalar_lea.vmem [#allocation2], %s4933_s15 }
  0x2f   : > { %p42_p9 = scmp.eq.s32.totalorder %s41_s11, 0  ;;  %s253_s17 = sadd.s32 %s5982_s23, %s4934_s8 }
  0x30   : > { %s4423_s26 = sshll.u32 %s253_s17, 3  ;;  %s258_s29 = sshll.u32 %s249_s2, 4  ;;  %s259_s29 = int_to_ptr.vmem [resolvable:$true] %s258_s29 }
  0x31   : > { %s6175_s3 = scalar_select %p42_p9, %s5970_s20, %s44_s9  }
  0x32   : > { %s255_s6 = scalar_lea.hbm %s8367_s0, %s4423_s26  ;;  %p4970_p2 = pnand %p4981_p7, %p6156_p0 }
  0x33   : > { %s256_s18 = sshll.u32 %s255_s6, 4  ;;  %s246_s7 = scalar_lea.sflag [#allocation3], %s245_s13  ;;  %s257_s18 = int_to_ptr.hbm [resolvable:$true] %s256_s18 }
  0x34   : > { %s5998_s24 = smov 256   ;;  %s8401_s14 = smov 8  }
  0x35   : > { %s8402_s27 = smov 128   ;;  %270 = sbr.rel (%p6110_p8) target bundleno = 1465 (0x5b9), region = 40 }
  0x36   : > { %4972 = dma.hbm_to_vmem [thread:$0]  (!%p4970_p2), %s257_s18, 49152, %s259_s29, %s246_s7, %s5998_s24, %s8402_s27, %s8401_s14  }
  0x37   : > { %s6189_s2 = sand.u32 (!%p6110_p8), 1, %s5966_s19  }
  0x38   : > { %s4935_s4 = smul.u32 (!%p6110_p8), 3072, %s6189_s2  ;;  %s273_s6 = scalar_lea.sflag (!%p6110_p8), [#allocation3], %s6189_s2 }
  0x3a   : > { %s6193_s17 = scalar_lea.vmem [#allocation2], %s4935_s4 }
  0x3b   : > { %5945 = dma.done.wait (%p6097_p4), %s273_s6, 49152  }
  0x3c   : > { %5947 = vsyncadd (%p6097_p4), %s273_s6, 4294918144 }
  0x3d   : > { %5949 = dma.done.wait (%p6087_p1), [#allocation6], 49168  }
  0x3e   : > { %5951 = vsyncadd (%p6087_p1), [#allocation6], 4294918128 }
  0x3f   : > { %5953 = dma.done.wait (%p6087_p1), [#allocation9], 2064  }
  0x40   : > { %5955 = vsyncadd (%p6087_p1), [#allocation9], 4294965232  ;;  %v325_v0 = vld [vmem:[%s6193_s17] sm:$0xff]  ;;  %v326_v3 = vld [vmem:[%s6193_s17 + $0x8] sm:$0xff]  ;;  %vm3553_vm0 = vcmask 1041408   ;;  %vm4150_vm1 = vcmask 1041409  }
  0x41   : > { %v357_v1 = vld [vmem:[%s6193_s17 + $0x100] sm:$0xff]  ;;  %v358_v4 = vld [vmem:[%s6193_s17 + $0x108] sm:$0xff]  ;;  %v327_v6 = vld [vmem:[%s6193_s17 + $0x10] sm:$0xff]  ;;  %vm4152_vm2 = vcmask 1042434   ;;  %vm4154_vm3 = vcmask 1043459   ;;  %vm4156_vm4 = vcmask 1044484  }
  0x42   : > { %v5060_v2 = vpack.i.bf16 %v357_v1, %v325_v0  ;;  %v5062_v5 = vpack.i.bf16 %v358_v4, %v326_v3  ;;  %v359_v7 = vld [vmem:[%s6193_s17 + $0x110] sm:$0xff]  ;;  %v328_v9 = vld [vmem:[%s6193_s17 + $0x18] sm:$0xff]  ;;  %v329_v12 = vld [vmem:[%s6193_s17 + $0x20] sm:$0xff]  ;;  %vm4158_vm5 = vcmask 1045509   ;;  %vm4160_vm6 = vcmask 1046534   ;;  %s4429_s18 = sshll.u32 %s6189_s2, 6 }
  0x43   : > { %v5064_v8 = vpack.i.bf16 %v359_v7, %v327_v6  ;;  %v360_v10 = vld [vmem:[%s6193_s17 + $0x118] sm:$0xff]  ;;  %v361_v13 = vld [vmem:[%s6193_s17 + $0x120] sm:$0xff]  ;;  %v330_v15 = vld [vmem:[%s6193_s17 + $0x28] sm:$0xff]  ;;  %vm4162_vm7 = vcmask 1047559   ;;  %s8309_s24 = scalar_lea.vmem [#allocation11], %s4429_s18  ;;  %s4431_s28 = sshll.u32 %s5974_s21, 3 }
  0x44   : > { %5061 = vxpose.xlu0.b32.start [1/16] %v5060_v2, 128  ;;  %v5066_v11 = vpack.i.bf16 %v360_v10, %v328_v9  ;;  %v5068_v14 = vpack.i.bf16 %v361_v13, %v329_v12  ;;  %v362_v16 = vld [vmem:[%s6193_s17 + $0x128] sm:$0xff]  ;;  %v331_v18 = vld [vmem:[%s6193_s17 + $0x30] sm:$0xff]  ;;  %v332_v21 = vld [vmem:[%s6193_s17 + $0x38] sm:$0xff]  ;;  %s4432_s30 = sshll.u32 %s5978_s22, 4  ;;  %s4285_s12 = sshll.u32 %s8309_s24, 4  ;;  %s4286_s12 = int_to_ptr.vmem [resolvable:$true] %s4285_s12 }
  0x45   : > { %v5070_v17 = vpack.i.bf16 %v362_v16, %v330_v15  ;;  %v363_v19 = vld [vmem:[%s6193_s17 + $0x130] sm:$0xff]  ;;  %v364_v22 = vld [vmem:[%s6193_s17 + $0x138] sm:$0xff]  ;;  %v333_v24 = vld [vmem:[%s6193_s17 + $0x40] sm:$0xff]  ;;  %s4282_s10 = sadd.s32 %s4432_s30, %s4431_s28  ;;  %s4271_s15 = scalar_lea.sflag [#allocation4], %s6189_s2 }
  0x46   : > { %v5072_v20 = vpack.i.bf16 %v363_v19, %v331_v18  ;;  %v5074_v23 = vpack.i.bf16 %v364_v22, %v332_v21  ;;  %v365_v25 = vld [vmem:[%s6193_s17 + $0x140] sm:$0xff]  ;;  %v334_v27 = vld [vmem:[%s6193_s17 + $0x48] sm:$0xff]  ;;  %v335_v32 = vld [vmem:[%s6193_s17 + $0x50] sm:$0xff]  ;;  %s4433_s26 = sshll.u32 %s4282_s10, 3  ;;  %s5904_s29 = scalar_lea.hbm %s8372_s5, 256 }
  0x47   : > { %v5076_v26 = vpack.i.bf16 %v365_v25, %v333_v24  ;;  %v366_v28 = vld [vmem:[%s6193_s17 + $0x148] sm:$0xff]  ;;  %v341_v30 = vld [vmem:[%s6193_s17 + $0x80] sm:$0xff]  ;;  %v367_v33 = vld [vmem:[%s6193_s17 + $0x150] sm:$0xff]  ;;  %s4284_s9 = scalar_lea.hbm %s8372_s5, %s4433_s26 }
  0x48   : > { %v5078_v29 = vpack.i.bf16 %v366_v28, %v334_v27  ;;  %v373_v31 = vld [vmem:[%s6193_s17 + $0x180] sm:$0xff]  ;;  %v5080_v35 = vpack.i.bf16 %v367_v33, %v335_v32  ;;  %v342_v36 = vld [vmem:[%s6193_s17 + $0x88] sm:$0xff]  ;;  %v336_v38 = vld [vmem:[%s6193_s17 + $0x58] sm:$0xff]  ;;  %s4287_s13 = sshll.u32 %s4284_s9, 4  ;;  %s4288_s13 = int_to_ptr.hbm [resolvable:$true] %s4287_s13 }
  0x49   : > { %v5172_v34 = vpack.i.bf16 %v341_v30, %v373_v31  ;;  %v374_v37 = vld [vmem:[%s6193_s17 + $0x188] sm:$0xff]  ;;  %v368_v39 = vld [vmem:[%s6193_s17 + $0x158] sm:$0xff]  ;;  %v343_v42 = vld [vmem:[%s6193_s17 + $0x90] sm:$0xff]  ;;  %s5898_s21 = sshra.s32 %s4288_s13, 4  ;;  %s5899_s21 = int_to_ptr.hbm [resolvable:$true] %s5898_s21 }
  0x4a   : > { %v5174_v40 = vpack.i.bf16 %v342_v36, %v374_v37  ;;  %v5082_v41 = vpack.i.bf16 %v368_v39, %v336_v38  ;;  %v375_v43 = vld [vmem:[%s6193_s17 + $0x190] sm:$0xff]  ;;  %v724_v44 = vld [vmem:[#allocation5 + $0x78] sm:$0xff]  ;;  %v337_v45 = vld [vmem:[%s6193_s17 + $0x60] sm:$0xff]  ;;  %s5900_s22 = scalar_lea.hbm %s5899_s21, 64  ;;  %p5905_p10 = scmp.lt.s32.totalorder %s5899_s21, %s8372_s5 }
  0x4b   : > { %5173 = vxpose.xlu1.b32.start [1/16] %v5172_v34, 128  ;;  %v369_v46 = vld [vmem:[%s6193_s17 + $0x160] sm:$0xff]  ;;  %v5176_v47 = vpack.i.bf16 %v343_v42, %v375_v43  ;;  %1865 = vmatpush.msra.mxu0 %v724_v44  ;;  %v723_v48 = vld [vmem:[#allocation5 + $0x70] sm:$0xff]  ;;  %v722_v49 = vld [vmem:[#allocation5 + $0x68] sm:$0xff]  ;;  %p5901_p1 = scmp.ne.s32.totalorder %s5899_s21, %s5900_s22  ;;  %p5906_p11 = scmp.lt.s32.totalorder %s5904_s29, %s5900_s22 }
  0x4c   : > { %5063 = vxpose.xlu0.b32.cont [2/16] %v5062_v5, 128  ;;  %4436 = vmatpush.msra.mxu1 %v724_v44  ;;  %v5084_v50 = vpack.i.bf16 %v369_v46, %v337_v45  ;;  %v344_v51 = vld [vmem:[%s6193_s17 + $0x98] sm:$0xff]  ;;  %v721_v53 = vld [vmem:[#allocation5 + $0x60] sm:$0xff]  ;;  %v719_v56 = vld [vmem:[#allocation5 + $0x50] sm:$0xff] }
  0x4d   : > { %4437 = vmatpush.msra.mxu2 %v724_v44  ;;  %1866 = vmatpush.msra.mxu0 %v723_v48  ;;  %v376_v52 = vld [vmem:[%s6193_s17 + $0x198] sm:$0xff]  ;;  %v338_v57 = vld [vmem:[%s6193_s17 + $0x68] sm:$0xff]  ;;  %v345_v61 = vld [vmem:[%s6193_s17 + $0xa0] sm:$0xff]  ;;  %p5902_p4 = pnand %p5901_p1, %p6162_p5  ;;  %p5907_p12 = por %p5906_p11, %p5905_p10 }
  0x4e   : > { %4438 = vmatpush.msra.mxu1 %v723_v48  ;;  %v720_v54 = vld [vmem:[#allocation5 + $0x58] sm:$0xff]  ;;  %v5178_v55 = vpack.i.bf16 %v344_v51, %v376_v52  ;;  %v370_v58 = vld [vmem:[%s6193_s17 + $0x168] sm:$0xff]  ;;  %v377_v62 = vld [vmem:[%s6193_s17 + $0x1a0] sm:$0xff] }
  0x4f   : > { %4439 = vmatpush.msra.mxu2 %v723_v48  ;;  %1867 = vmatpush.msra.mxu0 %v722_v49  ;;  %v718_v59 = vld [vmem:[#allocation5 + $0x48] sm:$0xff]  ;;  %v5086_v60 = vpack.i.bf16 %v370_v58, %v338_v57  ;;  %v717_v63 = vld [vmem:[#allocation5 + $0x40] sm:$0xff]  ;;  %v716_v0 = vld [vmem:[#allocation5 + $0x38] sm:$0xff]  ;;  %v5180_v1 = vpack.i.bf16 %v345_v61, %v377_v62  ;;  %p5903_p8 = pneg %p5902_p4 }
  0x50   : > { %4440 = vmatpush.msra.mxu1 %v722_v49  ;;  %v715_v2 = vld [vmem:[#allocation5 + $0x30] sm:$0xff]  ;;  %v714_v5 = vld [vmem:[#allocation5 + $0x28] sm:$0xff]  ;;  %v713_v9 = vld [vmem:[#allocation5 + $0x20] sm:$0xff] }
  0x51   : > { %4441 = vmatpush.msra.mxu2 %v722_v49  ;;  %1868 = vmatpush.msra.mxu0 %v721_v53  ;;  %v339_v3 = vld [vmem:[%s6193_s17 + $0x70] sm:$0xff]  ;;  %v346_v7 = vld [vmem:[%s6193_s17 + $0xa8] sm:$0xff]  ;;  %v712_v10 = vld [vmem:[#allocation5 + $0x18] sm:$0xff]  ;;  %p5908_p13 = pnand %p5907_p12, %p5903_p8 }
  0x52   : > { %4442 = vmatpush.msra.mxu1 %v721_v53  ;;  %v371_v4 = vld [vmem:[%s6193_s17 + $0x170] sm:$0xff]  ;;  %v340_v13 = vld [vmem:[%s6193_s17 + $0x78] sm:$0xff]  ;;  %v710_v15 = vld [vmem:[#allocation5 + $0x8] sm:$0xff] }
  0x53   : > { %5175 = vxpose.xlu1.b32.cont [2/16] %v5174_v40, 128  ;;  %1869 = vmatpush.msra.mxu0 %v720_v54  ;;  %v5088_v6 = vpack.i.bf16 %v371_v4, %v339_v3  ;;  %v711_v12 = vld [vmem:[#allocation5 + $0x10] sm:$0xff]  ;;  %v348_v21 = vld [vmem:[%s6193_s17 + $0xb8] sm:$0xff]  ;;  %v349_v24 = vld [vmem:[%s6193_s17 + $0xc0] sm:$0xff] }
  0x54   : > { %5065 = vxpose.xlu0.b32.cont [3/16] %v5064_v8, 128  ;;  %4443 = vmatpush.msra.mxu2 %v721_v53  ;;  %v378_v8 = vld [vmem:[%s6193_s17 + $0x1a8] sm:$0xff]  ;;  %v379_v18 = vld [vmem:[%s6193_s17 + $0x1b0] sm:$0xff]  ;;  %v380_v22 = vld [vmem:[%s6193_s17 + $0x1b8] sm:$0xff] }
  0x55   : > { %4444 = vmatpush.msra.mxu1 %v720_v54  ;;  %1870 = vmatpush.msra.mxu0 %v719_v56  ;;  %v381_v25 = vld [vmem:[%s6193_s17 + $0x1c0] sm:$0xff]  ;;  %v350_v27 = vld [vmem:[%s6193_s17 + $0xc8] sm:$0xff]  ;;  %v351_v30 = vld [vmem:[%s6193_s17 + $0xd0] sm:$0xff] }
  0x56   : > { %4445 = vmatpush.msra.mxu2 %v720_v54  ;;  %v382_v28 = vld [vmem:[%s6193_s17 + $0x1c8] sm:$0xff]  ;;  %v383_v31 = vld [vmem:[%s6193_s17 + $0x1d0] sm:$0xff]  ;;  %v384_v36 = vld [vmem:[%s6193_s17 + $0x1d8] sm:$0xff] }
  0x57   : > { %4446 = vmatpush.msra.mxu1 %v719_v56  ;;  %1871 = vmatpush.msra.mxu0 %v718_v59  ;;  %v5192_v32 = vpack.i.bf16 %v351_v30, %v383_v31  ;;  %v353_v40 = vld [vmem:[%s6193_s17 + $0xe0] sm:$0xff]  ;;  %v354_v45 = vld [vmem:[%s6193_s17 + $0xe8] sm:$0xff]  ;;  %v387_v51 = vld [vmem:[%s6193_s17 + $0x1f0] sm:$0xff] }
  0x58   : > { %4447 = vmatpush.msra.mxu2 %v719_v56  ;;  %v386_v46 = vld [vmem:[%s6193_s17 + $0x1e8] sm:$0xff]  ;;  %v388_v56 = vld [vmem:[%s6193_s17 + $0x1f8] sm:$0xff] }
  0x59   : > { %4448 = vmatpush.msra.mxu1 %v718_v59  ;;  %1872 = vmatpush.msra.mxu0 %v717_v63  ;;  %v736_v31 = vld [vmem:[#allocation5 + $0xd8] sm:$0xff] }
  0x5a   : > { %4449 = vmatpush.msra.mxu2 %v718_v59 }
  0x5b   : > { %5177 = vxpose.xlu1.b32.cont [3/16] %v5176_v47, 128  ;;  %4450 = vmatpush.msra.mxu1 %v717_v63  ;;  %v5198_v47 = vpack.i.bf16 %v354_v45, %v386_v46  ;;  %v767_v45 = vld [vmem:[#allocation5 + $0x1d0] sm:$0xff] }
  0x5c   : > { %5067 = vxpose.xlu0.b32.cont [4/16] %v5066_v11, 128  ;;  %1873 = vmatpush.msra.mxu0 %v716_v0  ;;  %v5182_v11 = vpack.i.bf16 %v346_v7, %v378_v8  ;;  %v399_v7 = vld [vmem:[%s6193_s17 + $0x250] sm:$0xff]  ;;  %v398_v8 = vld [vmem:[%s6193_s17 + $0x248] sm:$0xff] }
  0x5d   : > { %4452 = vmatpush.msra.mxu1 %v716_v0  ;;  %4451 = vmatpush.msra.mxu2 %v717_v63  ;;  %v787_v46 = vld [vmem:[#allocation5 + $0x270] sm:$0xff] }
  0x5e   : > { %1874 = vmatpush.msra.mxu0 %v715_v2 }
  0x5f   : > { %4454 = vmatpush.msra.mxu1 %v715_v2  ;;  %4453 = vmatpush.msra.mxu2 %v716_v0  ;;  %v404_v0 = vld [vmem:[%s6193_s17 + $0x278] sm:$0xff] }
  0x60   : > { %1875 = vmatpush.msra.mxu0 %v714_v5 }
  0x61   : > { %4456 = vmatpush.msra.mxu1 %v714_v5  ;;  %4455 = vmatpush.msra.mxu2 %v715_v2  ;;  %v402_v2 = vld [vmem:[%s6193_s17 + $0x268] sm:$0xff] }
  0x62   : > { %1876 = vmatpush.msra.mxu0 %v713_v9 }
  0x63   : > { %5179 = vxpose.xlu1.b32.cont [4/16] %v5178_v55, 128  ;;  %4458 = vmatpush.msra.mxu1 %v713_v9  ;;  %v356_v55 = vld [vmem:[%s6193_s17 + $0xf8] sm:$0xff] }
  0x64   : > { %5069 = vxpose.xlu0.b32.cont [5/16] %v5068_v14, 128  ;;  %v372_v14 = vld [vmem:[%s6193_s17 + $0x178] sm:$0xff]  ;;  %1877 = vmatpush.msra.mxu0 %v712_v10  ;;  %v5202_v57 = vpack.i.bf16 %v356_v55, %v388_v56  ;;  %v786_v55 = vld [vmem:[#allocation5 + $0x268] sm:$0xff]  ;;  %v731_v56 = vld [vmem:[#allocation5 + $0xb0] sm:$0xff] }
  0x65   : > { %4460 = vmatpush.msra.mxu1 %v712_v10  ;;  %v5090_v16 = vpack.i.bf16 %v372_v14, %v340_v13  ;;  %4457 = vmatpush.msra.mxu2 %v714_v5  ;;  %v401_v5 = vld [vmem:[%s6193_s17 + $0x260] sm:$0xff]  ;;  %v395_v13 = vld [vmem:[%s6193_s17 + $0x230] sm:$0xff]  ;;  %v394_v14 = vld [vmem:[%s6193_s17 + $0x228] sm:$0xff] }
  0x66   : > { %1878 = vmatpush.msra.mxu0 %v711_v12 }
  0x67   : > { %4462 = vmatpush.msra.mxu1 %v711_v12  ;;  %4459 = vmatpush.msra.mxu2 %v713_v9 }
  0x68   : > { %1879 = vmatpush.msra.mxu0 %v710_v15 }
  0x69   : > { %4464 = vmatpush.msra.mxu1 %v710_v15  ;;  %4461 = vmatpush.msra.mxu2 %v712_v10 }
  0x6b   : > { %5181 = vxpose.xlu1.b32.cont [5/16] %v5180_v1, 128  ;;  %4463 = vmatpush.msra.mxu2 %v711_v12  ;;  %v403_v1 = vld [vmem:[%s6193_s17 + $0x270] sm:$0xff]  ;;  %v396_v12 = vld [vmem:[%s6193_s17 + $0x238] sm:$0xff] }
  0x6c   : > { %5071 = vxpose.xlu0.b32.cont [6/16] %v5070_v17, 128  ;;  %v347_v17 = vld [vmem:[%s6193_s17 + $0xb0] sm:$0xff] }
  0x6d   : > { %v5184_v19 = vpack.i.bf16 %v347_v17, %v379_v18  ;;  %4465 = vmatpush.msra.mxu2 %v710_v15  ;;  %v740_v18 = vld [vmem:[#allocation5 + $0xf8] sm:$0xff] }
  0x73   : > { %5183 = vxpose.xlu1.b32.cont [6/16] %v5182_v11, 128  ;;  %v397_v11 = vld [vmem:[%s6193_s17 + $0x240] sm:$0xff] }
  0x74   : > { %5073 = vxpose.xlu0.b32.cont [7/16] %v5072_v20, 128  ;;  %v709_v20 = vld [vmem:[#allocation5] sm:$0xff] }
  0x75   : > { %1880 = vmatpush.msra.mxu0 %v709_v20  ;;  %4466 = vmatpush.msra.mxu1 %v709_v20 }
  0x76   : > { %4467 = vmatpush.msra.mxu2 %v709_v20  ;;  %v739_v20 = vld [vmem:[#allocation5 + $0xf0] sm:$0xff] }
  0x77   : > { %4483 = vmatpush.lsf.msrb.mxu0 %v404_v0  ;;  %v784_v0 = vld [vmem:[#allocation5 + $0x258] sm:$0xff] }
  0x79   : > { %4484 = vmatpush.lsf.msrb.mxu0 %v403_v1  ;;  %v763_v1 = vld [vmem:[#allocation5 + $0x1b0] sm:$0xff] }
  0x7b   : > { %5185 = vxpose.xlu1.b32.cont [7/16] %v5184_v19, 128  ;;  %4485 = vmatpush.lsf.msrb.mxu0 %v402_v2  ;;  %v393_v19 = vld [vmem:[%s6193_s17 + $0x220] sm:$0xff]  ;;  %v454_v2 = vld [vmem:[%s6193_s17 + $0x408] sm:$0xff] }
  0x7c   : > { %5075 = vxpose.xlu0.b32.cont [8/16] %v5074_v23, 128  ;;  %v5186_v23 = vpack.i.bf16 %v348_v21, %v380_v22  ;;  %v392_v21 = vld [vmem:[%s6193_s17 + $0x218] sm:$0xff]  ;;  %v738_v22 = vld [vmem:[#allocation5 + $0xe8] sm:$0xff] }
  0x7d   : > { %4486 = vmatpush.lsf.msrb.mxu0 %v401_v5  ;;  %v783_v5 = vld [vmem:[#allocation5 + $0x250] sm:$0xff] }
  0x83   : > { %5187 = vxpose.xlu1.b32.cont [8/16] %v5186_v23, 128  ;;  %v772_v23 = vld [vmem:[#allocation5 + $0x1f8] sm:$0xff] }
  0x84   : > { %5077 = vxpose.xlu0.b32.cont [9/16] %v5076_v26, 128  ;;  %v5188_v26 = vpack.i.bf16 %v349_v24, %v381_v25  ;;  %2060 = vmatpush.msra.mxu3 %v772_v23  ;;  %v391_v24 = vld [vmem:[%s6193_s17 + $0x210] sm:$0xff]  ;;  %v737_v25 = vld [vmem:[#allocation5 + $0xe0] sm:$0xff] }
  0x85   : > { %v455_v23 = vld [vmem:[%s6193_s17 + $0x410] sm:$0xff] }
  0x8b   : > { %5189 = vxpose.xlu1.b32.cont [9/16] %v5188_v26, 128  ;;  %v771_v26 = vld [vmem:[#allocation5 + $0x1f0] sm:$0xff] }
  0x8c   : > { %5079 = vxpose.xlu0.b32.cont [10/16] %v5078_v29, 128  ;;  %v5190_v29 = vpack.i.bf16 %v350_v27, %v382_v28  ;;  %2061 = vmatpush.msra.mxu3 %v771_v26  ;;  %v390_v28 = vld [vmem:[%s6193_s17 + $0x208] sm:$0xff]  ;;  %v725_v26 = vld [vmem:[#allocation5 + $0x80] sm:$0xff] }
  0x93   : > { %5191 = vxpose.xlu1.b32.cont [10/16] %v5190_v29, 128 }
  0x94   : > { %5081 = vxpose.xlu0.b32.cont [11/16] %v5080_v35, 128  ;;  %v352_v35 = vld [vmem:[%s6193_s17 + $0xd8] sm:$0xff] }
  0x95   : > { %v5194_v37 = vpack.i.bf16 %v352_v35, %v384_v36  ;;  %v735_v35 = vld [vmem:[#allocation5 + $0xd0] sm:$0xff]  ;;  %v769_v36 = vld [vmem:[#allocation5 + $0x1e0] sm:$0xff] }
  0x9b   : > { %5193 = vxpose.xlu1.b32.cont [11/16] %v5192_v32, 128  ;;  %v770_v32 = vld [vmem:[#allocation5 + $0x1e8] sm:$0xff] }
  0x9c   : > { %5083 = vxpose.xlu0.b32.cont [12/16] %v5082_v41, 128  ;;  %v385_v41 = vld [vmem:[%s6193_s17 + $0x1e0] sm:$0xff]  ;;  %2062 = vmatpush.msra.mxu3 %v770_v32 }
  0x9d   : > { %v5196_v42 = vpack.i.bf16 %v353_v40, %v385_v41  ;;  %v788_v40 = vld [vmem:[#allocation5 + $0x278] sm:$0xff]  ;;  %v453_v41 = vld [vmem:[%s6193_s17 + $0x400] sm:$0xff] }
  0x9e   : > { %2063 = vmatpush.msra.mxu3 %v769_v36  ;;  %v756_v36 = vld [vmem:[#allocation5 + $0x178] sm:$0xff] }
  0xa3   : > { %5195 = vxpose.xlu1.b32.cont [12/16] %v5194_v37, 128  ;;  %v734_v37 = vld [vmem:[#allocation5 + $0xc8] sm:$0xff] }
  0xa4   : > { %5085 = vxpose.xlu0.b32.cont [13/16] %v5084_v50, 128  ;;  %v355_v50 = vld [vmem:[%s6193_s17 + $0xf0] sm:$0xff] }
  0xa5   : > { %v5200_v52 = vpack.i.bf16 %v355_v50, %v387_v51 }
  0xab   : > { %5197 = vxpose.xlu1.b32.cont [13/16] %v5196_v42, 128  ;;  %v485_v42 = vld [vmem:[%s6193_s17 + $0x500] sm:$0xff] }
  0xac   : > { %5087 = vxpose.xlu0.b32.cont [14/16] %v5086_v60, 128 }
  0xb3   : > { %5199 = vxpose.xlu1.b32.cont [14/16] %v5198_v47, 128  ;;  %v5284_v47 = vpack.i.bf16 %v453_v41, %v485_v42  ;;  %v754_v41 = vld [vmem:[#allocation5 + $0x168] sm:$0xff]  ;;  %v757_v42 = vld [vmem:[#allocation5 + $0x180] sm:$0xff] }
  0xb4   : > { %5089 = vxpose.xlu0.b32.cont [15/16] %v5088_v6, 128  ;;  %v400_v6 = vld [vmem:[%s6193_s17 + $0x258] sm:$0xff] }
  0xb5   : > { %4487 = vmatpush.lsf.msrb.mxu0 %v400_v6  ;;  %5285 = vxpose.xlu2.b32.start [1/16] %v5284_v47, 128  ;;  %v486_v6 = vld [vmem:[%s6193_s17 + $0x508] sm:$0xff]  ;;  %v456_v47 = vld [vmem:[%s6193_s17 + $0x418] sm:$0xff] }
  0xb7   : > { %4488 = vmatpush.lsf.msrb.mxu0 %v399_v7 }
  0xb9   : > { %4489 = vmatpush.lsf.msrb.mxu0 %v398_v8  ;;  %v5286_v8 = vpack.i.bf16 %v454_v2, %v486_v6  ;;  %v774_v2 = vld [vmem:[#allocation5 + $0x208] sm:$0xff] }
  0xba   : > { %v750_v6 = vld [vmem:[#allocation5 + $0x148] sm:$0xff] }
  0xbb   : > { %5201 = vxpose.xlu1.b32.cont [15/16] %v5200_v52, 128  ;;  %4490 = vmatpush.lsf.msrb.mxu0 %v397_v11  ;;  %v732_v52 = vld [vmem:[#allocation5 + $0xb8] sm:$0xff] }
  0xbc   : > { %5091 = vxpose.xlu0.b32.end [16/16] %v5090_v16, 128 }
  0xbd   : > { %4491 = vmatpush.lsf.msrb.mxu0 %v396_v12  ;;  %v728_v12 = vld [vmem:[#allocation5 + $0x98] sm:$0xff]  ;;  %5287 = vxpose.xlu2.b32.cont [2/16] %v5286_v8, 128  ;;  %v773_v8 = vld [vmem:[#allocation5 + $0x200] sm:$0xff] }
  0xbf   : > { %4492 = vmatpush.lsf.msrb.mxu0 %v395_v13  ;;  %v762_v13 = vld [vmem:[#allocation5 + $0x1a8] sm:$0xff] }
  0xc1   : > { %4493 = vmatpush.lsf.msrb.mxu0 %v394_v14  ;;  %v782_v14 = vld [vmem:[#allocation5 + $0x248] sm:$0xff] }
  0xc3   : > { %5203 = vxpose.xlu1.b32.end [16/16] %v5202_v57, 128  ;;  %4494 = vmatpush.lsf.msrb.mxu0 %v393_v19  ;;  %v765_v57 = vld [vmem:[#allocation5 + $0x1c0] sm:$0xff] }
  0xc4   : > { %v781_v19 = vld [vmem:[#allocation5 + $0x240] sm:$0xff] }
  0xc5   : > { %4495 = vmatpush.lsf.msrb.mxu0 %v392_v21  ;;  %v760_v21 = vld [vmem:[#allocation5 + $0x198] sm:$0xff] }
  0xc7   : > { %4496 = vmatpush.lsf.msrb.mxu0 %v391_v24  ;;  %v487_v24 = vld [vmem:[%s6193_s17 + $0x510] sm:$0xff] }
  0xc8   : > { %v5288_v32 = vpack.i.bf16 %v455_v23, %v487_v24  ;;  %v746_v23 = vld [vmem:[#allocation5 + $0x128] sm:$0xff] }
  0xc9   : > { %4497 = vmatpush.lsf.msrb.mxu0 %v390_v28  ;;  %v759_v28 = vld [vmem:[#allocation5 + $0x190] sm:$0xff] }
  0xca   : > { %5289 = vxpose.xlu2.b32.cont [3/16] %v5288_v32, 128 }
  0xe8   : > { %v6261_v33 = vpop.trf.xlu0 }
  0xe9   : > { %v5093_v34 = vunpack.i.l.bf16 %v6261_v33 }
  0xeb   : > { %1881 = vmatmul.f32.vlgmr.msra.gmra.mxu0 %v5093_v34  ;;  %v389_v34 = vld [vmem:[%s6193_s17 + $0x200] sm:$0xff] }
  0xec   : > { %4498 = vmatpush.lsf.msrb.mxu0 %v389_v34 }
  0xee   : > { %2125 = vmatpush.msra.mxu0 %v788_v40  ;;  %v755_v40 = vld [vmem:[#allocation5 + $0x170] sm:$0xff] }
  0xef   : > { %v6314_v16 = vpop.trf.xlu1 }
  0xf0   : > { %v6266_v38 = vpop.trf.xlu0  ;;  %2126 = vmatpush.msra.mxu0 %v787_v46  ;;  %v804_v46 = vld [vmem:[#allocation5 + $0x2f8] sm:$0xff] }
  0xf1   : > { %v5098_v39 = vunpack.i.l.bf16 %v6266_v38 }
  0xf2   : > { %2127 = vmatpush.msra.mxu0 %v786_v55  ;;  %v753_v55 = vld [vmem:[#allocation5 + $0x160] sm:$0xff] }
  0xf3   : > { %1884 = vmatmul.f32.gmra.mxu0 %v5098_v39  ;;  %v768_v39 = vld [vmem:[#allocation5 + $0x1d8] sm:$0xff] }
  0xf4   : > { %2064 = vmatpush.msra.mxu3 %v768_v39  ;;  %v778_v39 = vld [vmem:[#allocation5 + $0x228] sm:$0xff] }
  0xf6   : > { %2065 = vmatpush.msra.mxu3 %v767_v45  ;;  %v5205_v45 = vunpack.i.l.bf16 %v6314_v16 }
  0xf7   : > { %v6323_v29 = vpop.trf.xlu1 }
  0xf8   : > { %v6271_v43 = vpop.trf.xlu0 }
  0xf9   : > { %v5103_v44 = vunpack.i.l.bf16 %v6271_v43 }
  0xfb   : > { %1887 = vmatmul.f32.gmra.mxu0 %v5103_v44  ;;  %v733_v44 = vld [vmem:[#allocation5 + $0xc0] sm:$0xff] }
  0xff   : > { %v6331_v50 = vpop.trf.xlu1 }
 0x100   : > { %v6276_v48 = vpop.trf.xlu0  ;;  %v5215_v24 = vunpack.i.l.bf16 %v6331_v50 }
 0x101   : > { %v5108_v49 = vunpack.i.l.bf16 %v6276_v48 }
 0x103   : > { %1890 = vmatmul.f32.gmra.mxu0 %v5108_v49 }
 0x108   : > { %v6281_v53 = vpop.trf.xlu0 }
 0x109   : > { %v5113_v54 = vunpack.i.l.bf16 %v6281_v53 }
 0x10b   : > { %1893 = vmatmul.f32.gmra.mxu0 %v5113_v54  ;;  %v766_v54 = vld [vmem:[#allocation5 + $0x1c8] sm:$0xff] }
 0x10c   : > { %2066 = vmatpush.msra.mxu3 %v766_v54  ;;  %v836_v54 = vld [vmem:[#allocation5 + $0x3f8] sm:$0xff] }
 0x10e   : > { %2067 = vmatpush.msra.mxu3 %v765_v57 }
 0x110   : > { %v6286_v58 = vpop.trf.xlu0 }
 0x111   : > { %v5118_v59 = vunpack.i.l.bf16 %v6286_v58 }
 0x113   : > { %1896 = vmatmul.f32.gmra.mxu0 %v5118_v59  ;;  %v785_v59 = vld [vmem:[#allocation5 + $0x260] sm:$0xff] }
 0x114   : > { %2128 = vmatpush.msra.mxu0 %v785_v59 }
 0x116   : > { %2129 = vmatpush.msra.mxu0 %v784_v0  ;;  %v775_v0 = vld [vmem:[#allocation5 + $0x210] sm:$0xff] }
 0x118   : > { %v6289_v60 = vpop.trf.xlu0  ;;  %2130 = vmatpush.msra.mxu0 %v783_v5  ;;  %v803_v5 = vld [vmem:[#allocation5 + $0x2f0] sm:$0xff] }
 0x119   : > { %v5123_v61 = vunpack.i.l.bf16 %v6289_v60 }
 0x11a   : > { %2131 = vmatpush.msra.mxu0 %v782_v14  ;;  %v749_v14 = vld [vmem:[#allocation5 + $0x140] sm:$0xff] }
 0x11b   : > { %1899 = vmatmul.f32.gmra.mxu0 %v5123_v61  ;;  %v730_v61 = vld [vmem:[#allocation5 + $0xa8] sm:$0xff] }
 0x11c   : > { %2132 = vmatpush.msra.mxu0 %v781_v19  ;;  %v748_v19 = vld [vmem:[#allocation5 + $0x138] sm:$0xff] }
 0x120   : > { %v6292_v62 = vpop.trf.xlu0 }
 0x121   : > { %v5128_v63 = vunpack.i.l.bf16 %v6292_v62 }
 0x123   : > { %1902 = vmatmul.f32.gmra.mxu0 %v5128_v63  ;;  %v764_v63 = vld [vmem:[#allocation5 + $0x1b8] sm:$0xff] }
 0x124   : > { %2068 = vmatpush.msra.mxu3 %v764_v63 }
 0x126   : > { %2069 = vmatpush.msra.mxu3 %v763_v1  ;;  %v751_v1 = vld [vmem:[#allocation5 + $0x150] sm:$0xff] }
 0x128   : > { %v6298_v3 = vpop.trf.xlu0  ;;  %2070 = vmatpush.msra.mxu3 %v762_v13  ;;  %v489_v13 = vld [vmem:[%s6193_s17 + $0x520] sm:$0xff] }
 0x129   : > { %v5133_v4 = vunpack.i.l.bf16 %v6298_v3 }
 0x12b   : > { %1905 = vmatmul.f32.gmra.mxu0 %v5133_v4  ;;  %v729_v4 = vld [vmem:[#allocation5 + $0xa0] sm:$0xff] }
 0x130   : > { %v6305_v9 = vpop.trf.xlu0 }
 0x131   : > { %v5138_v10 = vunpack.i.l.bf16 %v6305_v9 }
 0x133   : > { %1908 = vmatmul.f32.gmra.mxu0 %v5138_v10  ;;  %v6338_v10 = vpop.trf.xlu1 }
 0x138   : > { %v6312_v15 = vpop.trf.xlu0 }
 0x139   : > { %v5143_v17 = vunpack.i.l.bf16 %v6312_v15 }
 0x13a   : > { %4499 = vllmr.16.mxu0 }
 0x13b   : > { %1911 = vmatmul.f32.vlgmr.msra.gmra.mxu1 %v5143_v17  ;;  %v727_v17 = vld [vmem:[#allocation5 + $0x90] sm:$0xff]  ;;  %v6346_v34 = vpop.trf.xlu1 }
 0x13c   : > { %1930 = vmatpush.msra.mxu1 %v740_v18  ;;  %v761_v18 = vld [vmem:[#allocation5 + $0x1a0] sm:$0xff] }
 0x13d   : > { %2071 = vmatpush.msra.mxu3 %v761_v18 }
 0x13e   : > { %1931 = vmatpush.msra.mxu1 %v739_v20  ;;  %v726_v20 = vld [vmem:[#allocation5 + $0x88] sm:$0xff] }
 0x13f   : > { %2072 = vmatpush.msra.mxu3 %v760_v21  ;;  %v834_v21 = vld [vmem:[#allocation5 + $0x3e8] sm:$0xff] }
 0x140   : > { %v6320_v27 = vpop.trf.xlu0  ;;  %1932 = vmatpush.msra.mxu1 %v738_v22  ;;  %v780_v22 = vld [vmem:[#allocation5 + $0x238] sm:$0xff] }
 0x141   : > { %v5148_v30 = vunpack.i.l.bf16 %v6320_v27  ;;  %2133 = vmatpush.msra.mxu0 %v780_v22  ;;  %2073 = vmatpush.msra.mxu3 %v759_v28  ;;  %v802_v22 = vld [vmem:[#allocation5 + $0x2e8] sm:$0xff]  ;;  %v745_v28 = vld [vmem:[#allocation5 + $0x120] sm:$0xff] }
 0x142   : > { %1933 = vmatpush.msra.mxu1 %v737_v25  ;;  %v5208_v25 = vunpack.i.h.bf16 %v6314_v16 }
 0x143   : > { %1914 = vmatmul.f32.gmra.mxu1 %v5148_v30  ;;  %v779_v30 = vld [vmem:[#allocation5 + $0x230] sm:$0xff]  ;;  %v6355_v16 = vpop.trf.xlu1 }
 0x144   : > { %1934 = vmatpush.msra.mxu1 %v736_v31  ;;  %2134 = vmatpush.msra.mxu0 %v779_v30  ;;  %v5223_v30 = vunpack.i.h.bf16 %v6338_v10 }
 0x146   : > { %1935 = vmatpush.msra.mxu1 %v735_v35  ;;  %2135 = vmatpush.msra.mxu0 %v778_v39  ;;  %v801_v39 = vld [vmem:[#allocation5 + $0x2e0] sm:$0xff] }
 0x148   : > { %v6329_v49 = vpop.trf.xlu0  ;;  %1936 = vmatpush.msra.mxu1 %v734_v37  ;;  %v758_v37 = vld [vmem:[#allocation5 + $0x188] sm:$0xff] }
 0x149   : > { %v5153_v51 = vunpack.i.l.bf16 %v6329_v49  ;;  %2074 = vmatpush.msra.mxu3 %v758_v37  ;;  %v743_v37 = vld [vmem:[#allocation5 + $0x110] sm:$0xff] }
 0x14a   : > { %1937 = vmatpush.msra.mxu1 %v733_v44  ;;  %v777_v44 = vld [vmem:[#allocation5 + $0x220] sm:$0xff] }
 0x14b   : > { %1917 = vmatmul.f32.gmra.mxu1 %v5153_v51  ;;  %v488_v51 = vld [vmem:[%s6193_s17 + $0x518] sm:$0xff]  ;;  %2075 = vmatpush.msra.mxu3 %v757_v42  ;;  %v6362_v18 = vpop.trf.xlu1  ;;  %v459_v42 = vld [vmem:[%s6193_s17 + $0x430] sm:$0xff] }
 0x14c   : > { %1938 = vmatpush.msra.mxu1 %v732_v52  ;;  %v776_v52 = vld [vmem:[#allocation5 + $0x218] sm:$0xff]  ;;  %2136 = vmatpush.msra.mxu0 %v777_v44  ;;  %v5290_v59 = vpack.i.bf16 %v456_v47, %v488_v51  ;;  %v491_v44 = vld [vmem:[%s6193_s17 + $0x530] sm:$0xff]  ;;  %v5096_v51 = vunpack.i.h.bf16 %v6261_v33  ;;  %v5225_v33 = vunpack.i.l.bf16 %v6346_v34 }
 0x14d   : > { %2076 = vmatmul.f32.vlgmr.msra.gmra.mxu3 %v5205_v45  ;;  %v741_v45 = vld [vmem:[#allocation5 + $0x100] sm:$0xff] }
 0x14e   : > { %1939 = vmatpush.msra.mxu1 %v731_v56  ;;  %v5213_v56 = vunpack.i.h.bf16 %v6323_v29  ;;  %2137 = vmatpush.msra.mxu0 %v776_v52  ;;  %v820_v52 = vld [vmem:[#allocation5 + $0x378] sm:$0xff] }
 0x14f   : > { %2320 = vmatpush.msra.mxu3 %v836_v54  ;;  %5291 = vxpose.xlu2.b32.cont [4/16] %v5290_v59, 128  ;;  %v5296_v54 = vpack.i.bf16 %v459_v42, %v491_v44  ;;  %v832_v59 = vld [vmem:[#allocation5 + $0x3d8] sm:$0xff]  ;;  %v494_v42 = vld [vmem:[%s6193_s17 + $0x548] sm:$0xff] }
 0x150   : > { %v6336_v7 = vpop.trf.xlu0  ;;  %1940 = vmatpush.msra.mxu1 %v730_v61  ;;  %v752_v61 = vld [vmem:[#allocation5 + $0x158] sm:$0xff]  ;;  %2138 = vmatpush.msra.mxu0 %v775_v0  ;;  %v418_v0 = vld [vmem:[%s6193_s17 + $0x2e8] sm:$0xff] }
 0x151   : > { %v5158_v11 = vunpack.i.l.bf16 %v6336_v7 }
 0x152   : > { %1941 = vmatpush.msra.mxu1 %v729_v4  ;;  %v835_v4 = vld [vmem:[#allocation5 + $0x3f0] sm:$0xff]  ;;  %2139 = vmatpush.msra.mxu0 %v774_v2  ;;  %v492_v2 = vld [vmem:[%s6193_s17 + $0x538] sm:$0xff] }
 0x153   : > { %1920 = vmatmul.f32.gmra.mxu1 %v5158_v11  ;;  %v5210_v11 = vunpack.i.l.bf16 %v6323_v29  ;;  %2321 = vmatpush.msra.mxu3 %v835_v4  ;;  %v747_v29 = vld [vmem:[#allocation5 + $0x130] sm:$0xff]  ;;  %v6368_v32 = vpop.trf.xlu1  ;;  %v5233_v4 = vunpack.i.h.bf16 %v6355_v16 }
 0x154   : > { %1942 = vmatpush.msra.mxu1 %v728_v12  ;;  %v457_v12 = vld [vmem:[%s6193_s17 + $0x420] sm:$0xff]  ;;  %2140 = vmatpush.msra.mxu0 %v773_v8  ;;  %v5101_v8 = vunpack.i.h.bf16 %v6266_v38  ;;  %v831_v38 = vld [vmem:[#allocation5 + $0x3d0] sm:$0xff]  ;;  %v5243_v44 = vunpack.i.h.bf16 %v6368_v32 }
 0x155   : > { %2079 = vmatmul.f32.gmra.mxu3 %v5210_v11 }
 0x156   : > { %1943 = vmatpush.msra.mxu1 %v727_v17  ;;  %v5218_v17 = vunpack.i.h.bf16 %v6331_v50  ;;  %2322 = vmatpush.msra.mxu3 %v834_v21  ;;  %v833_v50 = vld [vmem:[#allocation5 + $0x3e0] sm:$0xff]  ;;  %v414_v21 = vld [vmem:[%s6193_s17 + $0x2c8] sm:$0xff] }
 0x158   : > { %v6344_v31 = vpop.trf.xlu0  ;;  %1944 = vmatpush.msra.mxu1 %v726_v20  ;;  %v5292_v20 = vpack.i.bf16 %v457_v12, %v489_v13  ;;  %2323 = vmatpush.msra.mxu3 %v833_v50  ;;  %v417_v12 = vld [vmem:[%s6193_s17 + $0x2e0] sm:$0xff]  ;;  %v416_v13 = vld [vmem:[%s6193_s17 + $0x2d8] sm:$0xff]  ;;  %v798_v50 = vld [vmem:[#allocation5 + $0x2c8] sm:$0xff] }
 0x159   : > { %v5163_v35 = vunpack.i.l.bf16 %v6344_v31 }
 0x15a   : > { %1945 = vmatpush.msra.mxu1 %v725_v26  ;;  %5293 = vxpose.xlu2.b32.cont [5/16] %v5292_v20, 128  ;;  %v490_v26 = vld [vmem:[%s6193_s17 + $0x528] sm:$0xff]  ;;  %v799_v20 = vld [vmem:[#allocation5 + $0x2d0] sm:$0xff] }
 0x15b   : > { %1923 = vmatmul.f32.vlgmr.msra.gmra.mxu2 %v5163_v35  ;;  %1946 = vmatmul.f32.vlgmr.msra.gmra.mxu1 %v5208_v25  ;;  %v458_v25 = vld [vmem:[%s6193_s17 + $0x428] sm:$0xff]  ;;  %v744_v35 = vld [vmem:[#allocation5 + $0x118] sm:$0xff]  ;;  %v6374_v47 = vpop.trf.xlu1 }
 0x15c   : > { %1995 = vmatpush.msra.mxu2 %v756_v36  ;;  %2190 = vmatpush.msra.mxu1 %v804_v46  ;;  %v5294_v36 = vpack.i.bf16 %v458_v25, %v490_v26  ;;  %v5228_v46 = vunpack.i.h.bf16 %v6346_v34  ;;  %v816_v34 = vld [vmem:[#allocation5 + $0x358] sm:$0xff]  ;;  %v5106_v26 = vunpack.i.h.bf16 %v6271_v43  ;;  %v5235_v43 = vunpack.i.l.bf16 %v6362_v18 }
 0x15d   : > { %4500 = vmatmul.lmr.bf16.vlgmr.msra.gmra.16.mxu0  ;;  %2082 = vmatmul.f32.gmra.mxu3 %v5215_v24  ;;  %v5238_v24 = vunpack.i.h.bf16 %v6362_v18 }
 0x15e   : > { %1996 = vmatpush.msra.mxu2 %v755_v40  ;;  %2191 = vmatpush.msra.mxu1 %v803_v5  ;;  %v742_v40 = vld [vmem:[#allocation5 + $0x108] sm:$0xff]  ;;  %v817_v5 = vld [vmem:[#allocation5 + $0x360] sm:$0xff] }
 0x15f   : > { %2324 = vmatpush.msra.mxu3 %v832_v59  ;;  %v407_v59 = vld [vmem:[%s6193_s17 + $0x290] sm:$0xff] }
 0x160   : > { %1997 = vmatpush.msra.mxu2 %v754_v41  ;;  %v6353_v57 = vpop.trf.xlu0  ;;  %2192 = vmatpush.msra.mxu1 %v802_v22  ;;  %v5220_v41 = vunpack.i.l.bf16 %v6338_v10  ;;  %v819_v10 = vld [vmem:[#allocation5 + $0x370] sm:$0xff]  ;;  %v461_v22 = vld [vmem:[%s6193_s17 + $0x440] sm:$0xff] }
 0x161   : > { %v5168_v63 = vunpack.i.l.bf16 %v6353_v57  ;;  %2325 = vmatpush.msra.mxu3 %v831_v38  ;;  %v452_v38 = vld [vmem:[%s6193_s17 + $0x3f8] sm:$0xff] }
 0x162   : > { %1998 = vmatpush.msra.mxu2 %v753_v55  ;;  %5295 = vxpose.xlu2.b32.cont [6/16] %v5294_v36, 128  ;;  %v420_v55 = vld [vmem:[%s6193_s17 + $0x2f8] sm:$0xff]  ;;  %v411_v36 = vld [vmem:[%s6193_s17 + $0x2b0] sm:$0xff] }
 0x163   : > { %1949 = vmatmul.f32.gmra.mxu1 %v5213_v56  ;;  %1926 = vmatmul.f32.gmra.mxu2 %v5168_v63  ;;  %v419_v56 = vld [vmem:[%s6193_s17 + $0x2f0] sm:$0xff]  ;;  %v818_v63 = vld [vmem:[#allocation5 + $0x368] sm:$0xff] }
 0x164   : > { %1999 = vmatpush.msra.mxu2 %v752_v61  ;;  %2193 = vmatpush.msra.mxu1 %v801_v39  ;;  %v800_v61 = vld [vmem:[#allocation5 + $0x2d8] sm:$0xff]  ;;  %v410_v39 = vld [vmem:[%s6193_s17 + $0x2a8] sm:$0xff] }
 0x165   : > { %4501 = vmatmul.lmr.bf16.gmra.16.mxu0  ;;  %2085 = vmatmul.f32.gmra.mxu3 %v5220_v41  ;;  %v462_v41 = vld [vmem:[%s6193_s17 + $0x448] sm:$0xff] }
 0x166   : > { %2000 = vmatpush.msra.mxu2 %v751_v1  ;;  %4600 = vmatpush.lsf.msrb.mxu1 %v420_v55  ;;  %v460_v1 = vld [vmem:[%s6193_s17 + $0x438] sm:$0xff]  ;;  %v5302_v18 = vpack.i.bf16 %v462_v41, %v494_v42  ;;  %v813_v55 = vld [vmem:[#allocation5 + $0x340] sm:$0xff]  ;;  %v811_v41 = vld [vmem:[#allocation5 + $0x330] sm:$0xff] }
 0x167   : > { %v5298_v11 = vpack.i.bf16 %v460_v1, %v492_v2  ;;  %v495_v1 = vld [vmem:[%s6193_s17 + $0x550] sm:$0xff]  ;;  %v5248_v2 = vunpack.i.h.bf16 %v6374_v47 }
 0x168   : > { %2001 = vmatpush.msra.mxu2 %v750_v6  ;;  %4601 = vmatpush.lsf.msrb.mxu1 %v419_v56  ;;  %v6384_v6 = vpop.trf.xlu1  ;;  %v503_v42 = vld [vmem:[%s6193_s17 + $0x590] sm:$0xff] }
 0x16a   : > { %2002 = vmatpush.msra.mxu2 %v749_v14  ;;  %5297 = vxpose.xlu2.b32.cont [7/16] %v5296_v54, 128  ;;  %v815_v14 = vld [vmem:[#allocation5 + $0x350] sm:$0xff]  ;;  %v501_v54 = vld [vmem:[%s6193_s17 + $0x580] sm:$0xff] }
 0x16b   : > { %1952 = vmatmul.f32.gmra.mxu1 %v5218_v17  ;;  %v415_v17 = vld [vmem:[%s6193_s17 + $0x2d0] sm:$0xff] }
 0x16c   : > { %2003 = vmatpush.msra.mxu2 %v748_v19  ;;  %2194 = vmatpush.msra.mxu1 %v800_v61  ;;  %v6390_v19 = vpop.f32.mrf.mxu0  ;;  %v829_v61 = vld [vmem:[#allocation5 + $0x3c0] sm:$0xff] }
 0x16d   : > { %4502 = vmatmul.lmr.bf16.gmra.16.mxu0  ;;  %2088 = vmatmul.f32.gmra.mxu3 %v5225_v33  ;;  %v406_v33 = vld [vmem:[%s6193_s17 + $0x288] sm:$0xff] }
 0x16e   : > { %2004 = vmatpush.msra.mxu2 %v747_v29  ;;  %4602 = vmatpush.lsf.msrb.mxu1 %v418_v0  ;;  %v5230_v29 = vunpack.i.l.bf16 %v6355_v16  ;;  %v463_v0 = vld [vmem:[%s6193_s17 + $0x450] sm:$0xff] }
 0x170   : > { %2005 = vmatpush.msra.mxu2 %v746_v23  ;;  %4603 = vmatpush.lsf.msrb.mxu1 %v417_v12  ;;  %v493_v23 = vld [vmem:[%s6193_s17 + $0x540] sm:$0xff]  ;;  %v6397_v25 = vpop.trf.xlu1  ;;  %v470_v12 = vld [vmem:[%s6193_s17 + $0x488] sm:$0xff] }
 0x171   : > { %v5300_v16 = vpack.i.bf16 %v461_v22, %v493_v23  ;;  %v451_v22 = vld [vmem:[%s6193_s17 + $0x3f0] sm:$0xff]  ;;  %v464_v23 = vld [vmem:[%s6193_s17 + $0x458] sm:$0xff] }
 0x172   : > { %2006 = vmatpush.msra.mxu2 %v745_v28  ;;  %4604 = vmatpush.lsf.msrb.mxu1 %v416_v13  ;;  %v413_v28 = vld [vmem:[%s6193_s17 + $0x2c0] sm:$0xff]  ;;  %v502_v13 = vld [vmem:[%s6193_s17 + $0x588] sm:$0xff] }
 0x173   : > { %1955 = vmatmul.f32.gmra.mxu1 %v5223_v30  ;;  %5299 = vxpose.xlu2.b32.cont [8/16] %v5298_v11, 128  ;;  %v412_v30 = vld [vmem:[%s6193_s17 + $0x2b8] sm:$0xff] }
 0x174   : > { %2007 = vmatpush.msra.mxu2 %v744_v35  ;;  %4605 = vmatpush.lsf.msrb.mxu1 %v415_v17  ;;  %v814_v35 = vld [vmem:[#allocation5 + $0x348] sm:$0xff]  ;;  %v436_v11 = vld [vmem:[%s6193_s17 + $0x378] sm:$0xff]  ;;  %v435_v17 = vld [vmem:[%s6193_s17 + $0x370] sm:$0xff] }
 0x175   : > { %4503 = vmatmul.lmr.bf16.gmra.16.mxu0  ;;  %2091 = vmatmul.f32.gmra.mxu3 %v5230_v29  ;;  %v5245_v29 = vunpack.i.l.bf16 %v6374_v47 }
 0x176   : > { %2008 = vmatpush.msra.mxu2 %v743_v37  ;;  %2195 = vmatpush.msra.mxu1 %v799_v20  ;;  %v830_v37 = vld [vmem:[#allocation5 + $0x3c8] sm:$0xff]  ;;  %v5398_v20 = vpack.i.bf16 %v470_v12, %v502_v13  ;;  %v427_v12 = vld [vmem:[%s6193_s17 + $0x330] sm:$0xff]  ;;  %v444_v13 = vld [vmem:[%s6193_s17 + $0x3b8] sm:$0xff] }
 0x177   : > { %2326 = vmatpush.msra.mxu3 %v830_v37 }
 0x178   : > { %2009 = vmatpush.msra.mxu2 %v742_v40  ;;  %4606 = vmatpush.lsf.msrb.mxu1 %v414_v21  ;;  %v6405_v40 = vpop.f32.mrf.mxu0  ;;  %v434_v21 = vld [vmem:[%s6193_s17 + $0x368] sm:$0xff] }
 0x179   : > { %2327 = vmatpush.msra.mxu3 %v829_v61  ;;  %v5126_v61 = vunpack.i.h.bf16 %v6289_v60  ;;  %v504_v60 = vld [vmem:[%s6193_s17 + $0x598] sm:$0xff] }
 0x17a   : > { %2010 = vmatpush.msra.mxu2 %v741_v45  ;;  %4607 = vmatpush.lsf.msrb.mxu1 %v413_v28  ;;  %v6410_v45 = vpop.trf.xlu1  ;;  %v433_v28 = vld [vmem:[%s6193_s17 + $0x360] sm:$0xff] }
 0x17b   : > { %2011 = vmatmul.f32.vlgmr.msra.gmra.mxu2 %v5096_v51  ;;  %1958 = vmatmul.f32.gmra.mxu1 %v5228_v46  ;;  %v5111_v46 = vunpack.i.h.bf16 %v6276_v48  ;;  %v409_v51 = vld [vmem:[%s6193_s17 + $0x2a0] sm:$0xff] }
 0x17c   : > { %2255 = vmatpush.msra.mxu2 %v820_v52  ;;  %4608 = vmatpush.lsf.msrb.mxu1 %v412_v30  ;;  %v469_v52 = vld [vmem:[%s6193_s17 + $0x480] sm:$0xff]  ;;  %v5121_v30 = vunpack.i.h.bf16 %v6286_v58  ;;  %v431_v58 = vld [vmem:[%s6193_s17 + $0x350] sm:$0xff] }
 0x17d   : > { %4504 = vmatmul.lmr.bf16.gmra.16.mxu0  ;;  %5301 = vxpose.xlu2.b32.cont [9/16] %v5300_v16, 128  ;;  %v5396_v56 = vpack.i.bf16 %v469_v52, %v501_v54  ;;  %v797_v48 = vld [vmem:[#allocation5 + $0x2c0] sm:$0xff]  ;;  %v796_v16 = vld [vmem:[#allocation5 + $0x2b8] sm:$0xff]  ;;  %v430_v52 = vld [vmem:[%s6193_s17 + $0x348] sm:$0xff] }
 0x17e   : > { %2256 = vmatpush.msra.mxu2 %v819_v10  ;;  %4609 = vmatpush.lsf.msrb.mxu1 %v411_v36  ;;  %v408_v10 = vld [vmem:[%s6193_s17 + $0x298] sm:$0xff]  ;;  %v450_v36 = vld [vmem:[%s6193_s17 + $0x3e8] sm:$0xff]  ;;  %v465_v54 = vld [vmem:[%s6193_s17 + $0x460] sm:$0xff] }
 0x17f   : > { %2094 = vmatmul.f32.gmra.mxu3 %v5235_v43  ;;  %5397 = vxpose.xlu0.b32.start [1/16] %v5396_v56, 128  ;;  %v471_v43 = vld [vmem:[%s6193_s17 + $0x490] sm:$0xff] }
 0x180   : > { %2257 = vmatpush.msra.mxu2 %v818_v63  ;;  %2196 = vmatpush.msra.mxu1 %v798_v50  ;;  %v5240_v63 = vunpack.i.l.bf16 %v6368_v32  ;;  %v5116_v32 = vunpack.i.h.bf16 %v6281_v53  ;;  %v828_v53 = vld [vmem:[#allocation5 + $0x3b8] sm:$0xff]  ;;  %v447_v56 = vld [vmem:[%s6193_s17 + $0x3d0] sm:$0xff] }
 0x181   : > { %4834 = vmatpush.lsf.msrb.mxu3 %v452_v38  ;;  %v432_v50 = vld [vmem:[%s6193_s17 + $0x358] sm:$0xff]  ;;  %v498_v38 = vld [vmem:[%s6193_s17 + $0x568] sm:$0xff] }
 0x182   : > { %2258 = vmatpush.msra.mxu2 %v817_v5  ;;  %4610 = vmatpush.lsf.msrb.mxu1 %v410_v39  ;;  %v6425_v5 = vpop.trf.xlu1  ;;  %v449_v39 = vld [vmem:[%s6193_s17 + $0x3e0] sm:$0xff] }
 0x183   : > { %2014 = vmatmul.f32.gmra.mxu2 %v5101_v8  ;;  %1961 = vmatmul.f32.gmra.mxu1 %v5233_v4  ;;  %v6423_v4 = vpop.f32.mrf.mxu0  ;;  %v5304_v8 = vpack.i.bf16 %v463_v0, %v495_v1  ;;  %v472_v0 = vld [vmem:[%s6193_s17 + $0x498] sm:$0xff] }
 0x184   : > { %2259 = vmatpush.msra.mxu2 %v816_v34  ;;  %4611 = vmatpush.lsf.msrb.mxu1 %v409_v51  ;;  %v405_v34 = vld [vmem:[%s6193_s17 + $0x280] sm:$0xff]  ;;  %v5400_v51 = vpack.i.bf16 %v471_v43, %v503_v42  ;;  %v428_v1 = vld [vmem:[%s6193_s17 + $0x338] sm:$0xff]  ;;  %v423_v43 = vld [vmem:[%s6193_s17 + $0x310] sm:$0xff]  ;;  %v5268_v42 = vunpack.i.h.bf16 %v6425_v5 }
 0x185   : > { %4505 = vmatmul.lmr.bf16.gmra.16.mxu0  ;;  %5303 = vxpose.xlu2.b32.cont [10/16] %v5302_v18, 128  ;;  %v448_v18 = vld [vmem:[%s6193_s17 + $0x3d8] sm:$0xff] }
 0x186   : > { %2260 = vmatpush.msra.mxu2 %v815_v14  ;;  %4612 = vmatpush.lsf.msrb.mxu1 %v408_v10  ;;  %v812_v14 = vld [vmem:[#allocation5 + $0x338] sm:$0xff]  ;;  %v497_v10 = vld [vmem:[%s6193_s17 + $0x560] sm:$0xff] }
 0x187   : > { %2097 = vmatmul.f32.gmra.mxu3 %v5240_v63  ;;  %5399 = vxpose.xlu0.b32.cont [2/16] %v5398_v20, 128  ;;  %v429_v63 = vld [vmem:[%s6193_s17 + $0x340] sm:$0xff]  ;;  %v5263_v20 = vunpack.i.h.bf16 %v6410_v45 }
 0x188   : > { %2261 = vmatpush.msra.mxu2 %v814_v35  ;;  %4613 = vmatpush.lsf.msrb.mxu1 %v407_v59  ;;  %v795_v59 = vld [vmem:[#allocation5 + $0x2b0] sm:$0xff] }
 0x189   : > { %2328 = vmatpush.msra.mxu3 %v828_v53  ;;  %v426_v53 = vld [vmem:[%s6193_s17 + $0x328] sm:$0xff] }
 0x18a   : > { %2262 = vmatpush.msra.mxu2 %v813_v55  ;;  %2197 = vmatpush.msra.mxu1 %v797_v48  ;;  %v6441_v47 = vpop.trf.xlu1  ;;  %v5258_v55 = vunpack.i.h.bf16 %v6397_v25  ;;  %v5308_v48 = vpack.i.bf16 %v465_v54, %v497_v10  ;;  %v791_v54 = vld [vmem:[#allocation5 + $0x290] sm:$0xff]  ;;  %v422_v10 = vld [vmem:[%s6193_s17 + $0x308] sm:$0xff] }
 0x18b   : > { %2017 = vmatmul.f32.gmra.mxu2 %v5106_v26  ;;  %1964 = vmatmul.f32.gmra.mxu1 %v5238_v24  ;;  %v496_v24 = vld [vmem:[%s6193_s17 + $0x558] sm:$0xff]  ;;  %v5253_v26 = vunpack.i.h.bf16 %v6384_v6  ;;  %v6445_v37 = vpop.f32.mrf.mxu0 }
 0x18c   : > { %4614 = vmatpush.lsf.msrb.mxu1 %v406_v33  ;;  %4717 = vmatpush.lsf.msrb.mxu2 %v436_v11  ;;  %v5306_v35 = vpack.i.bf16 %v464_v23, %v496_v24  ;;  %v446_v33 = vld [vmem:[%s6193_s17 + $0x3c8] sm:$0xff]  ;;  %v5255_v11 = vunpack.i.l.bf16 %v6397_v25  ;;  %v425_v24 = vld [vmem:[%s6193_s17 + $0x320] sm:$0xff] }
 0x18d   : > { %4506 = vmatmul.lmr.bf16.gmra.16.mxu0  ;;  %5305 = vxpose.xlu2.b32.cont [11/16] %v5304_v8, 128 }
 0x18e   : > { %4615 = vmatpush.lsf.msrb.mxu1 %v405_v34  ;;  %2263 = vmatpush.msra.mxu2 %v812_v14  ;;  %v826_v34 = vld [vmem:[#allocation5 + $0x3a8] sm:$0xff]  ;;  %v5402_v14 = vpack.i.bf16 %v472_v0, %v504_v60  ;;  %v437_v0 = vld [vmem:[%s6193_s17 + $0x380] sm:$0xff]  ;;  %v468_v60 = vld [vmem:[%s6193_s17 + $0x478] sm:$0xff] }
 0x18f   : > { %4835 = vmatpush.lsf.msrb.mxu3 %v451_v22  ;;  %5401 = vxpose.xlu0.b32.cont [3/16] %v5400_v51, 128  ;;  %v794_v22 = vld [vmem:[#allocation5 + $0x2a8] sm:$0xff] }
 0x190   : > { %4718 = vmatpush.lsf.msrb.mxu2 %v435_v17  ;;  %2100 = vmatmul.f32.gmra.mxu3 %v5245_v29  ;;  %v466_v17 = vld [vmem:[%s6193_s17 + $0x468] sm:$0xff]  ;;  %v443_v29 = vld [vmem:[%s6193_s17 + $0x3b0] sm:$0xff] }
 0x191   : > { %2198 = vmatpush.msra.mxu1 %v796_v16  ;;  %4836 = vmatpush.lsf.msrb.mxu3 %v450_v36  ;;  %v5310_v23 = vpack.i.bf16 %v466_v17, %v498_v38  ;;  %v793_v16 = vld [vmem:[#allocation5 + $0x2a0] sm:$0xff]  ;;  %v824_v17 = vld [vmem:[#allocation5 + $0x398] sm:$0xff] }
 0x192   : > { %4719 = vmatpush.lsf.msrb.mxu2 %v434_v21  ;;  %v5131_v21 = vunpack.i.h.bf16 %v6292_v62  ;;  %v809_v62 = vld [vmem:[#allocation5 + $0x320] sm:$0xff] }
 0x193   : > { %2020 = vmatmul.f32.gmra.mxu2 %v5111_v46  ;;  %1967 = vmatmul.f32.gmra.mxu1 %v5243_v44  ;;  %v827_v44 = vld [vmem:[#allocation5 + $0x3b0] sm:$0xff]  ;;  %v5250_v46 = vunpack.i.l.bf16 %v6384_v6  ;;  %v6459_v6 = vpop.trf.xlu1  ;;  %v6467_v8 = vpop.f32.mrf.mxu0  ;;  %v505_v36 = vld [vmem:[%s6193_s17 + $0x5a0] sm:$0xff] }
 0x194   : > { %4720 = vmatpush.lsf.msrb.mxu2 %v433_v28  ;;  %4837 = vmatpush.lsf.msrb.mxu3 %v449_v39  ;;  %v424_v28 = vld [vmem:[%s6193_s17 + $0x318] sm:$0xff] }
 0x195   : > { %4507 = vmatmul.lmr.bf16.gmra.16.mxu0  ;;  %5307 = vxpose.xlu2.b32.cont [12/16] %v5306_v35, 128  ;;  %v473_v35 = vld [vmem:[%s6193_s17 + $0x4a0] sm:$0xff] }
 0x196   : > { %4721 = vmatpush.lsf.msrb.mxu2 %v432_v50  ;;  %2329 = vmatpush.msra.mxu3 %v827_v44  ;;  %v5260_v50 = vunpack.i.l.bf16 %v6410_v45  ;;  %v5404_v39 = vpack.i.bf16 %v473_v35, %v505_v36  ;;  %v792_v44 = vld [vmem:[#allocation5 + $0x298] sm:$0xff]  ;;  %v5136_v45 = vunpack.i.h.bf16 %v6298_v3  ;;  %v421_v3 = vld [vmem:[%s6193_s17 + $0x300] sm:$0xff]  ;;  %v806_v36 = vld [vmem:[#allocation5 + $0x308] sm:$0xff] }
 0x197   : > { %2199 = vmatpush.msra.mxu1 %v795_v59  ;;  %5403 = vxpose.xlu0.b32.cont [4/16] %v5402_v14, 128  ;;  %v790_v59 = vld [vmem:[#allocation5 + $0x288] sm:$0xff]  ;;  %v5141_v14 = vunpack.i.h.bf16 %v6305_v9  ;;  %v851_v9 = vld [vmem:[#allocation5 + $0x470] sm:$0xff]  ;;  %v508_v35 = vld [vmem:[%s6193_s17 + $0x5b8] sm:$0xff] }
 0x198   : > { %2264 = vmatpush.msra.mxu2 %v811_v41  ;;  %4838 = vmatpush.lsf.msrb.mxu3 %v448_v18  ;;  %v499_v18 = vld [vmem:[%s6193_s17 + $0x570] sm:$0xff] }
 0x199   : > { %2103 = vmatmul.f32.gmra.mxu3 %v5250_v46  ;;  %2200 = vmatpush.msra.mxu1 %v794_v22  ;;  %v467_v46 = vld [vmem:[%s6193_s17 + $0x470] sm:$0xff] }
 0x19a   : > { %4722 = vmatpush.lsf.msrb.mxu2 %v431_v58  ;;  %4839 = vmatpush.lsf.msrb.mxu3 %v447_v56  ;;  %v440_v58 = vld [vmem:[%s6193_s17 + $0x398] sm:$0xff]  ;;  %v5312_v56 = vpack.i.bf16 %v467_v46, %v499_v18  ;;  %v823_v22 = vld [vmem:[#allocation5 + $0x390] sm:$0xff]  ;;  %v5151_v46 = vunpack.i.h.bf16 %v6320_v27  ;;  %v846_v18 = vld [vmem:[#allocation5 + $0x448] sm:$0xff] }
 0x19b   : > { %2023 = vmatmul.f32.gmra.mxu2 %v5116_v32  ;;  %1970 = vmatmul.f32.gmra.mxu1 %v5248_v2  ;;  %v445_v2 = vld [vmem:[%s6193_s17 + $0x3c0] sm:$0xff]  ;;  %v810_v32 = vld [vmem:[#allocation5 + $0x328] sm:$0xff]  ;;  %v6478_v25 = vpop.trf.xlu1  ;;  %v6489_v41 = vpop.f32.mrf.mxu0  ;;  %v844_v27 = vld [vmem:[#allocation5 + $0x438] sm:$0xff] }
 0x19c   : > { %4723 = vmatpush.lsf.msrb.mxu2 %v430_v52  ;;  %4840 = vmatpush.lsf.msrb.mxu3 %v446_v33  ;;  %v825_v52 = vld [vmem:[#allocation5 + $0x3a0] sm:$0xff] }
 0x19d   : > { %4508 = vmatmul.lmr.bf16.gmra.16.mxu0  ;;  %5309 = vxpose.xlu2.b32.cont [13/16] %v5308_v48, 128  ;;  %v506_v48 = vld [vmem:[%s6193_s17 + $0x5a8] sm:$0xff]  ;;  %v789_v33 = vld [vmem:[#allocation5 + $0x280] sm:$0xff] }
 0x19e   : > { %4724 = vmatpush.lsf.msrb.mxu2 %v429_v63  ;;  %4841 = vmatpush.lsf.msrb.mxu3 %v445_v2  ;;  %v438_v63 = vld [vmem:[%s6193_s17 + $0x388] sm:$0xff] }
 0x19f   : > { %2201 = vmatpush.msra.mxu1 %v793_v16  ;;  %5405 = vxpose.xlu0.b32.cont [5/16] %v5404_v39, 128  ;;  %v5146_v16 = vunpack.i.h.bf16 %v6312_v15  ;;  %v848_v39 = vld [vmem:[#allocation5 + $0x458] sm:$0xff] }
 0x1a0   : > { %2265 = vmatpush.msra.mxu2 %v810_v32  ;;  %2330 = vmatpush.msra.mxu3 %v826_v34  ;;  %v5273_v32 = vunpack.i.h.bf16 %v6441_v47  ;;  %v500_v34 = vld [vmem:[%s6193_s17 + $0x578] sm:$0xff] }
 0x1a1   : > { %2106 = vmatmul.f32.gmra.mxu3 %v5255_v11  ;;  %2202 = vmatpush.msra.mxu1 %v792_v44  ;;  %v5314_v38 = vpack.i.bf16 %v468_v60, %v500_v34  ;;  %v5275_v44 = vunpack.i.l.bf16 %v6459_v6  ;;  %v868_v60 = vld [vmem:[#allocation5 + $0x4f8] sm:$0xff] }
 0x1a2   : > { %4616 = vllmr.16.mxu1  ;;  %4725 = vmatpush.lsf.msrb.mxu2 %v428_v1  ;;  %v808_v1 = vld [vmem:[#allocation5 + $0x318] sm:$0xff] }
 0x1a3   : > { %2026 = vmatmul.f32.gmra.mxu2 %v5121_v30  ;;  %1973 = vmatmul.f32.gmra.mxu1 %v5253_v26  ;;  %v442_v26 = vld [vmem:[%s6193_s17 + $0x3a8] sm:$0xff]  ;;  %v441_v30 = vld [vmem:[%s6193_s17 + $0x3a0] sm:$0xff]  ;;  %v6508_v11 = vpop.f32.mrf.mxu0  ;;  %v840_v34 = vld [vmem:[#allocation5 + $0x418] sm:$0xff] }
 0x1a4   : > { %4726 = vmatpush.lsf.msrb.mxu2 %v427_v12  ;;  %4842 = vmatpush.lsf.msrb.mxu3 %v444_v13  ;;  %v5265_v13 = vunpack.i.l.bf16 %v6425_v5 }
 0x1a5   : > { %4509 = vmatmul.lmr.bf16.gmra.16.mxu0  ;;  %5311 = vxpose.xlu2.b32.cont [14/16] %v5310_v23, 128  ;;  %v5278_v23 = vunpack.i.h.bf16 %v6459_v6 }
 0x1a6   : > { %4727 = vmatpush.lsf.msrb.mxu2 %v426_v53  ;;  %4843 = vmatpush.lsf.msrb.mxu3 %v443_v29  ;;  %v807_v53 = vld [vmem:[#allocation5 + $0x310] sm:$0xff] }
 0x1a7   : > { %2203 = vmatpush.msra.mxu1 %v791_v54  ;;  %v507_v29 = vld [vmem:[%s6193_s17 + $0x5b0] sm:$0xff]  ;;  %v509_v54 = vld [vmem:[%s6193_s17 + $0x5c0] sm:$0xff] }
 0x1a8   : > { %4728 = vmatpush.lsf.msrb.mxu2 %v425_v24  ;;  %4844 = vmatpush.lsf.msrb.mxu3 %v442_v26  ;;  %v5270_v26 = vunpack.i.l.bf16 %v6441_v47  ;;  %v847_v47 = vld [vmem:[#allocation5 + $0x450] sm:$0xff] }
 0x1a9   : > { %2109 = vmatmul.f32.gmra.mxu3 %v5260_v50  ;;  %2204 = vmatpush.msra.mxu1 %v790_v59  ;;  %v849_v50 = vld [vmem:[#allocation5 + $0x460] sm:$0xff] }
 0x1aa   : > { %4729 = vmatpush.lsf.msrb.mxu2 %v424_v28  ;;  %4845 = vmatpush.lsf.msrb.mxu3 %v441_v30  ;;  %v850_v28 = vld [vmem:[#allocation5 + $0x468] sm:$0xff] }
 0x1ab   : > { %2029 = vmatmul.f32.gmra.mxu2 %v5126_v61  ;;  %1976 = vmatmul.f32.gmra.mxu1 %v5258_v55  ;;  %v439_v55 = vld [vmem:[%s6193_s17 + $0x390] sm:$0xff]  ;;  %v474_v61 = vld [vmem:[%s6193_s17 + $0x4a8] sm:$0xff]  ;;  %v6521_v30 = vpop.f32.mrf.mxu0 }
 0x1ac   : > { %2266 = vmatpush.msra.mxu2 %v809_v62  ;;  %4846 = vmatpush.lsf.msrb.mxu3 %v440_v58  ;;  %v5406_v2 = vpack.i.bf16 %v474_v61, %v506_v48  ;;  %v476_v62 = vld [vmem:[%s6193_s17 + $0x4b8] sm:$0xff]  ;;  %v5283_v58 = vunpack.i.h.bf16 %v6478_v25  ;;  %v5280_v61 = vunpack.i.l.bf16 %v6478_v25  ;;  %v5156_v48 = vunpack.i.h.bf16 %v6329_v49 }
 0x1ad   : > { %4510 = vmatmul.lmr.bf16.gmra.16.mxu0  ;;  %5313 = vxpose.xlu2.b32.cont [15/16] %v5312_v56, 128  ;;  %v5410_v15 = vpack.i.bf16 %v476_v62, %v508_v35  ;;  %v845_v56 = vld [vmem:[#allocation5 + $0x440] sm:$0xff]  ;;  %v5161_v49 = vunpack.i.h.bf16 %v6336_v7  ;;  %v838_v7 = vld [vmem:[#allocation5 + $0x408] sm:$0xff]  ;;  %v512_v62 = vld [vmem:[%s6193_s17 + $0x5d8] sm:$0xff] }
 0x1ae   : > { %4730 = vmatpush.lsf.msrb.mxu2 %v423_v43  ;;  %2331 = vmatpush.msra.mxu3 %v825_v52  ;;  %v822_v43 = vld [vmem:[#allocation5 + $0x388] sm:$0xff]  ;;  %v805_v52 = vld [vmem:[#allocation5 + $0x300] sm:$0xff] }
 0x1af   : > { %2205 = vmatpush.msra.mxu1 %v789_v33  ;;  %5407 = vxpose.xlu0.b32.cont [6/16] %v5406_v2, 128  ;;  %v510_v33 = vld [vmem:[%s6193_s17 + $0x5c8] sm:$0xff]  ;;  %v841_v2 = vld [vmem:[#allocation5 + $0x420] sm:$0xff] }
 0x1b0   : > { %4731 = vmatpush.lsf.msrb.mxu2 %v422_v10  ;;  %4847 = vmatpush.lsf.msrb.mxu3 %v439_v55  ;;  %v821_v10 = vld [vmem:[#allocation5 + $0x380] sm:$0xff] }
 0x1b1   : > { %2112 = vmatmul.f32.gmra.mxu3 %v5265_v13  ;;  %v900_v13 = vld [vmem:[#allocation5 + $0x5f8] sm:$0xff] }
 0x1b2   : > { %4732 = vmatpush.lsf.msrb.mxu2 %v421_v3  ;;  %4848 = vmatpush.lsf.msrb.mxu3 %v438_v63  ;;  %v843_v3 = vld [vmem:[#allocation5 + $0x430] sm:$0xff]  ;;  %v478_v63 = vld [vmem:[%s6193_s17 + $0x4c8] sm:$0xff] }
 0x1b3   : > { %2032 = vmatmul.f32.gmra.mxu2 %v5131_v21  ;;  %1979 = vmatmul.f32.gmra.mxu1 %v5263_v20  ;;  %v475_v20 = vld [vmem:[%s6193_s17 + $0x4b0] sm:$0xff]  ;;  %v852_v21 = vld [vmem:[#allocation5 + $0x478] sm:$0xff]  ;;  %v6532_v55 = vpop.f32.mrf.mxu0 }
 0x1b4   : > { %4849 = vmatpush.lsf.msrb.mxu3 %v437_v0  ;;  %2267 = vmatpush.msra.mxu2 %v808_v1  ;;  %v5408_v5 = vpack.i.bf16 %v475_v20, %v507_v29  ;;  %v842_v0 = vld [vmem:[#allocation5 + $0x428] sm:$0xff]  ;;  %v839_v20 = vld [vmem:[#allocation5 + $0x410] sm:$0xff] }
 0x1b5   : > { %4850 = vllmr.16.mxu3  ;;  %4511 = vmatmul.lmr.bf16.gmra.16.mxu0 }
 0x1b6   : > { %2332 = vmatpush.msra.mxu3 %v824_v17  ;;  %2268 = vmatpush.msra.mxu2 %v807_v53  ;;  %v479_v17 = vld [vmem:[%s6193_s17 + $0x4d0] sm:$0xff] }
 0x1b7   : > { %5315 = vxpose.xlu2.b32.end [16/16] %v5314_v38, 128  ;;  %2385 = vmatpush.msra.mxu0 %v852_v21  ;;  %v511_v38 = vld [vmem:[%s6193_s17 + $0x5d0] sm:$0xff] }
 0x1b8   : > { %v6495_v51 = vpop.f32.mrf.mxu1  ;;  %2333 = vmatpush.msra.mxu3 %v823_v22  ;;  %5409 = vxpose.xlu0.b32.cont [7/16] %v5408_v5, 128  ;;  %v5416_v29 = vpack.i.bf16 %v479_v17, %v511_v38  ;;  %v899_v22 = vld [vmem:[#allocation5 + $0x5f0] sm:$0xff]  ;;  %v5166_v5 = vunpack.i.h.bf16 %v6344_v31 }
 0x1b9   : > { %2386 = vmatpush.msra.mxu0 %v851_v9  ;;  %2115 = vmatmul.f32.gmra.mxu3 %v5270_v26  ;;  %v837_v26 = vld [vmem:[#allocation5 + $0x400] sm:$0xff] }
 0x1ba   : > { %2269 = vmatpush.msra.mxu2 %v806_v36  ;;  %2334 = vmatpush.msra.mxu3 %v822_v43 }
 0x1bb   : > { %2035 = vmatmul.f32.gmra.mxu2 %v5136_v45  ;;  %1982 = vmatmul.f32.gmra.mxu1 %v5268_v42  ;;  %v477_v45 = vld [vmem:[%s6193_s17 + $0x4c0] sm:$0xff]  ;;  %v6540_v1 = vpop.f32.mrf.mxu0 }
 0x1bc   : > { %2387 = vmatpush.msra.mxu0 %v850_v28  ;;  %2270 = vmatpush.msra.mxu2 %v805_v52  ;;  %v5412_v6 = vpack.i.bf16 %v477_v45, %v509_v54  ;;  %v480_v28 = vld [vmem:[%s6193_s17 + $0x4d8] sm:$0xff] }
 0x1bd   : > { %4512 = vmatmul.lmr.bf16.gmra.16.mxu0  ;;  %2335 = vmatpush.msra.mxu3 %v821_v10 }
 0x1be   : > { %2388 = vmatpush.msra.mxu0 %v849_v50  ;;  %v5418_v50 = vpack.i.bf16 %v480_v28, %v512_v62  ;;  %v879_v28 = vld [vmem:[#allocation5 + $0x550] sm:$0xff] }
 0x1bf   : > { %v483_v62 = vld [vmem:[%s6193_s17 + $0x4f0] sm:$0xff] }
 0x1c0   : > { %v6510_v12 = vpop.f32.mrf.mxu1  ;;  %2389 = vmatpush.msra.mxu0 %v848_v39  ;;  %5411 = vxpose.xlu0.b32.cont [8/16] %v5410_v15, 128  ;;  %v898_v39 = vld [vmem:[#allocation5 + $0x5e8] sm:$0xff] }
 0x1c1   : > { %2118 = vmatmul.f32.gmra.mxu3 %v5275_v44  ;;  %v866_v44 = vld [vmem:[#allocation5 + $0x4e8] sm:$0xff] }
 0x1c2   : > { %4733 = vllmr.16.mxu2  ;;  %2390 = vmatpush.msra.mxu0 %v847_v47  ;;  %v5171_v47 = vunpack.i.h.bf16 %v6353_v57  ;;  %v6579_v57 = vld [vmem:[#allocation7] ss:$0 sm:$0xff] }
 0x1c3   : > { %2038 = vmatmul.f32.gmra.mxu2 %v5141_v14  ;;  %1985 = vmatmul.f32.gmra.mxu1 %v5273_v32  ;;  %v5414_v32 = vpack.i.bf16 %v478_v63, %v510_v33  ;;  %v1883_v63 = vadd.f32 %v6579_v57, %v6390_v19  ;;  %v883_v33 = vld [vmem:[#allocation5 + $0x570] sm:$0xff]  ;;  %v881_v19 = vld [vmem:[#allocation5 + $0x560] sm:$0xff] }
 0x1c4   : > { %2391 = vmatpush.msra.mxu0 %v846_v18  ;;  %v513_v18 = vld [vmem:[%s6193_s17 + $0x5e0] sm:$0xff] }
 0x1c5   : > { %4513 = vmatmul.lmr.bf16.gmra.16.mxu0 }
 0x1c6   : > { %2392 = vmatpush.msra.mxu0 %v845_v56 }
 0x1c8   : > { %v6517_v24 = vpop.f32.mrf.mxu1  ;;  %2393 = vmatpush.msra.mxu0 %v844_v27  ;;  %5413 = vxpose.xlu0.b32.cont [9/16] %v5412_v6, 128  ;;  %v897_v6 = vld [vmem:[#allocation5 + $0x5e0] sm:$0xff] }
 0x1c9   : > { %2121 = vmatmul.f32.gmra.mxu3 %v5280_v61  ;;  %v884_v61 = vld [vmem:[#allocation5 + $0x578] sm:$0xff] }
 0x1ca   : > { %2394 = vmatpush.msra.mxu0 %v843_v3  ;;  %v865_v3 = vld [vmem:[#allocation5 + $0x4e0] sm:$0xff] }
 0x1cb   : > { %2041 = vmatmul.f32.gmra.mxu2 %v5146_v16  ;;  %1988 = vmatmul.f32.gmra.mxu1 %v5278_v23  ;;  %v867_v16 = vld [vmem:[#allocation5 + $0x4f0] sm:$0xff] }
 0x1cc   : > { %2395 = vmatpush.msra.mxu0 %v842_v0  ;;  %v482_v0 = vld [vmem:[%s6193_s17 + $0x4e8] sm:$0xff] }
 0x1cd   : > { %4514 = vmatmul.lmr.bf16.gmra.16.mxu0 }
 0x1ce   : > { %2396 = vmatpush.msra.mxu0 %v841_v2  ;;  %v514_v2 = vld [vmem:[%s6193_s17 + $0x5e8] sm:$0xff] }
 0x1cf   : > { %v5422_v17 = vpack.i.bf16 %v482_v0, %v514_v2 }
 0x1d0   : > { %v6526_v42 = vpop.f32.mrf.mxu1  ;;  %5415 = vxpose.xlu0.b32.cont [10/16] %v5414_v32, 128  ;;  %v6545_v14 = vpop.f32.mrf.mxu3  ;;  %2397 = vmatpush.msra.mxu0 %v840_v34 }
 0x1d2   : > { %2398 = vmatpush.msra.mxu0 %v839_v20 }
 0x1d3   : > { %2044 = vmatmul.f32.gmra.mxu2 %v5151_v46  ;;  %1991 = vmatmul.f32.gmra.mxu1 %v5283_v58  ;;  %v481_v46 = vld [vmem:[%s6193_s17 + $0x4e0] sm:$0xff] }
 0x1d4   : > { %2399 = vmatpush.msra.mxu0 %v838_v7  ;;  %v5420_v10 = vpack.i.bf16 %v481_v46, %v513_v18  ;;  %v896_v7 = vld [vmem:[#allocation5 + $0x5d8] sm:$0xff]  ;;  %v895_v46 = vld [vmem:[#allocation5 + $0x5d0] sm:$0xff] }
 0x1d5   : > { %4515 = vmatmul.lmr.bf16.gmra.16.mxu0 }
 0x1d6   : > { %4851 = vmatmul.lmr.bf16.vlgmr.msra.gmra.16.mxu3  ;;  %2400 = vmatpush.msra.mxu0 %v837_v26  ;;  %v1886_v26 = vadd.f32 %v6579_v57, %v6405_v40 }
 0x1d7   : > { %2580 = vmatpush.msra.mxu3 %v900_v13 }
 0x1d8   : > { %v6534_v59 = vpop.f32.mrf.mxu1  ;;  %v6551_v21 = vpop.trf.xlu2  ;;  %5417 = vxpose.xlu0.b32.cont [11/16] %v5416_v29, 128 }
 0x1d9   : > { %2581 = vmatpush.msra.mxu3 %v899_v22  ;;  %v5320_v23 = vunpack.i.h.bf16 %v6551_v21  ;;  %v6561_v36 = vpop.f32.mrf.mxu3  ;;  %v880_v22 = vld [vmem:[#allocation5 + $0x558] sm:$0xff] }
 0x1da   : > { %v6549_v53 = vpop.f32.mrf.mxu0 }
 0x1db   : > { %2047 = vmatmul.f32.gmra.mxu2 %v5156_v48  ;;  %4617 = vmatmul.lmr.bf16.vlgmr.msra.gmra.16.mxu1 }
 0x1dc   : > { %2450 = vmatpush.msra.mxu1 %v868_v60  ;;  %2582 = vmatpush.msra.mxu3 %v898_v39  ;;  %v882_v60 = vld [vmem:[#allocation5 + $0x568] sm:$0xff] }
 0x1dd   : > { %2401 = vmatmul.f32.vlgmr.msra.gmra.mxu0 %v5320_v23  ;;  %v864_v23 = vld [vmem:[#allocation5 + $0x4d8] sm:$0xff] }
 0x1de   : > { %2451 = vmatpush.msra.mxu1 %v867_v16  ;;  %v6559_v35 = vpop.f32.mrf.mxu2  ;;  %4852 = vmatmul.lmr.bf16.gmra.16.mxu3 }
 0x1df   : > { %2583 = vmatpush.msra.mxu3 %v897_v6  ;;  %v863_v6 = vld [vmem:[#allocation5 + $0x4d0] sm:$0xff] }
 0x1e0   : > { %v6542_v25 = vpop.f32.mrf.mxu1  ;;  %v6565_v43 = vpop.trf.xlu2  ;;  %5419 = vxpose.xlu0.b32.cont [12/16] %v5418_v50, 128  ;;  %2452 = vmatpush.msra.mxu1 %v866_v44  ;;  %v515_v50 = vld [vmem:[%s6193_s17 + $0x5f0] sm:$0xff] }
 0x1e1   : > { %v5325_v58 = vunpack.i.h.bf16 %v6565_v43  ;;  %v6575_v52 = vpop.f32.mrf.mxu3  ;;  %2584 = vmatpush.msra.mxu3 %v896_v7  ;;  %v1951_v39 = vadd.f32 %v6542_v25, %v1886_v26  ;;  %v5424_v40 = vpack.i.bf16 %v483_v62, %v515_v50  ;;  %v862_v7 = vld [vmem:[#allocation5 + $0x4c8] sm:$0xff] }
 0x1e2   : > { %v6563_v31 = vpop.f32.mrf.mxu0  ;;  %2453 = vmatpush.msra.mxu1 %v865_v3  ;;  %v878_v3 = vld [vmem:[#allocation5 + $0x548] sm:$0xff] }
 0x1e3   : > { %2050 = vmatmul.f32.gmra.mxu2 %v5161_v49  ;;  %4618 = vmatmul.lmr.bf16.gmra.16.mxu1  ;;  %v1948_v49 = vadd.f32 %v6534_v59, %v1883_v63  ;;  %v484_v63 = vld [vmem:[%s6193_s17 + $0x4f8] sm:$0xff] }
 0x1e4   : > { %2454 = vmatpush.msra.mxu1 %v864_v23  ;;  %2585 = vmatpush.msra.mxu3 %v895_v46 }
 0x1e5   : > { %2404 = vmatmul.f32.gmra.mxu0 %v5325_v58 }
 0x1e6   : > { %v6573_v45 = vpop.f32.mrf.mxu2  ;;  %4853 = vmatmul.lmr.bf16.gmra.16.mxu3  ;;  %2455 = vmatpush.msra.mxu1 %v863_v6 }
 0x1e8   : > { %v6553_v9 = vpop.f32.mrf.mxu1  ;;  %v6581_v56 = vpop.trf.xlu2  ;;  %5421 = vxpose.xlu0.b32.cont [13/16] %v5420_v10, 128  ;;  %2456 = vmatpush.msra.mxu1 %v862_v7  ;;  %v891_v7 = vld [vmem:[#allocation5 + $0x5b0] sm:$0xff] }
 0x1e9   : > { %v5330_v48 = vunpack.i.h.bf16 %v6581_v56  ;;  %v6590_v32 = vpop.f32.mrf.mxu3 }
 0x1ea   : > { %v6577_v54 = vpop.f32.mrf.mxu0 }
 0x1eb   : > { %2053 = vmatmul.f32.gmra.mxu2 %v5166_v5  ;;  %4619 = vmatmul.lmr.bf16.gmra.16.mxu1 }
 0x1ed   : > { %2407 = vmatmul.f32.gmra.mxu0 %v5330_v48 }
 0x1ee   : > { %4854 = vmatmul.lmr.bf16.gmra.16.mxu3 }
 0x1f0   : > { %v6567_v15 = vpop.f32.mrf.mxu1  ;;  %v6595_v20 = vpop.trf.xlu2  ;;  %5423 = vxpose.xlu0.b32.cont [14/16] %v5422_v17, 128 }
 0x1f1   : > { %v5335_v5 = vunpack.i.h.bf16 %v6595_v20 }
 0x1f2   : > { %v6593_v13 = vpop.f32.mrf.mxu0 }
 0x1f3   : > { %2056 = vmatmul.f32.gmra.mxu2 %v5171_v47  ;;  %4620 = vmatmul.lmr.bf16.gmra.16.mxu1 }
 0x1f5   : > { %2410 = vmatmul.f32.gmra.mxu0 %v5335_v5 }
 0x1f6   : > { %4855 = vmatmul.lmr.bf16.gmra.16.mxu3 }
 0x1f8   : > { %v6583_v27 = vpop.f32.mrf.mxu1  ;;  %v6613_v44 = vpop.trf.xlu2  ;;  %5425 = vxpose.xlu0.b32.cont [15/16] %v5424_v40, 128 }
 0x1f9   : > { %v5340_v25 = vunpack.i.h.bf16 %v6613_v44 }
 0x1fa   : > { %v6611_v58 = vpop.f32.mrf.mxu0 }
 0x1fb   : > { %4734 = vmatmul.lmr.bf16.vlgmr.msra.gmra.16.mxu2  ;;  %4621 = vmatmul.lmr.bf16.gmra.16.mxu1 }
 0x1fc   : > { %2515 = vmatpush.msra.mxu2 %v884_v61  ;;  %v1889_v61 = vadd.f32 %v6579_v57, %v6423_v4 }
 0x1fd   : > { %2413 = vmatmul.f32.gmra.mxu0 %v5340_v25 }
 0x1fe   : > { %v2012_v34 = vpop.f32.mrf.mxu2  ;;  %2516 = vmatpush.msra.mxu2 %v883_v33  ;;  %v516_v33 = vld [vmem:[%s6193_s17 + $0x5f8] sm:$0xff]  ;;  %4856 = vmatmul.lmr.bf16.gmra.16.mxu3 }
 0x1ff   : > { %v2013_v38 = vadd.f32 %v2012_v34, %v1948_v49 }
 0x200   : > { %v6597_v29 = vpop.f32.mrf.mxu1  ;;  %2517 = vmatpush.msra.mxu2 %v882_v60  ;;  %v5426_v60 = vpack.i.bf16 %v484_v63, %v516_v33  ;;  %v6631_v34 = vpop.trf.xlu2  ;;  %v860_v33 = vld [vmem:[#allocation5 + $0x4b8] sm:$0xff] }
 0x201   : > { %v2078_v59 = vadd.f32 %v6545_v14, %v2013_v38  ;;  %v6608_v14 = vpop.f32.mrf.mxu3 }
 0x202   : > { %2518 = vmatpush.msra.mxu2 %v881_v19  ;;  %v6629_v49 = vpop.f32.mrf.mxu0  ;;  %v5345_v19 = vunpack.i.h.bf16 %v6631_v34  ;;  %5427 = vxpose.xlu0.b32.end [16/16] %v5426_v60, 128  ;;  %v532_v60 = vld [vmem:[%s6193_s17 + $0x678] sm:$0xff] }
 0x203   : > { %v6604_v16 = vadd.f32 %v6549_v53, %v2078_v59  ;;  %4735 = vmatmul.lmr.bf16.gmra.16.mxu2  ;;  %4622 = vmatmul.lmr.bf16.gmra.16.mxu1 }
 0x204   : > { %2519 = vmatpush.msra.mxu2 %v880_v22  ;;  %v877_v22 = vld [vmem:[#allocation5 + $0x540] sm:$0xff]  ;;  %4516 = vmatpush.lsf.msrb.mxu0 %v532_v60 }
 0x205   : > { %2416 = vmatmul.f32.gmra.mxu0 %v5345_v19 }
 0x206   : > { %v2015_v47 = vpop.f32.mrf.mxu2  ;;  %2520 = vmatpush.msra.mxu2 %v879_v28  ;;  %4857 = vmatmul.lmr.bf16.gmra.16.mxu3 }
 0x207   : > { %v2016_v53 = vadd.f32 %v2015_v47, %v1951_v39  ;;  %v861_v47 = vld [vmem:[#allocation5 + $0x4c0] sm:$0xff] }
 0x208   : > { %v6615_v18 = vpop.f32.mrf.mxu1  ;;  %2521 = vmatpush.msra.mxu2 %v878_v3  ;;  %v6647_v62 = vpop.trf.xlu2  ;;  %2457 = vmatpush.msra.mxu1 %v861_v47  ;;  %v528_v47 = vld [vmem:[%s6193_s17 + $0x658] sm:$0xff] }
 0x209   : > { %v2081_v10 = vadd.f32 %v6561_v36, %v2016_v53  ;;  %v6626_v0 = vpop.f32.mrf.mxu3  ;;  %v1954_v36 = vadd.f32 %v6553_v9, %v1889_v61  ;;  %v1892_v9 = vadd.f32 %v6579_v57, %v6445_v37  ;;  %v893_v37 = vld [vmem:[#allocation5 + $0x5c0] sm:$0xff]  ;;  %v5350_v39 = vunpack.i.h.bf16 %v6647_v62  ;;  %v876_v53 = vld [vmem:[#allocation5 + $0x538] sm:$0xff] }
 0x20a   : > { %2522 = vmatpush.msra.mxu2 %v877_v22  ;;  %v6645_v26 = vpop.f32.mrf.mxu0  ;;  %2458 = vmatpush.msra.mxu1 %v860_v33  ;;  %v530_v22 = vld [vmem:[%s6193_s17 + $0x668] sm:$0xff] }
 0x20b   : > { %v6622_v48 = vadd.f32 %v6563_v31, %v2081_v10  ;;  %4736 = vmatmul.lmr.bf16.gmra.16.mxu2  ;;  %4623 = vmatmul.lmr.bf16.gmra.16.mxu1  ;;  %v894_v31 = vld [vmem:[#allocation5 + $0x5c8] sm:$0xff] }
 0x20c   : > { %2586 = vmatpush.msra.mxu3 %v894_v31  ;;  %2523 = vmatpush.msra.mxu2 %v876_v53 }
 0x20d   : > { %2419 = vmatmul.f32.gmra.mxu0 %v5350_v39  ;;  %v874_v39 = vld [vmem:[#allocation5 + $0x528] sm:$0xff] }
 0x20e   : > { %v2018_v2 = vpop.f32.mrf.mxu2  ;;  %2587 = vmatpush.msra.mxu3 %v893_v37  ;;  %v1901_v37 = vadd.f32 %v6579_v57, %v6508_v11  ;;  %v527_v11 = vld [vmem:[%s6193_s17 + $0x650] sm:$0xff] }
 0x20f   : > { %v2019_v4 = vadd.f32 %v2018_v2, %v1954_v36  ;;  %4858 = vmatmul.lmr.bf16.gmra.16.mxu3  ;;  %v875_v2 = vld [vmem:[#allocation5 + $0x530] sm:$0xff] }
 0x210   : > { %v6633_v17 = vpop.f32.mrf.mxu1  ;;  %v6663_v61 = vpop.trf.xlu2  ;;  %2524 = vmatpush.msra.mxu2 %v875_v2  ;;  %v1904_v2 = vadd.f32 %v6579_v57, %v6521_v30 }
 0x211   : > { %v2084_v38 = vadd.f32 %v6575_v52, %v2019_v4  ;;  %v6642_v5 = vpop.f32.mrf.mxu3  ;;  %v1957_v52 = vadd.f32 %v6567_v15, %v1892_v9  ;;  %v1895_v15 = vadd.f32 %v6579_v57, %v6467_v8  ;;  %v892_v8 = vld [vmem:[#allocation5 + $0x5b8] sm:$0xff]  ;;  %v5355_v63 = vunpack.i.h.bf16 %v6663_v61 }
 0x212   : > { %v6661_v25 = vpop.f32.mrf.mxu0  ;;  %2588 = vmatpush.msra.mxu3 %v892_v8  ;;  %2525 = vmatpush.msra.mxu2 %v874_v39 }
 0x213   : > { %v6640_v59 = vadd.f32 %v6577_v54, %v2084_v38  ;;  %4737 = vmatmul.lmr.bf16.gmra.16.mxu2  ;;  %4624 = vmatmul.lmr.bf16.gmra.16.mxu1  ;;  %v1960_v10 = vadd.f32 %v6583_v27, %v1895_v15  ;;  %v1898_v27 = vadd.f32 %v6579_v57, %v6489_v41  ;;  %v531_v41 = vld [vmem:[%s6193_s17 + $0x670] sm:$0xff] }
 0x214   : > { %2589 = vmatpush.msra.mxu3 %v891_v7  ;;  %4517 = vmatpush.lsf.msrb.mxu0 %v531_v41  ;;  %v856_v41 = vld [vmem:[#allocation5 + $0x498] sm:$0xff] }
 0x215   : > { %2422 = vmatmul.f32.gmra.mxu0 %v5355_v63  ;;  %v526_v63 = vld [vmem:[%s6193_s17 + $0x648] sm:$0xff]  ;;  %v524_v7 = vld [vmem:[%s6193_s17 + $0x638] sm:$0xff] }
 0x216   : > { %v2021_v23 = vpop.f32.mrf.mxu2  ;;  %4518 = vmatpush.lsf.msrb.mxu0 %v530_v22 }
 0x217   : > { %v2022_v28 = vadd.f32 %v2021_v23, %v1957_v52  ;;  %4859 = vmatmul.lmr.bf16.gmra.16.mxu3  ;;  %v859_v23 = vld [vmem:[#allocation5 + $0x4b0] sm:$0xff] }
 0x218   : > { %v6649_v50 = vpop.f32.mrf.mxu1  ;;  %v6681_v19 = vpop.trf.xlu2  ;;  %2459 = vmatpush.msra.mxu1 %v859_v23  ;;  %v889_v23 = vld [vmem:[#allocation5 + $0x5a0] sm:$0xff] }
 0x219   : > { %v2087_v54 = vadd.f32 %v6590_v32, %v2022_v28  ;;  %v6658_v46 = vpop.f32.mrf.mxu3  ;;  %v529_v28 = vld [vmem:[%s6193_s17 + $0x660] sm:$0xff] }
 0x21a   : > { %v6678_v38 = vpop.f32.mrf.mxu0  ;;  %4519 = vmatpush.lsf.msrb.mxu0 %v529_v28  ;;  %v523_v28 = vld [vmem:[%s6193_s17 + $0x630] sm:$0xff] }
 0x21b   : > { %v6656_v40 = vadd.f32 %v6593_v13, %v2087_v54  ;;  %4738 = vmatmul.lmr.bf16.gmra.16.mxu2  ;;  %4625 = vmatmul.lmr.bf16.gmra.16.mxu1 }
 0x21c   : > { %4520 = vmatpush.lsf.msrb.mxu0 %v528_v47  ;;  %v522_v47 = vld [vmem:[%s6193_s17 + $0x628] sm:$0xff] }
 0x21e   : > { %v2024_v32 = vpop.f32.mrf.mxu2  ;;  %4521 = vmatpush.lsf.msrb.mxu0 %v527_v11 }
 0x21f   : > { %v2025_v6 = vadd.f32 %v2024_v32, %v1960_v10  ;;  %4860 = vmatmul.lmr.bf16.gmra.16.mxu3 }
 0x220   : > { %v6665_v13 = vpop.f32.mrf.mxu1  ;;  %v6701_v32 = vpop.trf.xlu2  ;;  %4522 = vmatpush.lsf.msrb.mxu0 %v526_v63  ;;  %v613_v63 = vld [vmem:[%s6193_s17 + $0x900] sm:$0xff] }
 0x221   : > { %v2090_v3 = vadd.f32 %v6608_v14, %v2025_v6  ;;  %v6675_v4 = vpop.f32.mrf.mxu3  ;;  %v1963_v14 = vadd.f32 %v6597_v29, %v1898_v27  ;;  %v5360_v29 = vunpack.i.h.bf16 %v6681_v19  ;;  %v890_v6 = vld [vmem:[#allocation5 + $0x5a8] sm:$0xff]  ;;  %v5365_v33 = vunpack.i.h.bf16 %v6701_v32  ;;  %v857_v27 = vld [vmem:[#allocation5 + $0x4a0] sm:$0xff] }
 0x222   : > { %v6698_v10 = vpop.f32.mrf.mxu0  ;;  %2590 = vmatpush.msra.mxu3 %v890_v6  ;;  %v872_v6 = vld [vmem:[#allocation5 + $0x518] sm:$0xff] }
 0x223   : > { %v6672_v36 = vadd.f32 %v6611_v58, %v2090_v3  ;;  %4739 = vmatmul.lmr.bf16.gmra.16.mxu2  ;;  %4626 = vmatmul.lmr.bf16.gmra.16.mxu1  ;;  %v858_v3 = vld [vmem:[#allocation5 + $0x4a8] sm:$0xff] }
 0x224   : > { %2425 = vmatmul.f32.gmra.mxu0 %v5360_v29  ;;  %2460 = vmatpush.msra.mxu1 %v858_v3  ;;  %v581_v3 = vld [vmem:[%s6193_s17 + $0x800] sm:$0xff] }
 0x225   : > { %2591 = vmatpush.msra.mxu3 %v889_v23  ;;  %v517_v23 = vld [vmem:[%s6193_s17 + $0x600] sm:$0xff] }
 0x226   : > { %v2027_v31 = vpop.f32.mrf.mxu2  ;;  %2461 = vmatpush.msra.mxu1 %v857_v27  ;;  %v5508_v27 = vpack.i.bf16 %v581_v3, %v613_v63  ;;  %v887_v63 = vld [vmem:[#allocation5 + $0x590] sm:$0xff] }
 0x227   : > { %v2028_v58 = vadd.f32 %v2027_v31, %v1963_v14  ;;  %v525_v14 = vld [vmem:[%s6193_s17 + $0x640] sm:$0xff]  ;;  %4861 = vmatmul.lmr.bf16.gmra.16.mxu3 }
 0x228   : > { %v6683_v9 = vpop.f32.mrf.mxu1  ;;  %v873_v31 = vld [vmem:[#allocation5 + $0x520] sm:$0xff]  ;;  %4523 = vmatpush.lsf.msrb.mxu0 %v525_v14  ;;  %2462 = vmatpush.msra.mxu1 %v856_v41  ;;  %v888_v41 = vld [vmem:[#allocation5 + $0x598] sm:$0xff] }
 0x229   : > { %v2093_v52 = vadd.f32 %v6626_v0, %v2028_v58  ;;  %v6695_v15 = vpop.f32.mrf.mxu3  ;;  %v1966_v0 = vadd.f32 %v6615_v18, %v1901_v37  ;;  %v1969_v58 = vadd.f32 %v6633_v17, %v1904_v2  ;;  %2526 = vmatpush.msra.mxu2 %v873_v31  ;;  %5509 = vxpose.xlu1.b32.start [1/16] %v5508_v27, 128 }
 0x22a   : > { %v6720_v29 = vpop.f32.mrf.mxu0  ;;  %4524 = vmatpush.lsf.msrb.mxu0 %v524_v7  ;;  %2592 = vmatpush.msra.mxu3 %v888_v41  ;;  %v1913_v41 = vadd.f32 %v6579_v57, %v6495_v51 }
 0x22b   : > { %v6692_v54 = vadd.f32 %v6629_v49, %v2093_v52  ;;  %4740 = vmatmul.lmr.bf16.gmra.16.mxu2  ;;  %4627 = vmatmul.lmr.bf16.gmra.16.mxu1  ;;  %v6718_v52 = vpop.trf.xlu2 }
 0x22c   : > { %2428 = vmatmul.f32.gmra.mxu0 %v5365_v33  ;;  %v5370_v39 = vunpack.i.h.bf16 %v6718_v52  ;;  %2527 = vmatpush.msra.mxu2 %v872_v6 }
 0x22d   : > { %4525 = vmatpush.lsf.msrb.mxu0 %v523_v28  ;;  %v1910_v28 = vadd.f32 %v6579_v57, %v6540_v1  ;;  %2593 = vmatpush.msra.mxu3 %v887_v63 }
 0x22e   : > { %v2030_v53 = vpop.f32.mrf.mxu2  ;;  %v6740_v2 = vpop.trf.xlu0 }
 0x22f   : > { %v2031_v49 = vadd.f32 %v2030_v53, %v1966_v0  ;;  %v854_v0 = vld [vmem:[#allocation5 + $0x488] sm:$0xff]  ;;  %v1907_v53 = vadd.f32 %v6579_v57, %v6532_v55  ;;  %4862 = vmatmul.lmr.bf16.gmra.16.mxu3  ;;  %4526 = vmatpush.lsf.msrb.mxu0 %v522_v47  ;;  %v520_v55 = vld [vmem:[%s6193_s17 + $0x618] sm:$0xff] }
 0x230   : > { %v6703_v8 = vpop.f32.mrf.mxu1  ;;  %v582_v47 = vld [vmem:[%s6193_s17 + $0x808] sm:$0xff] }
 0x231   : > { %v2096_v18 = vadd.f32 %v6642_v5, %v2031_v49  ;;  %v6714_v5 = vpop.f32.mrf.mxu3  ;;  %v521_v49 = vld [vmem:[%s6193_s17 + $0x620] sm:$0xff] }
 0x232   : > { %4527 = vmatpush.lsf.msrb.mxu0 %v521_v49  ;;  %v916_v49 = vld [vmem:[#allocation5 + $0x678] sm:$0xff] }
 0x233   : > { %v6711_v60 = vadd.f32 %v6645_v26, %v2096_v18  ;;  %4741 = vmatmul.lmr.bf16.gmra.16.mxu2  ;;  %4628 = vmatmul.lmr.bf16.gmra.16.mxu1  ;;  %v855_v26 = vld [vmem:[#allocation5 + $0x490] sm:$0xff]  ;;  %v1972_v18 = vadd.f32 %v6649_v50, %v1907_v53  ;;  %v6742_v31 = vpop.trf.xlu2  ;;  %v1975_v53 = vadd.f32 %v6665_v13, %v1910_v28 }
 0x234   : > { %2463 = vmatpush.msra.mxu1 %v855_v26  ;;  %2431 = vmatmul.f32.gmra.mxu0 %v5370_v39  ;;  %v519_v50 = vld [vmem:[%s6193_s17 + $0x610] sm:$0xff]  ;;  %v5375_v26 = vunpack.i.h.bf16 %v6742_v31 }
 0x235   : > { %4528 = vmatpush.lsf.msrb.mxu0 %v520_v55  ;;  %v871_v39 = vld [vmem:[#allocation5 + $0x510] sm:$0xff] }
 0x236   : > { %v2033_v30 = vpop.f32.mrf.mxu2  ;;  %2464 = vmatpush.msra.mxu1 %v854_v0  ;;  %v614_v0 = vld [vmem:[%s6193_s17 + $0x908] sm:$0xff]  ;;  %2528 = vmatpush.msra.mxu2 %v871_v39  ;;  %v6761_v3 = vpop.trf.xlu0  ;;  %v912_v39 = vld [vmem:[#allocation5 + $0x658] sm:$0xff] }
 0x237   : > { %v2034_v22 = vadd.f32 %v2033_v30, %v1969_v58  ;;  %v6748_v30 = vpop.f32.mrf.mxu0  ;;  %4529 = vmatpush.lsf.msrb.mxu0 %v519_v50  ;;  %4863 = vmatmul.lmr.bf16.gmra.16.mxu3 }
 0x238   : > { %v6723_v37 = vpop.f32.mrf.mxu1 }
 0x239   : > { %v2099_v17 = vadd.f32 %v6658_v46, %v2034_v22  ;;  %v853_v46 = vld [vmem:[#allocation5 + $0x480] sm:$0xff]  ;;  %v6737_v33 = vpop.f32.mrf.mxu3  ;;  %v518_v22 = vld [vmem:[%s6193_s17 + $0x608] sm:$0xff] }
 0x23a   : > { %2465 = vmatpush.msra.mxu1 %v853_v46  ;;  %4530 = vmatpush.lsf.msrb.mxu0 %v518_v22  ;;  %v583_v22 = vld [vmem:[%s6193_s17 + $0x810] sm:$0xff] }
 0x23b   : > { %v6731_v11 = vadd.f32 %v6661_v25, %v2099_v17  ;;  %4742 = vmatmul.lmr.bf16.gmra.16.mxu2  ;;  %4629 = vmatmul.lmr.bf16.gmra.16.mxu1  ;;  %v6765_v46 = vpop.trf.xlu2 }
 0x23c   : > { %2434 = vmatmul.f32.gmra.mxu0 %v5375_v26  ;;  %v913_v26 = vld [vmem:[#allocation5 + $0x660] sm:$0xff] }
 0x23d   : > { %4531 = vmatpush.lsf.msrb.mxu0 %v517_v23  ;;  %v1978_v23 = vadd.f32 %v6683_v9, %v1913_v41  ;;  %v909_v41 = vld [vmem:[#allocation5 + $0x640] sm:$0xff] }
 0x23e   : > { %v2036_v25 = vpop.f32.mrf.mxu2 }
 0x23f   : > { %v2037_v14 = vadd.f32 %v2036_v25, %v1972_v18  ;;  %v915_v18 = vld [vmem:[#allocation5 + $0x670] sm:$0xff]  ;;  %2645 = vmatpush.msra.mxu0 %v916_v49  ;;  %v6770_v27 = vpop.f32.mrf.mxu0  ;;  %v5380_v25 = vunpack.i.h.bf16 %v6765_v46  ;;  %4864 = vmatmul.lmr.bf16.gmra.16.mxu3 }
 0x240   : > { %v6745_v58 = vpop.f32.mrf.mxu1  ;;  %v911_v49 = vld [vmem:[#allocation5 + $0x650] sm:$0xff] }
 0x241   : > { %v2102_v7 = vadd.f32 %v6675_v4, %v2037_v14  ;;  %v5510_v4 = vpack.i.bf16 %v582_v47, %v614_v0  ;;  %v914_v14 = vld [vmem:[#allocation5 + $0x668] sm:$0xff]  ;;  %2646 = vmatpush.msra.mxu0 %v915_v18  ;;  %v6781_v0 = vpop.trf.xlu0 }
 0x242   : > { %v910_v18 = vld [vmem:[#allocation5 + $0x648] sm:$0xff] }
 0x243   : > { %v6756_v17 = vadd.f32 %v6678_v38, %v2102_v7  ;;  %4743 = vmatmul.lmr.bf16.gmra.16.mxu2  ;;  %4630 = vmatmul.lmr.bf16.gmra.16.mxu1  ;;  %v6763_v38 = vpop.f32.mrf.mxu3  ;;  %v870_v7 = vld [vmem:[#allocation5 + $0x508] sm:$0xff] }
 0x244   : > { %4532 = vllmr.16.mxu0  ;;  %5511 = vxpose.xlu1.b32.cont [2/16] %v5510_v4, 128  ;;  %v6785_v4 = vpop.trf.xlu2 }
 0x245   : > { %2647 = vmatpush.msra.mxu0 %v914_v14  ;;  %2529 = vmatpush.msra.mxu2 %v870_v7  ;;  %v5385_v63 = vunpack.i.h.bf16 %v6785_v4  ;;  %v869_v14 = vld [vmem:[#allocation5 + $0x500] sm:$0xff]  ;;  %v584_v7 = vld [vmem:[%s6193_s17 + $0x818] sm:$0xff] }
 0x246   : > { %v2039_v6 = vpop.f32.mrf.mxu2  ;;  %2437 = vmatmul.f32.gmra.mxu0 %v5380_v25 }
 0x247   : > { %v2040_v1 = vadd.f32 %v2039_v6, %v1975_v53  ;;  %2648 = vmatpush.msra.mxu0 %v913_v26  ;;  %v886_v53 = vld [vmem:[#allocation5 + $0x588] sm:$0xff]  ;;  %4865 = vmatmul.lmr.bf16.gmra.16.mxu3 }
 0x248   : > { %v6767_v55 = vpop.f32.mrf.mxu1  ;;  %2594 = vmatpush.msra.mxu3 %v886_v53  ;;  %2530 = vmatpush.msra.mxu2 %v869_v14  ;;  %v907_v53 = vld [vmem:[#allocation5 + $0x630] sm:$0xff] }
 0x249   : > { %v2105_v13 = vadd.f32 %v6695_v15, %v2040_v1  ;;  %v615_v15 = vld [vmem:[%s6193_s17 + $0x910] sm:$0xff]  ;;  %2649 = vmatpush.msra.mxu0 %v912_v39  ;;  %v6790_v1 = vpop.f32.mrf.mxu0 }
 0x24a   : > { %v5512_v28 = vpack.i.bf16 %v583_v22, %v615_v15  ;;  %v908_v15 = vld [vmem:[#allocation5 + $0x638] sm:$0xff] }
 0x24b   : > { %v6776_v50 = vadd.f32 %v6698_v10, %v2105_v13  ;;  %4744 = vmatmul.lmr.bf16.gmra.16.mxu2  ;;  %4631 = vmatmul.lmr.bf16.gmra.16.mxu1  ;;  %v6783_v10 = vpop.f32.mrf.mxu3  ;;  %v1916_v13 = vadd.f32 %v6579_v57, %v6510_v12 }
 0x24c   : > { %5513 = vxpose.xlu1.b32.cont [3/16] %v5512_v28, 128  ;;  %2650 = vmatpush.msra.mxu0 %v911_v49  ;;  %v6801_v28 = vpop.trf.xlu0 }
 0x24d   : > { %v1981_v26 = vadd.f32 %v6703_v8, %v1916_v13  ;;  %v1919_v13 = vadd.f32 %v6579_v57, %v6517_v24 }
 0x24e   : > { %v2042_v47 = vpop.f32.mrf.mxu2  ;;  %2651 = vmatpush.msra.mxu0 %v910_v18  ;;  %v906_v18 = vld [vmem:[#allocation5 + $0x628] sm:$0xff] }
 0x24f   : > { %v2043_v51 = vadd.f32 %v2042_v47, %v1978_v23  ;;  %2440 = vmatmul.f32.gmra.mxu0 %v5385_v63  ;;  %v6806_v47 = vpop.trf.xlu2  ;;  %4866 = vmatmul.lmr.bf16.gmra.16.mxu3 }
 0x250   : > { %v6787_v6 = vpop.f32.mrf.mxu1  ;;  %2652 = vmatpush.msra.mxu0 %v909_v41  ;;  %v5390_v63 = vunpack.i.h.bf16 %v6806_v47  ;;  %v905_v41 = vld [vmem:[#allocation5 + $0x620] sm:$0xff] }
 0x251   : > { %v2108_v9 = vadd.f32 %v6714_v5, %v2043_v51  ;;  %v616_v5 = vld [vmem:[%s6193_s17 + $0x918] sm:$0xff]  ;;  %v885_v51 = vld [vmem:[#allocation5 + $0x580] sm:$0xff] }
 0x252   : > { %v5514_v22 = vpack.i.bf16 %v584_v7, %v616_v5  ;;  %2595 = vmatpush.msra.mxu3 %v885_v51  ;;  %2653 = vmatpush.msra.mxu0 %v908_v15  ;;  %v585_v7 = vld [vmem:[%s6193_s17 + $0x820] sm:$0xff]  ;;  %v903_v51 = vld [vmem:[#allocation5 + $0x610] sm:$0xff] }
 0x253   : > { %v6796_v25 = vadd.f32 %v6720_v29, %v2108_v9  ;;  %4745 = vmatmul.lmr.bf16.gmra.16.mxu2  ;;  %4632 = vmatmul.lmr.bf16.gmra.16.mxu1  ;;  %v5432_v29 = vunpack.i.h.bf16 %v6740_v2  ;;  %v6804_v39 = vpop.f32.mrf.mxu3  ;;  %v6811_v9 = vpop.f32.mrf.mxu0  ;;  %v617_v5 = vld [vmem:[%s6193_s17 + $0x920] sm:$0xff] }
 0x254   : > { %5515 = vxpose.xlu1.b32.cont [4/16] %v5514_v22, 128  ;;  %2654 = vmatpush.msra.mxu0 %v907_v53  ;;  %v904_v22 = vld [vmem:[#allocation5 + $0x618] sm:$0xff]  ;;  %v5429_v53 = vunpack.i.l.bf16 %v6740_v2 }
 0x256   : > { %v2045_v23 = vpop.f32.mrf.mxu2  ;;  %2655 = vmatpush.msra.mxu0 %v906_v18 }
 0x257   : > { %v2046_v12 = vadd.f32 %v2045_v23, %v1981_v26  ;;  %2443 = vmatmul.f32.gmra.mxu0 %v5390_v63  ;;  %v5516_v26 = vpack.i.bf16 %v585_v7, %v617_v5  ;;  %v6822_v23 = vpop.trf.xlu0  ;;  %v964_v7 = vld [vmem:[#allocation5 + $0x7f8] sm:$0xff]  ;;  %v1922_v5 = vadd.f32 %v6579_v57, %v6526_v42  ;;  %2596 = vmatmul.f32.vlgmr.msra.gmra.mxu3 %v5429_v53  ;;  %v963_v53 = vld [vmem:[#allocation5 + $0x7f0] sm:$0xff] }
 0x258   : > { %v6808_v8 = vpop.f32.mrf.mxu1  ;;  %2656 = vmatpush.msra.mxu0 %v905_v41  ;;  %v902_v41 = vld [vmem:[#allocation5 + $0x608] sm:$0xff]  ;;  %2840 = vmatpush.msra.mxu3 %v964_v7  ;;  %v1925_v7 = vadd.f32 %v6579_v57, %v6559_v35 }
 0x259   : > { %v2111_v49 = vadd.f32 %v6737_v33, %v2046_v12  ;;  %v1984_v33 = vadd.f32 %v6723_v37, %v1919_v13  ;;  %v932_v13 = vld [vmem:[#allocation5 + $0x6f8] sm:$0xff] }
 0x25a   : > { %2657 = vmatpush.msra.mxu0 %v904_v22  ;;  %v1987_v22 = vadd.f32 %v6745_v58, %v1922_v5  ;;  %v5434_v58 = vunpack.i.l.bf16 %v6761_v3  ;;  %2841 = vmatpush.msra.mxu3 %v963_v53  ;;  %v930_v53 = vld [vmem:[#allocation5 + $0x6e8] sm:$0xff] }
 0x25b   : > { %v6817_v14 = vadd.f32 %v6748_v30, %v2111_v49  ;;  %4746 = vmatmul.lmr.bf16.gmra.16.mxu2  ;;  %2466 = vmatmul.f32.vlgmr.msra.gmra.mxu1 %v5432_v29  ;;  %v5437_v30 = vunpack.i.h.bf16 %v6761_v3  ;;  %v6825_v12 = vpop.f32.mrf.mxu3  ;;  %v6827_v29 = vpop.trf.xlu2  ;;  %v1990_v3 = vadd.f32 %v6767_v55, %v1925_v7  ;;  %v588_v7 = vld [vmem:[%s6193_s17 + $0x838] sm:$0xff] }
 0x25c   : > { %5517 = vxpose.xlu1.b32.cont [5/16] %v5516_v26, 128  ;;  %v6833_v63 = vpop.f32.mrf.mxu0  ;;  %v5395_v18 = vunpack.i.h.bf16 %v6827_v29  ;;  %2658 = vmatpush.msra.mxu0 %v903_v51  ;;  %v618_v26 = vld [vmem:[%s6193_s17 + $0x928] sm:$0xff] }
 0x25d   : > { %2710 = vmatpush.msra.mxu1 %v932_v13  ;;  %v931_v13 = vld [vmem:[#allocation5 + $0x6f0] sm:$0xff] }
 0x25e   : > { %v2048_v15 = vpop.f32.mrf.mxu2  ;;  %2659 = vmatpush.msra.mxu0 %v902_v41 }
 0x25f   : > { %v2049_v24 = vadd.f32 %v2048_v15, %v1984_v33  ;;  %v901_v33 = vld [vmem:[#allocation5 + $0x600] sm:$0xff]  ;;  %2446 = vmatmul.f32.gmra.mxu0 %v5395_v18  ;;  %v6844_v51 = vpop.trf.xlu0  ;;  %2711 = vmatpush.msra.mxu1 %v931_v13 }
 0x260   : > { %v6830_v37 = vpop.f32.mrf.mxu1  ;;  %2660 = vmatpush.msra.mxu0 %v901_v33  ;;  %v587_v33 = vld [vmem:[%s6193_s17 + $0x830] sm:$0xff]  ;;  %2599 = vmatmul.f32.gmra.mxu3 %v5434_v58 }
 0x261   : > { %v2114_v49 = vadd.f32 %v6763_v38, %v2049_v24  ;;  %v586_v38 = vld [vmem:[%s6193_s17 + $0x828] sm:$0xff]  ;;  %2712 = vmatpush.msra.mxu1 %v930_v53  ;;  %v947_v53 = vld [vmem:[#allocation5 + $0x770] sm:$0xff] }
 0x262   : > { %v5518_v15 = vpack.i.bf16 %v586_v38, %v618_v26  ;;  %v619_v38 = vld [vmem:[%s6193_s17 + $0x930] sm:$0xff] }
 0x263   : > { %v6839_v2 = vadd.f32 %v6770_v27, %v2114_v49  ;;  %4747 = vmatmul.lmr.bf16.gmra.16.mxu2  ;;  %2469 = vmatmul.f32.gmra.mxu1 %v5437_v30  ;;  %v5442_v27 = vunpack.i.h.bf16 %v6781_v0  ;;  %v6847_v30 = vpop.f32.mrf.mxu3  ;;  %v5520_v26 = vpack.i.bf16 %v587_v33, %v619_v38  ;;  %v620_v33 = vld [vmem:[%s6193_s17 + $0x938] sm:$0xff] }
 0x264   : > { %5519 = vxpose.xlu1.b32.cont [6/16] %v5518_v15, 128  ;;  %v6853_v41 = vpop.f32.mrf.mxu0  ;;  %v5522_v38 = vpack.i.bf16 %v588_v7, %v620_v33  ;;  %v547_v7 = vld [vmem:[%s6193_s17 + $0x6f0] sm:$0xff]  ;;  %v621_v33 = vld [vmem:[%s6193_s17 + $0x940] sm:$0xff] }
 0x266   : > { %v2051_v24 = vpop.f32.mrf.mxu2 }
 0x267   : > { %v2052_v42 = vadd.f32 %v2051_v24, %v1987_v22  ;;  %4533 = vmatmul.lmr.bf16.vlgmr.msra.gmra.16.mxu0  ;;  %v6863_v22 = vpop.trf.xlu0  ;;  %v5447_v24 = vunpack.i.h.bf16 %v6801_v28 }
 0x268   : > { %v6849_v49 = vpop.f32.mrf.mxu1 }
 0x269   : > { %v2117_v18 = vadd.f32 %v6783_v10, %v2052_v42 }
 0x26b   : > { %v6858_v5 = vadd.f32 %v6790_v1, %v2117_v18  ;;  %4748 = vmatmul.lmr.bf16.gmra.16.mxu2  ;;  %2472 = vmatmul.f32.gmra.mxu1 %v5442_v27  ;;  %v6866_v35 = vpop.f32.mrf.mxu3  ;;  %v962_v1 = vld [vmem:[#allocation5 + $0x7e8] sm:$0xff]  ;;  %v5439_v27 = vunpack.i.l.bf16 %v6781_v0  ;;  %v1928_v18 = vadd.f32 %v6579_v57, %v6573_v45  ;;  %v5452_v45 = vunpack.i.h.bf16 %v6822_v23 }
 0x26c   : > { %5521 = vxpose.xlu1.b32.cont [7/16] %v5520_v26, 128  ;;  %2842 = vmatpush.msra.mxu3 %v962_v1  ;;  %v6872_v58 = vpop.f32.mrf.mxu0  ;;  %v929_v1 = vld [vmem:[#allocation5 + $0x6e0] sm:$0xff] }
 0x26d   : > { %2602 = vmatmul.f32.gmra.mxu3 %v5439_v27  ;;  %v1993_v0 = vadd.f32 %v6787_v6, %v1928_v18  ;;  %v5444_v6 = vunpack.i.l.bf16 %v6801_v28  ;;  %2713 = vmatpush.msra.mxu1 %v929_v1  ;;  %v548_v18 = vld [vmem:[%s6193_s17 + $0x6f8] sm:$0xff]  ;;  %v589_v28 = vld [vmem:[%s6193_s17 + $0x840] sm:$0xff] }
 0x26e   : > { %v2054_v10 = vpop.f32.mrf.mxu2  ;;  %v944_v1 = vld [vmem:[#allocation5 + $0x758] sm:$0xff] }
 0x26f   : > { %v2055_v15 = vadd.f32 %v2054_v10, %v1990_v3  ;;  %4534 = vmatmul.lmr.bf16.gmra.16.mxu0  ;;  %v6883_v3 = vpop.trf.xlu0  ;;  %4633 = vmatpush.lsf.msrb.mxu1 %v548_v18 }
 0x270   : > { %v6868_v42 = vpop.f32.mrf.mxu1 }
 0x271   : > { %v2120_v55 = vadd.f32 %v6804_v39, %v2055_v15  ;;  %v5317_v39 = vunpack.i.l.bf16 %v6551_v21  ;;  %4634 = vmatpush.lsf.msrb.mxu1 %v547_v7  ;;  %v545_v7 = vld [vmem:[%s6193_s17 + $0x6e0] sm:$0xff] }
 0x273   : > { %v6877_v13 = vadd.f32 %v6811_v9, %v2120_v55  ;;  %4749 = vmatmul.lmr.bf16.gmra.16.mxu2  ;;  %2475 = vmatmul.f32.gmra.mxu1 %v5447_v24  ;;  %v6886_v57 = vpop.f32.mrf.mxu3  ;;  %v961_v9 = vld [vmem:[#allocation5 + $0x7e0] sm:$0xff]  ;;  %v948_v24 = vld [vmem:[#allocation5 + $0x778] sm:$0xff] }
 0x274   : > { %5523 = vxpose.xlu1.b32.cont [8/16] %v5522_v38, 128  ;;  %2843 = vmatpush.msra.mxu3 %v961_v9  ;;  %v6892_v27 = vpop.f32.mrf.mxu0  ;;  %v946_v38 = vld [vmem:[#allocation5 + $0x768] sm:$0xff]  ;;  %v945_v9 = vld [vmem:[#allocation5 + $0x760] sm:$0xff] }
 0x275   : > { %2605 = vmatmul.f32.gmra.mxu3 %v5444_v6 }
 0x276   : > { %v2057_v26 = vpop.f32.mrf.mxu2 }
 0x277   : > { %v2058_v10 = vadd.f32 %v2057_v26, %v1993_v0  ;;  %4535 = vmatmul.lmr.bf16.gmra.16.mxu0  ;;  %v5524_v0 = vpack.i.bf16 %v589_v28, %v621_v33  ;;  %v544_v33 = vld [vmem:[%s6193_s17 + $0x6d8] sm:$0xff] }
 0x278   : > { %v6888_v15 = vpop.f32.mrf.mxu1 }
 0x279   : > { %v2123_v21 = vadd.f32 %v6825_v12, %v2058_v10  ;;  %v2208_v12 = vadd.f32 %v6808_v8, %v6604_v16  ;;  %v960_v16 = vld [vmem:[#allocation5 + $0x7d8] sm:$0xff]  ;;  %v546_v8 = vld [vmem:[%s6193_s17 + $0x6e8] sm:$0xff] }
 0x27a   : > { %2844 = vmatpush.msra.mxu3 %v960_v16  ;;  %4635 = vmatpush.lsf.msrb.mxu1 %v546_v8  ;;  %v5454_v8 = vunpack.i.l.bf16 %v6844_v51 }
 0x27b   : > { %v6895_v55 = vadd.f32 %v6833_v63, %v2123_v21  ;;  %2531 = vmatmul.f32.vlgmr.msra.gmra.mxu2 %v5317_v39  ;;  %2478 = vmatmul.f32.gmra.mxu1 %v5452_v45  ;;  %v5322_v63 = vunpack.i.l.bf16 %v6565_v43  ;;  %v6904_v39 = vpop.trf.xlu0  ;;  %v5457_v45 = vunpack.i.h.bf16 %v6844_v51  ;;  %v6907_v6 = vpop.f32.mrf.mxu3  ;;  %v591_v51 = vld [vmem:[%s6193_s17 + $0x850] sm:$0xff] }
 0x27c   : > { %2775 = vmatpush.msra.mxu2 %v948_v24  ;;  %5525 = vxpose.xlu1.b32.cont [9/16] %v5524_v0, 128  ;;  %v5449_v24 = vunpack.i.l.bf16 %v6822_v23  ;;  %v6914_v18 = vpop.f32.mrf.mxu0  ;;  %v943_v23 = vld [vmem:[#allocation5 + $0x750] sm:$0xff] }
 0x27e   : > { %v2272_v26 = vpop.f32.mrf.mxu2  ;;  %2776 = vmatpush.msra.mxu2 %v947_v53  ;;  %v928_v53 = vld [vmem:[#allocation5 + $0x6d8] sm:$0xff]  ;;  %2608 = vmatmul.f32.gmra.mxu3 %v5449_v24  ;;  %v927_v24 = vld [vmem:[#allocation5 + $0x6d0] sm:$0xff] }
 0x27f   : > { %v2273_v10 = vadd.f32 %v2272_v26, %v2208_v12  ;;  %2714 = vmatpush.msra.mxu1 %v928_v53  ;;  %v622_v12 = vld [vmem:[%s6193_s17 + $0x948] sm:$0xff]  ;;  %4536 = vmatmul.lmr.bf16.gmra.16.mxu0 }
 0x280   : > { %v6910_v21 = vpop.f32.mrf.mxu1  ;;  %2777 = vmatpush.msra.mxu2 %v946_v38  ;;  %v2211_v38 = vadd.f32 %v6830_v37, %v6622_v48  ;;  %v959_v48 = vld [vmem:[#allocation5 + $0x7d0] sm:$0xff] }
 0x281   : > { %v2338_v43 = vadd.f32 %v6847_v30, %v2273_v10  ;;  %v590_v30 = vld [vmem:[%s6193_s17 + $0x848] sm:$0xff]  ;;  %4636 = vmatpush.lsf.msrb.mxu1 %v545_v7  ;;  %v5327_v10 = vunpack.i.l.bf16 %v6581_v56  ;;  %2845 = vmatpush.msra.mxu3 %v959_v48  ;;  %v541_v7 = vld [vmem:[%s6193_s17 + $0x6c0] sm:$0xff] }
 0x282   : > { %2778 = vmatpush.msra.mxu2 %v945_v9  ;;  %v5526_v0 = vpack.i.bf16 %v590_v30, %v622_v12  ;;  %v5462_v9 = vunpack.i.h.bf16 %v6863_v22  ;;  %v540_v30 = vld [vmem:[%s6193_s17 + $0x6b8] sm:$0xff]  ;;  %v926_v48 = vld [vmem:[#allocation5 + $0x6c8] sm:$0xff] }
 0x283   : > { %v6918_v28 = vadd.f32 %v6853_v41, %v2338_v43  ;;  %2534 = vmatmul.f32.gmra.mxu2 %v5322_v63  ;;  %2481 = vmatmul.f32.gmra.mxu1 %v5457_v45  ;;  %v6926_v41 = vpop.trf.xlu0  ;;  %v543_v63 = vld [vmem:[%s6193_s17 + $0x6d0] sm:$0xff]  ;;  %v6930_v16 = vpop.f32.mrf.mxu3  ;;  %v542_v43 = vld [vmem:[%s6193_s17 + $0x6c8] sm:$0xff] }
 0x284   : > { %2779 = vmatpush.msra.mxu2 %v944_v1  ;;  %4637 = vmatpush.lsf.msrb.mxu1 %v544_v33  ;;  %v6937_v1 = vpop.f32.mrf.mxu0  ;;  %v623_v33 = vld [vmem:[%s6193_s17 + $0x950] sm:$0xff] }
 0x285   : > { %5527 = vxpose.xlu1.b32.cont [10/16] %v5526_v0, 128  ;;  %v5528_v12 = vpack.i.bf16 %v591_v51, %v623_v33 }
 0x286   : > { %v2275_v26 = vpop.f32.mrf.mxu2  ;;  %2780 = vmatpush.msra.mxu2 %v943_v23  ;;  %4638 = vmatpush.lsf.msrb.mxu1 %v543_v63  ;;  %v942_v23 = vld [vmem:[#allocation5 + $0x748] sm:$0xff] }
 0x287   : > { %v2276_v45 = vadd.f32 %v2275_v26, %v2211_v38  ;;  %2611 = vmatmul.f32.gmra.mxu3 %v5454_v8  ;;  %4537 = vmatmul.lmr.bf16.gmra.16.mxu0 }
 0x288   : > { %v6932_v37 = vpop.f32.mrf.mxu1  ;;  %2715 = vmatpush.msra.mxu1 %v927_v24  ;;  %2781 = vmatpush.msra.mxu2 %v942_v23  ;;  %v592_v23 = vld [vmem:[%s6193_s17 + $0x858] sm:$0xff] }
 0x289   : > { %v2341_v56 = vadd.f32 %v6866_v35, %v2276_v45  ;;  %v2214_v35 = vadd.f32 %v6849_v49, %v6640_v59  ;;  %v539_v45 = vld [vmem:[%s6193_s17 + $0x6b0] sm:$0xff] }
 0x28a   : > { %4639 = vmatpush.lsf.msrb.mxu1 %v542_v43  ;;  %v941_v43 = vld [vmem:[#allocation5 + $0x740] sm:$0xff] }
 0x28b   : > { %v6940_v53 = vadd.f32 %v6872_v58, %v2341_v56  ;;  %2537 = vmatmul.f32.gmra.mxu2 %v5327_v10  ;;  %2484 = vmatmul.f32.gmra.mxu1 %v5462_v9  ;;  %v5332_v58 = vunpack.i.l.bf16 %v6595_v20  ;;  %v6949_v0 = vpop.trf.xlu0  ;;  %v5467_v10 = vunpack.i.h.bf16 %v6883_v3  ;;  %v6952_v63 = vpop.f32.mrf.mxu3  ;;  %v958_v9 = vld [vmem:[#allocation5 + $0x7c8] sm:$0xff]  ;;  %v5459_v20 = vunpack.i.l.bf16 %v6863_v22  ;;  %v624_v22 = vld [vmem:[%s6193_s17 + $0x958] sm:$0xff] }
 0x28c   : > { %4640 = vmatpush.lsf.msrb.mxu1 %v541_v7  ;;  %2846 = vmatpush.msra.mxu3 %v958_v9  ;;  %v6959_v8 = vpop.f32.mrf.mxu0  ;;  %v538_v56 = vld [vmem:[%s6193_s17 + $0x6a8] sm:$0xff]  ;;  %v537_v7 = vld [vmem:[%s6193_s17 + $0x6a0] sm:$0xff]  ;;  %v5530_v51 = vpack.i.bf16 %v592_v23, %v624_v22  ;;  %v2220_v23 = vadd.f32 %v6888_v15, %v6672_v36  ;;  %v956_v36 = vld [vmem:[#allocation5 + $0x7b8] sm:$0xff] }
 0x28d   : > { %5529 = vxpose.xlu1.b32.cont [11/16] %v5528_v12, 128  ;;  %2782 = vmatpush.msra.mxu2 %v941_v43  ;;  %v593_v43 = vld [vmem:[%s6193_s17 + $0x860] sm:$0xff]  ;;  %v562_v15 = vld [vmem:[%s6193_s17 + $0x768] sm:$0xff] }
 0x28e   : > { %v2278_v38 = vpop.f32.mrf.mxu2  ;;  %4641 = vmatpush.lsf.msrb.mxu1 %v540_v30  ;;  %v536_v30 = vld [vmem:[%s6193_s17 + $0x698] sm:$0xff]  ;;  %v533_v22 = vld [vmem:[%s6193_s17 + $0x680] sm:$0xff] }
 0x28f   : > { %v2279_v26 = vadd.f32 %v2278_v38, %v2214_v35  ;;  %2614 = vmatmul.f32.gmra.mxu3 %v5459_v20  ;;  %4538 = vmatmul.lmr.bf16.gmra.16.mxu0  ;;  %v5472_v38 = vunpack.i.h.bf16 %v6904_v39  ;;  %v564_v20 = vld [vmem:[%s6193_s17 + $0x778] sm:$0xff] }
 0x290   : > { %v6955_v59 = vpop.f32.mrf.mxu1  ;;  %4642 = vmatpush.lsf.msrb.mxu1 %v539_v45  ;;  %v925_v45 = vld [vmem:[#allocation5 + $0x6c0] sm:$0xff]  ;;  %4750 = vmatpush.lsf.msrb.mxu2 %v564_v20 }
 0x291   : > { %v2344_v49 = vadd.f32 %v6886_v57, %v2279_v26  ;;  %v2217_v57 = vadd.f32 %v6868_v42, %v6656_v40  ;;  %v957_v40 = vld [vmem:[#allocation5 + $0x7c0] sm:$0xff]  ;;  %v5464_v26 = vunpack.i.l.bf16 %v6883_v3  ;;  %v534_v3 = vld [vmem:[%s6193_s17 + $0x688] sm:$0xff] }
 0x292   : > { %2716 = vmatpush.msra.mxu1 %v926_v48  ;;  %2847 = vmatpush.msra.mxu3 %v957_v40  ;;  %v940_v48 = vld [vmem:[#allocation5 + $0x738] sm:$0xff] }
 0x293   : > { %v6963_v24 = vadd.f32 %v6892_v27, %v2344_v49  ;;  %2540 = vmatmul.f32.gmra.mxu2 %v5332_v58  ;;  %2487 = vmatmul.f32.gmra.mxu1 %v5467_v10  ;;  %v5337_v27 = vunpack.i.l.bf16 %v6613_v44  ;;  %v6971_v35 = vpop.trf.xlu0  ;;  %v6975_v58 = vpop.f32.mrf.mxu3  ;;  %v535_v10 = vld [vmem:[%s6193_s17 + $0x690] sm:$0xff] }
 0x294   : > { %4643 = vmatpush.lsf.msrb.mxu1 %v538_v56  ;;  %v6982_v9 = vpop.f32.mrf.mxu0  ;;  %v580_v56 = vld [vmem:[%s6193_s17 + $0x7f8] sm:$0xff]  ;;  %2783 = vmatpush.msra.mxu2 %v940_v48 }
 0x295   : > { %5531 = vxpose.xlu1.b32.cont [12/16] %v5530_v51, 128  ;;  %v629_v51 = vld [vmem:[%s6193_s17 + $0x980] sm:$0xff]  ;;  %4867 = vmatpush.lsf.msrb.mxu3 %v580_v56  ;;  %v594_v56 = vld [vmem:[%s6193_s17 + $0x868] sm:$0xff] }
 0x296   : > { %v2281_v33 = vpop.f32.mrf.mxu2  ;;  %4644 = vmatpush.lsf.msrb.mxu1 %v537_v7  ;;  %v625_v7 = vld [vmem:[%s6193_s17 + $0x960] sm:$0xff] }
 0x297   : > { %v2282_v12 = vadd.f32 %v2281_v33, %v2217_v57  ;;  %2617 = vmatmul.f32.gmra.mxu3 %v5464_v26  ;;  %4539 = vmatmul.lmr.bf16.gmra.16.mxu0  ;;  %v597_v57 = vld [vmem:[%s6193_s17 + $0x880] sm:$0xff]  ;;  %v579_v26 = vld [vmem:[%s6193_s17 + $0x7f0] sm:$0xff] }
 0x298   : > { %v6977_v42 = vpop.f32.mrf.mxu1  ;;  %4645 = vmatpush.lsf.msrb.mxu1 %v536_v30  ;;  %2848 = vmatpush.msra.mxu3 %v956_v36  ;;  %v598_v36 = vld [vmem:[%s6193_s17 + $0x888] sm:$0xff] }
 0x299   : > { %v2347_v44 = vadd.f32 %v6907_v6, %v2282_v12  ;;  %v563_v6 = vld [vmem:[%s6193_s17 + $0x770] sm:$0xff] }
 0x29a   : > { %2717 = vmatpush.msra.mxu1 %v925_v45  ;;  %4751 = vmatpush.lsf.msrb.mxu2 %v563_v6  ;;  %v578_v6 = vld [vmem:[%s6193_s17 + $0x7e8] sm:$0xff] }
 0x29b   : > { %v6986_v49 = vadd.f32 %v6914_v18, %v2347_v44  ;;  %2543 = vmatmul.f32.gmra.mxu2 %v5337_v27  ;;  %2490 = vmatmul.f32.gmra.mxu1 %v5472_v38  ;;  %v5532_v18 = vpack.i.bf16 %v593_v43, %v625_v7  ;;  %v5342_v27 = vunpack.i.l.bf16 %v6631_v34  ;;  %v6999_v30 = vpop.trf.xlu0  ;;  %v5477_v38 = vunpack.i.h.bf16 %v6926_v41  ;;  %v7002_v40 = vpop.f32.mrf.mxu3  ;;  %v626_v43 = vld [vmem:[%s6193_s17 + $0x968] sm:$0xff] }
 0x29c   : > { %4646 = vmatpush.lsf.msrb.mxu1 %v535_v10  ;;  %v5469_v34 = vunpack.i.l.bf16 %v6904_v39  ;;  %v5620_v10 = vpack.i.bf16 %v597_v57, %v629_v51  ;;  %v7010_v20 = vpop.f32.mrf.mxu0  ;;  %4752 = vmatpush.lsf.msrb.mxu2 %v562_v15  ;;  %v561_v39 = vld [vmem:[%s6193_s17 + $0x760] sm:$0xff]  ;;  %v2223_v7 = vadd.f32 %v6910_v21, %v6692_v54  ;;  %v5347_v57 = vunpack.i.l.bf16 %v6647_v62  ;;  %v630_v15 = vld [vmem:[%s6193_s17 + $0x988] sm:$0xff] }
 0x29d   : > { %5533 = vxpose.xlu1.b32.cont [13/16] %v5532_v18, 128  ;;  %4868 = vmatpush.lsf.msrb.mxu3 %v579_v26  ;;  %v5482_v54 = vunpack.i.h.bf16 %v6949_v0  ;;  %v5474_v62 = vunpack.i.l.bf16 %v6926_v41  ;;  %v923_v41 = vld [vmem:[#allocation5 + $0x6b0] sm:$0xff] }
 0x29e   : > { %v2284_v33 = vpop.f32.mrf.mxu2  ;;  %4647 = vmatpush.lsf.msrb.mxu1 %v534_v3  ;;  %v924_v3 = vld [vmem:[#allocation5 + $0x6b8] sm:$0xff]  ;;  %5621 = vxpose.xlu2.b32.start [1/16] %v5620_v10, 128  ;;  %v558_v10 = vld [vmem:[%s6193_s17 + $0x748] sm:$0xff] }
 0x29f   : > { %v2285_v12 = vadd.f32 %v2284_v33, %v2220_v23  ;;  %2620 = vmatmul.f32.gmra.mxu3 %v5469_v34  ;;  %4540 = vmatmul.lmr.bf16.gmra.16.mxu0  ;;  %v560_v23 = vld [vmem:[%s6193_s17 + $0x758] sm:$0xff]  ;;  %v559_v33 = vld [vmem:[%s6193_s17 + $0x750] sm:$0xff] }
 0x2a0   : > { %v7006_v44 = vpop.f32.mrf.mxu1  ;;  %4648 = vmatpush.lsf.msrb.mxu1 %v533_v22  ;;  %v5534_v22 = vpack.i.bf16 %v594_v56, %v626_v43  ;;  %4753 = vmatpush.lsf.msrb.mxu2 %v561_v39  ;;  %v5622_v39 = vpack.i.bf16 %v598_v36, %v630_v15  ;;  %v595_v56 = vld [vmem:[%s6193_s17 + $0x870] sm:$0xff]  ;;  %v5479_v36 = vunpack.i.l.bf16 %v6949_v0  ;;  %v922_v15 = vld [vmem:[#allocation5 + $0x6a8] sm:$0xff] }
 0x2a1   : > { %v2350_v45 = vadd.f32 %v6930_v16, %v2285_v12  ;;  %v939_v16 = vld [vmem:[#allocation5 + $0x730] sm:$0xff]  ;;  %4869 = vmatpush.lsf.msrb.mxu3 %v578_v6  ;;  %v554_v0 = vld [vmem:[%s6193_s17 + $0x728] sm:$0xff] }
 0x2a2   : > { %4649 = vllmr.16.mxu1  ;;  %2784 = vmatpush.msra.mxu2 %v939_v16  ;;  %v574_v16 = vld [vmem:[%s6193_s17 + $0x7c8] sm:$0xff]  ;;  %v627_v43 = vld [vmem:[%s6193_s17 + $0x970] sm:$0xff] }
 0x2a3   : > { %v7013_v48 = vadd.f32 %v6937_v1, %v2350_v45  ;;  %2546 = vmatmul.f32.gmra.mxu2 %v5342_v27  ;;  %2493 = vmatmul.f32.gmra.mxu1 %v5477_v38  ;;  %v577_v1 = vld [vmem:[%s6193_s17 + $0x7e0] sm:$0xff]  ;;  %v7024_v51 = vpop.trf.xlu0  ;;  %v576_v27 = vld [vmem:[%s6193_s17 + $0x7d8] sm:$0xff]  ;;  %v7029_v21 = vpop.f32.mrf.mxu3  ;;  %v955_v38 = vld [vmem:[#allocation5 + $0x7b0] sm:$0xff] }
 0x2a4   : > { %2718 = vmatpush.msra.mxu1 %v924_v3  ;;  %4754 = vmatpush.lsf.msrb.mxu2 %v560_v23  ;;  %v7038_v45 = vpop.f32.mrf.mxu0  ;;  %v575_v3 = vld [vmem:[%s6193_s17 + $0x7d0] sm:$0xff]  ;;  %v938_v23 = vld [vmem:[#allocation5 + $0x728] sm:$0xff] }
 0x2a5   : > { %4870 = vmatpush.lsf.msrb.mxu3 %v577_v1  ;;  %5535 = vxpose.xlu1.b32.cont [14/16] %v5534_v22, 128  ;;  %v5352_v1 = vunpack.i.l.bf16 %v6663_v61 }
 0x2a6   : > { %v2287_v18 = vpop.f32.mrf.mxu2  ;;  %4755 = vmatpush.lsf.msrb.mxu2 %v559_v33  ;;  %5623 = vxpose.xlu2.b32.cont [2/16] %v5622_v39, 128  ;;  %v5536_v33 = vpack.i.bf16 %v595_v56, %v627_v43  ;;  %v553_v56 = vld [vmem:[%s6193_s17 + $0x720] sm:$0xff]  ;;  %v570_v43 = vld [vmem:[%s6193_s17 + $0x7a8] sm:$0xff] }
 0x2a7   : > { %v2288_v12 = vadd.f32 %v2287_v18, %v2223_v7  ;;  %2849 = vmatpush.msra.mxu3 %v955_v38  ;;  %v2226_v7 = vadd.f32 %v6932_v37, %v6711_v60  ;;  %4541 = vmatmul.lmr.bf16.gmra.16.mxu0  ;;  %v556_v18 = vld [vmem:[%s6193_s17 + $0x738] sm:$0xff]  ;;  %v954_v37 = vld [vmem:[#allocation5 + $0x7a8] sm:$0xff]  ;;  %v631_v38 = vld [vmem:[%s6193_s17 + $0x990] sm:$0xff] }
 0x2a8   : > { %v7033_v26 = vpop.f32.mrf.mxu1  ;;  %2623 = vmatmul.f32.gmra.mxu3 %v5474_v62  ;;  %4756 = vmatpush.lsf.msrb.mxu2 %v558_v10 }
 0x2a9   : > { %v2353_v34 = vadd.f32 %v6952_v63, %v2288_v12  ;;  %4871 = vmatpush.lsf.msrb.mxu3 %v576_v27  ;;  %v557_v63 = vld [vmem:[%s6193_s17 + $0x740] sm:$0xff]  ;;  %2719 = vmatpush.msra.mxu1 %v923_v41  ;;  %v5487_v12 = vunpack.i.h.bf16 %v6971_v35 }
 0x2aa   : > { %4757 = vmatpush.lsf.msrb.mxu2 %v557_v63  ;;  %v921_v63 = vld [vmem:[#allocation5 + $0x6a0] sm:$0xff] }
 0x2ab   : > { %v7042_v6 = vadd.f32 %v6959_v8, %v2353_v34  ;;  %2549 = vmatmul.f32.gmra.mxu2 %v5347_v57  ;;  %2496 = vmatmul.f32.gmra.mxu1 %v5482_v54  ;;  %v7051_v22 = vpop.trf.xlu0  ;;  %v573_v57 = vld [vmem:[%s6193_s17 + $0x7c0] sm:$0xff]  ;;  %v7056_v60 = vpop.f32.mrf.mxu3  ;;  %v599_v54 = vld [vmem:[%s6193_s17 + $0x890] sm:$0xff] }
 0x2ac   : > { %4872 = vmatpush.lsf.msrb.mxu3 %v575_v3  ;;  %2785 = vmatpush.msra.mxu2 %v938_v23  ;;  %v555_v34 = vld [vmem:[%s6193_s17 + $0x730] sm:$0xff]  ;;  %v7065_v10 = vpop.f32.mrf.mxu0  ;;  %v572_v3 = vld [vmem:[%s6193_s17 + $0x7b8] sm:$0xff]  ;;  %v5624_v39 = vpack.i.bf16 %v599_v54, %v631_v38  ;;  %v5484_v38 = vunpack.i.l.bf16 %v6971_v35  ;;  %v550_v35 = vld [vmem:[%s6193_s17 + $0x708] sm:$0xff] }
 0x2ad   : > { %5537 = vxpose.xlu1.b32.cont [15/16] %v5536_v33, 128  ;;  %2720 = vmatpush.msra.mxu1 %v922_v15  ;;  %v596_v33 = vld [vmem:[%s6193_s17 + $0x878] sm:$0xff] }
 0x2ae   : > { %v2290_v8 = vpop.f32.mrf.mxu2  ;;  %4873 = vmatpush.lsf.msrb.mxu3 %v574_v16  ;;  %4758 = vmatpush.lsf.msrb.mxu2 %v556_v18  ;;  %v2229_v16 = vadd.f32 %v6955_v59, %v6731_v11  ;;  %v920_v18 = vld [vmem:[#allocation5 + $0x698] sm:$0xff]  ;;  %v5492_v11 = vunpack.i.h.bf16 %v6999_v30 }
 0x2af   : > { %v2291_v27 = vadd.f32 %v2290_v8, %v2226_v7  ;;  %4542 = vmatmul.lmr.bf16.gmra.16.mxu0  ;;  %5625 = vxpose.xlu2.b32.cont [3/16] %v5624_v39, 128  ;;  %v552_v8 = vld [vmem:[%s6193_s17 + $0x718] sm:$0xff] }
 0x2b0   : > { %v7060_v61 = vpop.f32.mrf.mxu1  ;;  %2850 = vmatpush.msra.mxu3 %v954_v37  ;;  %4759 = vmatpush.lsf.msrb.mxu2 %v555_v34  ;;  %v569_v37 = vld [vmem:[%s6193_s17 + $0x7a0] sm:$0xff]  ;;  %v600_v15 = vld [vmem:[%s6193_s17 + $0x898] sm:$0xff] }
 0x2b1   : > { %v2356_v62 = vadd.f32 %v6975_v58, %v2291_v27  ;;  %2626 = vmatmul.f32.gmra.mxu3 %v5479_v36  ;;  %v571_v58 = vld [vmem:[%s6193_s17 + $0x7b0] sm:$0xff]  ;;  %2721 = vmatpush.msra.mxu1 %v921_v63  ;;  %v953_v27 = vld [vmem:[#allocation5 + $0x7a0] sm:$0xff]  ;;  %v2232_v63 = vadd.f32 %v6977_v42, %v6756_v17  ;;  %v566_v17 = vld [vmem:[%s6193_s17 + $0x788] sm:$0xff] }
 0x2b2   : > { %4874 = vmatpush.lsf.msrb.mxu3 %v573_v57  ;;  %4760 = vmatpush.lsf.msrb.mxu2 %v554_v0  ;;  %v551_v36 = vld [vmem:[%s6193_s17 + $0x710] sm:$0xff] }
 0x2b3   : > { %v7069_v41 = vadd.f32 %v6982_v9, %v2356_v62  ;;  %2552 = vmatmul.f32.gmra.mxu2 %v5352_v1  ;;  %2499 = vmatmul.f32.gmra.mxu1 %v5487_v12  ;;  %v5357_v9 = vunpack.i.l.bf16 %v6681_v19  ;;  %v7078_v23 = vpop.trf.xlu0  ;;  %v937_v1 = vld [vmem:[#allocation5 + $0x720] sm:$0xff]  ;;  %v7082_v59 = vpop.f32.mrf.mxu3  ;;  %v628_v19 = vld [vmem:[%s6193_s17 + $0x978] sm:$0xff]  ;;  %v919_v0 = vld [vmem:[#allocation5 + $0x690] sm:$0xff] }
 0x2b4   : > { %4875 = vmatpush.lsf.msrb.mxu3 %v572_v3  ;;  %4761 = vmatpush.lsf.msrb.mxu2 %v553_v56  ;;  %v632_v62 = vld [vmem:[%s6193_s17 + $0x998] sm:$0xff]  ;;  %v7094_v34 = vpop.f32.mrf.mxu0  ;;  %v5538_v3 = vpack.i.bf16 %v596_v33, %v628_v19  ;;  %v601_v33 = vld [vmem:[%s6193_s17 + $0x8a0] sm:$0xff] }
 0x2b5   : > { %2722 = vmatpush.msra.mxu1 %v920_v18  ;;  %v917_v18 = vld [vmem:[#allocation5 + $0x680] sm:$0xff] }
 0x2b6   : > { %v2293_v7 = vpop.f32.mrf.mxu2  ;;  %4876 = vmatpush.lsf.msrb.mxu3 %v571_v58  ;;  %2786 = vmatpush.msra.mxu2 %v937_v1  ;;  %v5626_v58 = vpack.i.bf16 %v600_v15, %v632_v62  ;;  %v633_v19 = vld [vmem:[%s6193_s17 + $0x9a0] sm:$0xff]  ;;  %v2235_v15 = vadd.f32 %v7006_v44, %v6776_v50  ;;  %v980_v62 = vld [vmem:[#allocation5 + $0x878] sm:$0xff] }
 0x2b7   : > { %v2294_v57 = vadd.f32 %v2293_v7, %v2229_v16  ;;  %4543 = vmatmul.lmr.bf16.gmra.16.mxu0  ;;  %v567_v16 = vld [vmem:[%s6193_s17 + $0x790] sm:$0xff]  ;;  %5539 = vxpose.xlu1.b32.end [16/16] %v5538_v3, 128 }
 0x2b8   : > { %v7086_v12 = vpop.f32.mrf.mxu1  ;;  %2851 = vmatpush.msra.mxu3 %v953_v27  ;;  %4762 = vmatpush.lsf.msrb.mxu2 %v552_v8  ;;  %v5497_v8 = vunpack.i.h.bf16 %v7024_v51  ;;  %v936_v27 = vld [vmem:[#allocation5 + $0x718] sm:$0xff] }
 0x2b9   : > { %v2359_v54 = vadd.f32 %v7002_v40, %v2294_v57  ;;  %v568_v40 = vld [vmem:[%s6193_s17 + $0x798] sm:$0xff]  ;;  %2629 = vmatmul.f32.gmra.mxu3 %v5484_v38  ;;  %2723 = vmatpush.msra.mxu1 %v919_v0  ;;  %v5628_v38 = vpack.i.bf16 %v601_v33, %v633_v19  ;;  %v950_v33 = vld [vmem:[#allocation5 + $0x788] sm:$0xff] }
 0x2ba   : > { %4877 = vmatpush.lsf.msrb.mxu3 %v570_v43  ;;  %4763 = vmatpush.lsf.msrb.mxu2 %v551_v36  ;;  %v549_v43 = vld [vmem:[%s6193_s17 + $0x700] sm:$0xff]  ;;  %v935_v36 = vld [vmem:[#allocation5 + $0x710] sm:$0xff] }
 0x2bb   : > { %v7097_v39 = vadd.f32 %v7010_v20, %v2359_v54  ;;  %2555 = vmatmul.f32.gmra.mxu2 %v5357_v9  ;;  %2502 = vmatmul.f32.gmra.mxu1 %v5492_v11  ;;  %v918_v20 = vld [vmem:[#allocation5 + $0x688] sm:$0xff]  ;;  %v5362_v9 = vunpack.i.l.bf16 %v6701_v32  ;;  %v7107_v1 = vpop.f32.mrf.mxu3  ;;  %v565_v11 = vld [vmem:[%s6193_s17 + $0x780] sm:$0xff] }
 0x2bc   : > { %4878 = vmatpush.lsf.msrb.mxu3 %v569_v37  ;;  %4764 = vmatpush.lsf.msrb.mxu2 %v550_v35  ;;  %v7116_v32 = vpop.f32.mrf.mxu0  ;;  %v5489_v37 = vunpack.i.l.bf16 %v6999_v30  ;;  %v951_v35 = vld [vmem:[#allocation5 + $0x790] sm:$0xff] }
 0x2bd   : > { %5627 = vxpose.xlu2.b32.cont [4/16] %v5626_v58, 128  ;;  %2724 = vmatpush.msra.mxu1 %v918_v20  ;;  %v979_v58 = vld [vmem:[#allocation5 + $0x870] sm:$0xff] }
 0x2be   : > { %v2296_v56 = vpop.f32.mrf.mxu2  ;;  %4879 = vmatpush.lsf.msrb.mxu3 %v568_v40  ;;  %4765 = vmatpush.lsf.msrb.mxu2 %v549_v43  ;;  %v5502_v40 = vunpack.i.h.bf16 %v7051_v22 }
 0x2bf   : > { %v2297_v7 = vadd.f32 %v2296_v56, %v2232_v63  ;;  %2725 = vmatpush.msra.mxu1 %v917_v18  ;;  %4544 = vmatmul.lmr.bf16.gmra.16.mxu0  ;;  %v602_v63 = vld [vmem:[%s6193_s17 + $0x8a8] sm:$0xff] }
 0x2c0   : > { %v7110_v42 = vpop.f32.mrf.mxu1  ;;  %4880 = vmatpush.lsf.msrb.mxu3 %v567_v16  ;;  %2787 = vmatpush.msra.mxu2 %v936_v27  ;;  %v634_v16 = vld [vmem:[%s6193_s17 + $0x9a8] sm:$0xff]  ;;  %v635_v27 = vld [vmem:[%s6193_s17 + $0x9b0] sm:$0xff] }
 0x2c1   : > { %v2362_v57 = vadd.f32 %v7029_v21, %v2297_v7  ;;  %v952_v21 = vld [vmem:[#allocation5 + $0x798] sm:$0xff]  ;;  %2632 = vmatmul.f32.gmra.mxu3 %v5489_v37  ;;  %2905 = vmatpush.msra.mxu0 %v980_v62  ;;  %v978_v56 = vld [vmem:[#allocation5 + $0x868] sm:$0xff]  ;;  %v975_v37 = vld [vmem:[#allocation5 + $0x850] sm:$0xff] }
 0x2c2   : > { %4881 = vmatpush.lsf.msrb.mxu3 %v566_v17  ;;  %4766 = vllmr.16.mxu2  ;;  %v934_v7 = vld [vmem:[#allocation5 + $0x708] sm:$0xff] }
 0x2c3   : > { %v7120_v54 = vadd.f32 %v7038_v45, %v2362_v57  ;;  %2558 = vmatmul.f32.gmra.mxu2 %v5362_v9  ;;  %2505 = vmatmul.f32.gmra.mxu1 %v5497_v8  ;;  %v5367_v45 = vunpack.i.l.bf16 %v6718_v52  ;;  %v7126_v0 = vpop.f32.mrf.mxu3  ;;  %v5494_v52 = vunpack.i.l.bf16 %v7024_v51  ;;  %v5630_v9 = vpack.i.bf16 %v602_v63, %v634_v16  ;;  %v977_v8 = vld [vmem:[#allocation5 + $0x860] sm:$0xff]  ;;  %v976_v51 = vld [vmem:[#allocation5 + $0x858] sm:$0xff]  ;;  %v974_v62 = vld [vmem:[#allocation5 + $0x848] sm:$0xff] }
 0x2c4   : > { %4882 = vmatpush.lsf.msrb.mxu3 %v565_v11  ;;  %2788 = vmatpush.msra.mxu2 %v935_v36  ;;  %v7133_v20 = vpop.f32.mrf.mxu0  ;;  %v5372_v57 = vunpack.i.l.bf16 %v6742_v31  ;;  %v933_v36 = vld [vmem:[#allocation5 + $0x700] sm:$0xff]  ;;  %v5504_v63 = vunpack.i.l.bf16 %v7078_v23 }
 0x2c5   : > { %4883 = vllmr.16.mxu3  ;;  %5629 = vxpose.xlu2.b32.cont [5/16] %v5628_v38, 128  ;;  %v5499_v38 = vunpack.i.l.bf16 %v7051_v22 }
 0x2c6   : > { %v2299_v3 = vpop.f32.mrf.mxu2  ;;  %2852 = vmatpush.msra.mxu3 %v952_v21  ;;  %2906 = vmatpush.msra.mxu0 %v979_v58 }
 0x2c7   : > { %v2300_v30 = vadd.f32 %v2299_v3, %v2235_v15  ;;  %2789 = vmatpush.msra.mxu2 %v934_v7  ;;  %4545 = vmatmul.lmr.bf16.gmra.16.mxu0 }
 0x2c8   : > { %v7128_v50 = vpop.f32.mrf.mxu1  ;;  %2853 = vmatpush.msra.mxu3 %v951_v35  ;;  %2907 = vmatpush.msra.mxu0 %v978_v56 }
 0x2c9   : > { %v2365_v44 = vadd.f32 %v7056_v60, %v2300_v30  ;;  %v2238_v60 = vadd.f32 %v7033_v26, %v6796_v25  ;;  %2635 = vmatmul.f32.gmra.mxu3 %v5494_v52  ;;  %v603_v26 = vld [vmem:[%s6193_s17 + $0x8b0] sm:$0xff]  ;;  %2790 = vmatpush.msra.mxu2 %v933_v36  ;;  %v973_v30 = vld [vmem:[#allocation5 + $0x840] sm:$0xff] }
 0x2ca   : > { %2908 = vmatpush.msra.mxu0 %v977_v8  ;;  %2854 = vmatpush.msra.mxu3 %v950_v33  ;;  %v5632_v15 = vpack.i.bf16 %v603_v26, %v635_v27  ;;  %v971_v52 = vld [vmem:[#allocation5 + $0x830] sm:$0xff]  ;;  %v5382_v8 = vunpack.i.l.bf16 %v6785_v4  ;;  %v968_v4 = vld [vmem:[#allocation5 + $0x818] sm:$0xff]  ;;  %v2247_v26 = vadd.f32 %v7110_v42, %v6858_v5  ;;  %v606_v42 = vld [vmem:[%s6193_s17 + $0x8c8] sm:$0xff] }
 0x2cb   : > { %v7137_v43 = vadd.f32 %v7065_v10, %v2365_v44  ;;  %2561 = vmatmul.f32.gmra.mxu2 %v5367_v45  ;;  %2508 = vmatmul.f32.gmra.mxu1 %v5502_v40  ;;  %v5507_v10 = vunpack.i.h.bf16 %v7078_v23  ;;  %v7143_v11 = vpop.f32.mrf.mxu3  ;;  %v949_v40 = vld [vmem:[#allocation5 + $0x780] sm:$0xff]  ;;  %v636_v44 = vld [vmem:[%s6193_s17 + $0x9b8] sm:$0xff]  ;;  %v967_v27 = vld [vmem:[#allocation5 + $0x810] sm:$0xff] }
 0x2cc   : > { %2909 = vmatpush.msra.mxu0 %v976_v51  ;;  %v7150_v21 = vpop.f32.mrf.mxu0  ;;  %2855 = vmatpush.msra.mxu3 %v949_v40  ;;  %v1028_v33 = vld [vmem:[#allocation5 + $0x9f8] sm:$0xff]  ;;  %v1027_v36 = vld [vmem:[#allocation5 + $0x9f0] sm:$0xff]  ;;  %v965_v40 = vld [vmem:[#allocation5 + $0x800] sm:$0xff] }
 0x2cd   : > { %5631 = vxpose.xlu2.b32.cont [6/16] %v5630_v9, 128  ;;  %v970_v9 = vld [vmem:[#allocation5 + $0x828] sm:$0xff] }
 0x2ce   : > { %v2302_v17 = vpop.f32.mrf.mxu2  ;;  %2910 = vmatpush.msra.mxu0 %v975_v37 }
 0x2cf   : > { %v2303_v18 = vadd.f32 %v2302_v17, %v2238_v60  ;;  %4546 = vmatmul.lmr.bf16.gmra.16.mxu0  ;;  %v969_v17 = vld [vmem:[#allocation5 + $0x820] sm:$0xff] }
 0x2d0   : > { %v7145_v19 = vpop.f32.mrf.mxu1  ;;  %2911 = vmatpush.msra.mxu0 %v974_v62  ;;  %v966_v62 = vld [vmem:[#allocation5 + $0x808] sm:$0xff] }
 0x2d1   : > { %v2368_v25 = vadd.f32 %v7082_v59, %v2303_v18  ;;  %v2241_v59 = vadd.f32 %v7060_v61, %v6817_v14  ;;  %2638 = vmatmul.f32.gmra.mxu3 %v5499_v38  ;;  %v972_v14 = vld [vmem:[#allocation5 + $0x838] sm:$0xff]  ;;  %v605_v18 = vld [vmem:[%s6193_s17 + $0x8c0] sm:$0xff]  ;;  %v5387_v38 = vunpack.i.l.bf16 %v6806_v47 }
 0x2d2   : > { %2912 = vmatpush.msra.mxu0 %v973_v30  ;;  %v604_v61 = vld [vmem:[%s6193_s17 + $0x8b8] sm:$0xff] }
 0x2d3   : > { %v7154_v31 = vadd.f32 %v7094_v34, %v2368_v25  ;;  %2564 = vmatmul.f32.gmra.mxu2 %v5372_v57  ;;  %2511 = vmatmul.f32.gmra.mxu1 %v5507_v10  ;;  %v5377_v34 = vunpack.i.l.bf16 %v6765_v46  ;;  %v7159_v45 = vpop.f32.mrf.mxu3  ;;  %v5634_v56 = vpack.i.bf16 %v604_v61, %v636_v44  ;;  %v637_v10 = vld [vmem:[%s6193_s17 + $0x9c0] sm:$0xff]  ;;  %v5392_v44 = vunpack.i.l.bf16 %v6827_v29 }
 0x2d4   : > { %v7167_v16 = vpop.f32.mrf.mxu0  ;;  %2913 = vmatpush.msra.mxu0 %v972_v14  ;;  %v5636_v25 = vpack.i.bf16 %v605_v18, %v637_v10  ;;  %v1025_v10 = vld [vmem:[#allocation5 + $0x9e0] sm:$0xff] }
 0x2d5   : > { %5633 = vxpose.xlu2.b32.cont [7/16] %v5632_v15, 128 }
 0x2d6   : > { %v2305_v3 = vpop.f32.mrf.mxu2  ;;  %2914 = vmatpush.msra.mxu0 %v971_v52 }
 0x2d7   : > { %v2306_v22 = vadd.f32 %v2305_v3, %v2241_v59  ;;  %4547 = vmatmul.lmr.bf16.gmra.16.mxu0  ;;  %v638_v59 = vld [vmem:[%s6193_s17 + $0x9c8] sm:$0xff]  ;;  %v995_v3 = vld [vmem:[#allocation5 + $0x8f0] sm:$0xff] }
 0x2d8   : > { %v7161_v35 = vpop.f32.mrf.mxu1  ;;  %2915 = vmatpush.msra.mxu0 %v970_v9  ;;  %v994_v9 = vld [vmem:[#allocation5 + $0x8e8] sm:$0xff] }
 0x2d9   : > { %v2371_v58 = vadd.f32 %v7107_v1, %v2306_v22  ;;  %v2244_v1 = vadd.f32 %v7086_v12, %v6839_v2  ;;  %2641 = vmatmul.f32.gmra.mxu3 %v5504_v63  ;;  %v996_v2 = vld [vmem:[#allocation5 + $0x8f8] sm:$0xff]  ;;  %v1026_v63 = vld [vmem:[#allocation5 + $0x9e8] sm:$0xff] }
 0x2da   : > { %2916 = vmatpush.msra.mxu0 %v969_v17 }
 0x2db   : > { %v7170_v46 = vadd.f32 %v7116_v32, %v2371_v58  ;;  %2567 = vmatmul.f32.gmra.mxu2 %v5377_v34  ;;  %4650 = vmatmul.lmr.bf16.vlgmr.msra.gmra.16.mxu1  ;;  %v7175_v60 = vpop.f32.mrf.mxu3  ;;  %v2250_v58 = vadd.f32 %v7128_v50, %v6877_v13 }
 0x2dc   : > { %v7182_v12 = vpop.f32.mrf.mxu0  ;;  %2970 = vmatpush.msra.mxu1 %v996_v2  ;;  %2917 = vmatpush.msra.mxu0 %v968_v4 }
 0x2dd   : > { %5635 = vxpose.xlu2.b32.cont [8/16] %v5634_v56, 128 }
 0x2de   : > { %v2308_v7 = vpop.f32.mrf.mxu2  ;;  %2918 = vmatpush.msra.mxu0 %v967_v27  ;;  %2971 = vmatpush.msra.mxu1 %v995_v3  ;;  %v1011_v27 = vld [vmem:[#allocation5 + $0x970] sm:$0xff] }
 0x2df   : > { %v2309_v23 = vadd.f32 %v2308_v7, %v2244_v1  ;;  %4548 = vmatmul.lmr.bf16.gmra.16.mxu0  ;;  %v607_v1 = vld [vmem:[%s6193_s17 + $0x8d0] sm:$0xff] }
 0x2e0   : > { %v7177_v32 = vpop.f32.mrf.mxu1  ;;  %2919 = vmatpush.msra.mxu0 %v966_v62  ;;  %v639_v7 = vld [vmem:[%s6193_s17 + $0x9d0] sm:$0xff]  ;;  %2972 = vmatpush.msra.mxu1 %v994_v9 }
 0x2e1   : > { %v2374_v51 = vadd.f32 %v7126_v0, %v2309_v23 }
 0x2e2   : > { %2920 = vmatpush.msra.mxu0 %v965_v40 }
 0x2e3   : > { %v7185_v57 = vadd.f32 %v7133_v20, %v2374_v51  ;;  %2570 = vmatmul.f32.gmra.mxu2 %v5382_v8  ;;  %4651 = vmatmul.lmr.bf16.gmra.16.mxu1  ;;  %v7190_v20 = vpop.f32.mrf.mxu3  ;;  %v7197_v30 = vpop.trf.xlu1  ;;  %v5640_v8 = vpack.i.bf16 %v607_v1, %v639_v7 }
 0x2e4   : > { %v7199_v22 = vpop.f32.mrf.mxu0  ;;  %v5544_v34 = vunpack.i.h.bf16 %v7197_v30 }
 0x2e5   : > { %5637 = vxpose.xlu2.b32.cont [9/16] %v5636_v25, 128  ;;  %v640_v25 = vld [vmem:[%s6193_s17 + $0x9d8] sm:$0xff] }
 0x2e6   : > { %v2311_v0 = vpop.f32.mrf.mxu2  ;;  %4884 = vmatmul.lmr.bf16.vlgmr.msra.gmra.16.mxu3 }
 0x2e7   : > { %v2312_v37 = vadd.f32 %v2311_v0, %v2247_v26  ;;  %3100 = vmatpush.msra.mxu3 %v1028_v33  ;;  %2921 = vmatmul.f32.vlgmr.msra.gmra.mxu0 %v5544_v34  ;;  %v608_v33 = vld [vmem:[%s6193_s17 + $0x8d8] sm:$0xff]  ;;  %v993_v26 = vld [vmem:[#allocation5 + $0x8e0] sm:$0xff] }
 0x2e8   : > { %v7192_v15 = vpop.f32.mrf.mxu1  ;;  %2973 = vmatpush.msra.mxu1 %v993_v26  ;;  %v1008_v34 = vld [vmem:[#allocation5 + $0x958] sm:$0xff] }
 0x2e9   : > { %v2377_v5 = vadd.f32 %v7143_v11, %v2312_v37  ;;  %3101 = vmatpush.msra.mxu3 %v1027_v36  ;;  %v5638_v11 = vpack.i.bf16 %v606_v42, %v638_v59  ;;  %v1010_v36 = vld [vmem:[#allocation5 + $0x968] sm:$0xff]  ;;  %v1009_v42 = vld [vmem:[#allocation5 + $0x960] sm:$0xff]  ;;  %v1024_v59 = vld [vmem:[#allocation5 + $0x9d8] sm:$0xff] }
 0x2eb   : > { %v7202_v47 = vadd.f32 %v7150_v21, %v2377_v5  ;;  %2573 = vmatmul.f32.gmra.mxu2 %v5387_v38  ;;  %4652 = vmatmul.lmr.bf16.gmra.16.mxu1  ;;  %v7208_v21 = vpop.f32.mrf.mxu3  ;;  %v7215_v13 = vpop.trf.xlu1  ;;  %v5642_v38 = vpack.i.bf16 %v608_v33, %v640_v25 }
 0x2ec   : > { %3102 = vmatpush.msra.mxu3 %v1026_v63  ;;  %v7217_v50 = vpop.f32.mrf.mxu0  ;;  %v5549_v23 = vunpack.i.h.bf16 %v7215_v13  ;;  %v1007_v63 = vld [vmem:[#allocation5 + $0x950] sm:$0xff] }
 0x2ed   : > { %5639 = vxpose.xlu2.b32.cont [10/16] %v5638_v11, 128  ;;  %v992_v11 = vld [vmem:[#allocation5 + $0x8d8] sm:$0xff] }
 0x2ee   : > { %v2314_v14 = vpop.f32.mrf.mxu2  ;;  %4885 = vmatmul.lmr.bf16.gmra.16.mxu3  ;;  %2974 = vmatpush.msra.mxu1 %v992_v11 }
 0x2ef   : > { %v2315_v61 = vadd.f32 %v2314_v14, %v2250_v58  ;;  %2924 = vmatmul.f32.gmra.mxu0 %v5549_v23  ;;  %3103 = vmatpush.msra.mxu3 %v1025_v10 }
 0x2f0   : > { %v7210_v56 = vpop.f32.mrf.mxu1 }
 0x2f1   : > { %v2380_v52 = vadd.f32 %v7159_v45, %v2315_v61  ;;  %v2253_v45 = vadd.f32 %v7145_v19, %v6895_v55  ;;  %3104 = vmatpush.msra.mxu3 %v1024_v59  ;;  %v1005_v59 = vld [vmem:[#allocation5 + $0x940] sm:$0xff] }
 0x2f3   : > { %v7220_v29 = vadd.f32 %v7167_v16, %v2380_v52  ;;  %2576 = vmatmul.f32.gmra.mxu2 %v5392_v44  ;;  %4653 = vmatmul.lmr.bf16.gmra.16.mxu1  ;;  %v7225_v18 = vpop.f32.mrf.mxu3  ;;  %v1012_v16 = vld [vmem:[#allocation5 + $0x978] sm:$0xff]  ;;  %v7232_v0 = vpop.trf.xlu1  ;;  %v2471_v52 = vadd.f32 %v7177_v32, %v6940_v53 }
 0x2f4   : > { %v7234_v55 = vpop.f32.mrf.mxu0  ;;  %v5554_v37 = vunpack.i.h.bf16 %v7232_v0 }
 0x2f5   : > { %5641 = vxpose.xlu2.b32.cont [11/16] %v5640_v8, 128 }
 0x2f6   : > { %v2317_v17 = vpop.f32.mrf.mxu2  ;;  %4886 = vmatmul.lmr.bf16.gmra.16.mxu3 }
 0x2f7   : > { %v2318_v51 = vadd.f32 %v2317_v17, %v2253_v45  ;;  %2927 = vmatmul.f32.gmra.mxu0 %v5554_v37  ;;  %v610_v45 = vld [vmem:[%s6193_s17 + $0x8e8] sm:$0xff] }
 0x2f8   : > { %v7227_v2 = vpop.f32.mrf.mxu1  ;;  %v642_v17 = vld [vmem:[%s6193_s17 + $0x9e8] sm:$0xff] }
 0x2f9   : > { %v2383_v4 = vadd.f32 %v7175_v60, %v2318_v51  ;;  %v2468_v60 = vadd.f32 %v7161_v35, %v6918_v28  ;;  %v609_v28 = vld [vmem:[%s6193_s17 + $0x8e0] sm:$0xff]  ;;  %v991_v51 = vld [vmem:[#allocation5 + $0x8d0] sm:$0xff]  ;;  %v5646_v33 = vpack.i.bf16 %v610_v45, %v642_v17 }
 0x2fa   : > { %v641_v35 = vld [vmem:[%s6193_s17 + $0x9e0] sm:$0xff]  ;;  %2975 = vmatpush.msra.mxu1 %v991_v51 }
 0x2fb   : > { %v7237_v19 = vadd.f32 %v7182_v12, %v2383_v4  ;;  %4767 = vmatmul.lmr.bf16.vlgmr.msra.gmra.16.mxu2  ;;  %4654 = vmatmul.lmr.bf16.gmra.16.mxu1  ;;  %v7242_v12 = vpop.f32.mrf.mxu3  ;;  %v7249_v58 = vpop.trf.xlu1  ;;  %v1006_v4 = vld [vmem:[#allocation5 + $0x948] sm:$0xff] }
 0x2fc   : > { %3035 = vmatpush.msra.mxu2 %v1012_v16  ;;  %v7251_v14 = vpop.f32.mrf.mxu0  ;;  %v5559_v44 = vunpack.i.h.bf16 %v7249_v58 }
 0x2fd   : > { %5643 = vxpose.xlu2.b32.cont [12/16] %v5642_v38, 128 }
 0x2fe   : > { %v2532_v62 = vpop.f32.mrf.mxu2  ;;  %3036 = vmatpush.msra.mxu2 %v1011_v27  ;;  %4887 = vmatmul.lmr.bf16.gmra.16.mxu3 }
 0x2ff   : > { %v2533_v5 = vadd.f32 %v2532_v62, %v2468_v60  ;;  %2930 = vmatmul.f32.gmra.mxu0 %v5559_v44  ;;  %v611_v60 = vld [vmem:[%s6193_s17 + $0x8f0] sm:$0xff]  ;;  %v990_v62 = vld [vmem:[#allocation5 + $0x8c8] sm:$0xff] }
 0x300   : > { %v7244_v3 = vpop.f32.mrf.mxu1  ;;  %3037 = vmatpush.msra.mxu2 %v1010_v36  ;;  %v643_v36 = vld [vmem:[%s6193_s17 + $0x9f0] sm:$0xff]  ;;  %2976 = vmatpush.msra.mxu1 %v990_v62 }
 0x301   : > { %v2598_v40 = vadd.f32 %v7190_v20, %v2533_v5  ;;  %v5644_v20 = vpack.i.bf16 %v609_v28, %v641_v35  ;;  %v1019_v62 = vld [vmem:[#allocation5 + $0x9b0] sm:$0xff] }
 0x302   : > { %3038 = vmatpush.msra.mxu2 %v1009_v42 }
 0x303   : > { %v7254_v61 = vadd.f32 %v7199_v22, %v2598_v40  ;;  %4768 = vmatmul.lmr.bf16.gmra.16.mxu2  ;;  %4655 = vmatmul.lmr.bf16.gmra.16.mxu1  ;;  %v7259_v9 = vpop.f32.mrf.mxu3  ;;  %v1023_v22 = vld [vmem:[#allocation5 + $0x9d0] sm:$0xff]  ;;  %v7266_v10 = vpop.trf.xlu1 }
 0x304   : > { %3039 = vmatpush.msra.mxu2 %v1008_v34  ;;  %3105 = vmatpush.msra.mxu3 %v1023_v22  ;;  %v7268_v53 = vpop.f32.mrf.mxu0  ;;  %v5564_v16 = vunpack.i.h.bf16 %v7266_v10  ;;  %v5648_v34 = vpack.i.bf16 %v611_v60, %v643_v36  ;;  %v1004_v22 = vld [vmem:[#allocation5 + $0x938] sm:$0xff]  ;;  %v659_v60 = vld [vmem:[%s6193_s17 + $0xa70] sm:$0xff] }
 0x305   : > { %5645 = vxpose.xlu2.b32.cont [13/16] %v5644_v20, 128  ;;  %v644_v20 = vld [vmem:[%s6193_s17 + $0x9f8] sm:$0xff] }
 0x306   : > { %v2535_v1 = vpop.f32.mrf.mxu2  ;;  %4888 = vmatmul.lmr.bf16.gmra.16.mxu3  ;;  %3040 = vmatpush.msra.mxu2 %v1007_v63  ;;  %v612_v63 = vld [vmem:[%s6193_s17 + $0x8f8] sm:$0xff] }
 0x307   : > { %v2536_v7 = vadd.f32 %v2535_v1, %v2471_v52  ;;  %2933 = vmatmul.f32.gmra.mxu0 %v5564_v16  ;;  %v989_v52 = vld [vmem:[#allocation5 + $0x8c0] sm:$0xff]  ;;  %v1020_v16 = vld [vmem:[#allocation5 + $0x9b8] sm:$0xff] }
 0x308   : > { %v7261_v23 = vpop.f32.mrf.mxu1  ;;  %3041 = vmatpush.msra.mxu2 %v1006_v4  ;;  %2977 = vmatpush.msra.mxu1 %v989_v52  ;;  %v655_v52 = vld [vmem:[%s6193_s17 + $0xa50] sm:$0xff] }
 0x309   : > { %v2601_v8 = vadd.f32 %v7208_v21, %v2536_v7  ;;  %v2474_v21 = vadd.f32 %v7192_v15, %v6963_v24 }
 0x30a   : > { %3042 = vmatpush.msra.mxu2 %v1005_v59  ;;  %v658_v59 = vld [vmem:[%s6193_s17 + $0xa68] sm:$0xff] }
 0x30b   : > { %v7271_v32 = vadd.f32 %v7217_v50, %v2601_v8  ;;  %4769 = vmatmul.lmr.bf16.gmra.16.mxu2  ;;  %4656 = vmatmul.lmr.bf16.gmra.16.mxu1  ;;  %v7276_v27 = vpop.f32.mrf.mxu3  ;;  %v1022_v50 = vld [vmem:[#allocation5 + $0x9c8] sm:$0xff]  ;;  %v7283_v5 = vpop.trf.xlu1  ;;  %v5650_v8 = vpack.i.bf16 %v612_v63, %v644_v20  ;;  %v656_v63 = vld [vmem:[%s6193_s17 + $0xa58] sm:$0xff] }
 0x30c   : > { %3106 = vmatpush.msra.mxu3 %v1022_v50  ;;  %v7285_v42 = vpop.f32.mrf.mxu0  ;;  %v5569_v15 = vunpack.i.h.bf16 %v7283_v5  ;;  %3043 = vmatpush.msra.mxu2 %v1004_v22  ;;  %v660_v50 = vld [vmem:[%s6193_s17 + $0xa78] sm:$0xff]  ;;  %v1018_v22 = vld [vmem:[#allocation5 + $0x9a8] sm:$0xff] }
 0x30d   : > { %5647 = vxpose.xlu2.b32.cont [14/16] %v5646_v33, 128  ;;  %v988_v33 = vld [vmem:[#allocation5 + $0x8b8] sm:$0xff]  ;;  %4549 = vmatpush.lsf.msrb.mxu0 %v660_v50 }
 0x30e   : > { %v2538_v25 = vpop.f32.mrf.mxu2  ;;  %4889 = vmatmul.lmr.bf16.gmra.16.mxu3  ;;  %2978 = vmatpush.msra.mxu1 %v988_v33  ;;  %v984_v50 = vld [vmem:[#allocation5 + $0x898] sm:$0xff] }
 0x30f   : > { %v2539_v26 = vadd.f32 %v2538_v25, %v2474_v21  ;;  %2936 = vmatmul.f32.gmra.mxu0 %v5569_v15 }
 0x310   : > { %v7278_v37 = vpop.f32.mrf.mxu1  ;;  %4550 = vmatpush.lsf.msrb.mxu0 %v659_v60 }
 0x311   : > { %v2604_v38 = vadd.f32 %v7225_v18, %v2539_v26  ;;  %v2477_v18 = vadd.f32 %v7210_v56, %v6986_v49  ;;  %v1003_v26 = vld [vmem:[#allocation5 + $0x930] sm:$0xff] }
 0x312   : > { %3044 = vmatpush.msra.mxu2 %v1003_v26  ;;  %4551 = vmatpush.lsf.msrb.mxu0 %v658_v59  ;;  %v1001_v26 = vld [vmem:[#allocation5 + $0x920] sm:$0xff]  ;;  %v651_v59 = vld [vmem:[%s6193_s17 + $0xa30] sm:$0xff] }
 0x313   : > { %v7288_v24 = vadd.f32 %v7234_v55, %v2604_v38  ;;  %4770 = vmatmul.lmr.bf16.gmra.16.mxu2  ;;  %4657 = vmatmul.lmr.bf16.gmra.16.mxu1  ;;  %v7293_v35 = vpop.f32.mrf.mxu3  ;;  %v1021_v55 = vld [vmem:[#allocation5 + $0x9c0] sm:$0xff]  ;;  %v7300_v1 = vpop.trf.xlu1 }
 0x314   : > { %3107 = vmatpush.msra.mxu3 %v1021_v55  ;;  %v7302_v7 = vpop.f32.mrf.mxu0  ;;  %v5574_v56 = vunpack.i.h.bf16 %v7300_v1 }
 0x315   : > { %5649 = vxpose.xlu2.b32.cont [15/16] %v5648_v34, 128 }
 0x316   : > { %v2541_v40 = vpop.f32.mrf.mxu2  ;;  %4890 = vmatmul.lmr.bf16.gmra.16.mxu3 }
 0x317   : > { %v2542_v28 = vadd.f32 %v2541_v40, %v2477_v18  ;;  %2939 = vmatmul.f32.gmra.mxu0 %v5574_v56  ;;  %3108 = vmatpush.msra.mxu3 %v1020_v16  ;;  %v987_v18 = vld [vmem:[#allocation5 + $0x8b0] sm:$0xff]  ;;  %v985_v16 = vld [vmem:[#allocation5 + $0x8a0] sm:$0xff] }
 0x318   : > { %v7295_v11 = vpop.f32.mrf.mxu1  ;;  %2979 = vmatpush.msra.mxu1 %v987_v18 }
 0x319   : > { %v2607_v44 = vadd.f32 %v7242_v12, %v2542_v28  ;;  %v2480_v12 = vadd.f32 %v7227_v2, %v7013_v48  ;;  %3109 = vmatpush.msra.mxu3 %v1019_v62  ;;  %v1017_v62 = vld [vmem:[#allocation5 + $0x9a0] sm:$0xff] }
 0x31b   : > { %v7305_v49 = vadd.f32 %v7251_v14, %v2607_v44  ;;  %4771 = vmatmul.lmr.bf16.gmra.16.mxu2  ;;  %4658 = vmatmul.lmr.bf16.gmra.16.mxu1  ;;  %v7310_v51 = vpop.f32.mrf.mxu3  ;;  %v7315_v21 = vpop.trf.xlu1  ;;  %v1002_v44 = vld [vmem:[#allocation5 + $0x928] sm:$0xff] }
 0x31c   : > { %v7317_v25 = vpop.f32.mrf.mxu0  ;;  %v5579_v2 = vunpack.i.h.bf16 %v7315_v21  ;;  %3045 = vmatpush.msra.mxu2 %v1002_v44  ;;  %3110 = vmatpush.msra.mxu3 %v1018_v22  ;;  %v648_v22 = vld [vmem:[%s6193_s17 + $0xa18] sm:$0xff] }
 0x31d   : > { %5651 = vxpose.xlu2.b32.end [16/16] %v5650_v8, 128 }
 0x31e   : > { %v2544_v45 = vpop.f32.mrf.mxu2  ;;  %4891 = vmatmul.lmr.bf16.gmra.16.mxu3  ;;  %3046 = vmatpush.msra.mxu2 %v1001_v26 }
 0x31f   : > { %v2545_v17 = vadd.f32 %v2544_v45, %v2480_v12  ;;  %2942 = vmatmul.f32.gmra.mxu0 %v5579_v2  ;;  %v986_v12 = vld [vmem:[#allocation5 + $0x8a8] sm:$0xff]  ;;  %3111 = vmatpush.msra.mxu3 %v1017_v62  ;;  %v1044_v62 = vld [vmem:[#allocation5 + $0xa78] sm:$0xff] }
 0x320   : > { %v7312_v14 = vpop.f32.mrf.mxu1  ;;  %v654_v45 = vld [vmem:[%s6193_s17 + $0xa48] sm:$0xff]  ;;  %2980 = vmatpush.msra.mxu1 %v986_v12  ;;  %v1016_v12 = vld [vmem:[#allocation5 + $0x998] sm:$0xff] }
 0x321   : > { %v2610_v4 = vadd.f32 %v7259_v9, %v2545_v17  ;;  %v2483_v9 = vadd.f32 %v7244_v3, %v7042_v6  ;;  %v657_v3 = vld [vmem:[%s6193_s17 + $0xa60] sm:$0xff]  ;;  %3112 = vmatpush.msra.mxu3 %v1016_v12  ;;  %v1040_v12 = vld [vmem:[#allocation5 + $0xa58] sm:$0xff] }
 0x322   : > { %4552 = vmatpush.lsf.msrb.mxu0 %v657_v3  ;;  %2981 = vmatpush.msra.mxu1 %v985_v16  ;;  %v647_v16 = vld [vmem:[%s6193_s17 + $0xa10] sm:$0xff] }
 0x323   : > { %v7320_v48 = vadd.f32 %v7268_v53, %v2610_v4  ;;  %4772 = vmatmul.lmr.bf16.gmra.16.mxu2  ;;  %4659 = vmatmul.lmr.bf16.gmra.16.mxu1  ;;  %v7327_v53 = vpop.f32.mrf.mxu3  ;;  %v7333_v40 = vpop.trf.xlu1  ;;  %v653_v4 = vld [vmem:[%s6193_s17 + $0xa40] sm:$0xff] }
 0x324   : > { %v7335_v6 = vpop.f32.mrf.mxu0  ;;  %v5584_v55 = vunpack.i.h.bf16 %v7333_v40  ;;  %4553 = vmatpush.lsf.msrb.mxu0 %v656_v63  ;;  %2982 = vmatpush.msra.mxu1 %v984_v50 }
 0x326   : > { %v2547_v38 = vpop.f32.mrf.mxu2  ;;  %4892 = vmatmul.lmr.bf16.gmra.16.mxu3  ;;  %4554 = vmatpush.lsf.msrb.mxu0 %v655_v52  ;;  %v649_v52 = vld [vmem:[%s6193_s17 + $0xa20] sm:$0xff] }
 0x327   : > { %v2548_v36 = vadd.f32 %v2547_v38, %v2483_v9  ;;  %2945 = vmatmul.f32.gmra.mxu0 %v5584_v55  ;;  %v652_v9 = vld [vmem:[%s6193_s17 + $0xa38] sm:$0xff] }
 0x328   : > { %v7329_v15 = vpop.f32.mrf.mxu1  ;;  %4555 = vmatpush.lsf.msrb.mxu0 %v654_v45 }
 0x329   : > { %v2613_v34 = vadd.f32 %v7276_v27, %v2548_v36  ;;  %v2486_v27 = vadd.f32 %v7261_v23, %v7069_v41 }
 0x32a   : > { %4556 = vmatpush.lsf.msrb.mxu0 %v653_v4 }
 0x32b   : > { %v7339_v28 = vadd.f32 %v7285_v42, %v2613_v34  ;;  %4773 = vmatmul.lmr.bf16.gmra.16.mxu2  ;;  %4660 = vmatmul.lmr.bf16.gmra.16.mxu1  ;;  %v7346_v42 = vpop.f32.mrf.mxu3  ;;  %v7352_v41 = vpop.trf.xlu1 }
 0x32c   : > { %v7354_v23 = vpop.f32.mrf.mxu0  ;;  %v5589_v2 = vunpack.i.h.bf16 %v7352_v41  ;;  %4557 = vmatpush.lsf.msrb.mxu0 %v652_v9  ;;  %v999_v9 = vld [vmem:[#allocation5 + $0x910] sm:$0xff] }
 0x32e   : > { %v2550_v20 = vpop.f32.mrf.mxu2  ;;  %4893 = vmatmul.lmr.bf16.gmra.16.mxu3  ;;  %4558 = vmatpush.lsf.msrb.mxu0 %v651_v59 }
 0x32f   : > { %v2551_v56 = vadd.f32 %v2550_v20, %v2486_v27  ;;  %2948 = vmatmul.f32.gmra.mxu0 %v5589_v2  ;;  %v981_v27 = vld [vmem:[#allocation5 + $0x880] sm:$0xff]  ;;  %v1000_v20 = vld [vmem:[#allocation5 + $0x918] sm:$0xff] }
 0x330   : > { %v7348_v8 = vpop.f32.mrf.mxu1  ;;  %3047 = vmatpush.msra.mxu2 %v1000_v20 }
 0x331   : > { %v2616_v17 = vadd.f32 %v7293_v35, %v2551_v56  ;;  %v2489_v35 = vadd.f32 %v7278_v37, %v7097_v39  ;;  %v982_v39 = vld [vmem:[#allocation5 + $0x888] sm:$0xff] }
 0x332   : > { %v650_v37 = vld [vmem:[%s6193_s17 + $0xa28] sm:$0xff]  ;;  %3048 = vmatpush.msra.mxu2 %v999_v9  ;;  %v1039_v9 = vld [vmem:[#allocation5 + $0xa50] sm:$0xff] }
 0x333   : > { %v7358_v33 = vadd.f32 %v7302_v7, %v2616_v17  ;;  %4774 = vmatmul.lmr.bf16.gmra.16.mxu2  ;;  %4661 = vmatmul.lmr.bf16.gmra.16.mxu1  ;;  %v983_v7 = vld [vmem:[#allocation5 + $0x890] sm:$0xff]  ;;  %v7371_v3 = vpop.trf.xlu1 }
 0x334   : > { %v7364_v36 = vpop.f32.mrf.mxu3  ;;  %2983 = vmatpush.msra.mxu1 %v983_v7  ;;  %v7373_v55 = vpop.f32.mrf.mxu0  ;;  %v5594_v63 = vunpack.i.h.bf16 %v7371_v3  ;;  %4559 = vmatpush.lsf.msrb.mxu0 %v650_v37 }
 0x336   : > { %v2553_v38 = vpop.f32.mrf.mxu2  ;;  %4894 = vmatmul.lmr.bf16.gmra.16.mxu3  ;;  %2984 = vmatpush.msra.mxu1 %v982_v39 }
 0x337   : > { %v2554_v60 = vadd.f32 %v2553_v38, %v2489_v35  ;;  %2951 = vmatmul.f32.gmra.mxu0 %v5594_v63  ;;  %v646_v35 = vld [vmem:[%s6193_s17 + $0xa08] sm:$0xff]  ;;  %v645_v38 = vld [vmem:[%s6193_s17 + $0xa00] sm:$0xff] }
 0x338   : > { %v7367_v34 = vpop.f32.mrf.mxu1  ;;  %2985 = vmatpush.msra.mxu1 %v981_v27  ;;  %4560 = vmatpush.lsf.msrb.mxu0 %v649_v52  ;;  %v2498_v52 = vadd.f32 %v7329_v15, %v7154_v31 }
 0x339   : > { %v2619_v18 = vadd.f32 %v7310_v51, %v2554_v60  ;;  %v2492_v51 = vadd.f32 %v7295_v11, %v7120_v54 }
 0x33a   : > { %4561 = vmatpush.lsf.msrb.mxu0 %v648_v22 }
 0x33b   : > { %v7376_v44 = vadd.f32 %v7317_v25, %v2619_v18  ;;  %4775 = vmatmul.lmr.bf16.gmra.16.mxu2  ;;  %4662 = vmatmul.lmr.bf16.gmra.16.mxu1  ;;  %v7391_v4 = vpop.trf.xlu1 }
 0x33c   : > { %v7385_v17 = vpop.f32.mrf.mxu3  ;;  %v7396_v26 = vpop.f32.mrf.mxu0  ;;  %v5599_v50 = vunpack.i.h.bf16 %v7391_v4  ;;  %4562 = vmatpush.lsf.msrb.mxu0 %v647_v16 }
 0x33e   : > { %v2556_v56 = vpop.f32.mrf.mxu2  ;;  %4895 = vmatmul.lmr.bf16.gmra.16.mxu3  ;;  %v7388_v11 = vpop.trf.xlu2  ;;  %4563 = vmatpush.lsf.msrb.mxu0 %v646_v35 }
 0x33f   : > { %v2557_v25 = vadd.f32 %v2556_v56, %v2492_v51  ;;  %2954 = vmatmul.f32.gmra.mxu0 %v5599_v50  ;;  %v1042_v51 = vld [vmem:[#allocation5 + $0xa68] sm:$0xff]  ;;  %v1041_v56 = vld [vmem:[#allocation5 + $0xa60] sm:$0xff] }
 0x340   : > { %v7383_v45 = vpop.f32.mrf.mxu1  ;;  %4564 = vmatpush.lsf.msrb.mxu0 %v645_v38 }
 0x341   : > { %v2622_v54 = vadd.f32 %v7327_v53, %v2557_v25  ;;  %v2495_v53 = vadd.f32 %v7312_v14, %v7137_v43  ;;  %v1043_v43 = vld [vmem:[#allocation5 + $0xa70] sm:$0xff] }
 0x342   : > { %3165 = vmatpush.msra.mxu0 %v1044_v62 }
 0x343   : > { %v7394_v2 = vadd.f32 %v7335_v6, %v2622_v54  ;;  %4776 = vmatmul.lmr.bf16.gmra.16.mxu2  ;;  %4663 = vmatmul.lmr.bf16.gmra.16.mxu1  ;;  %v1015_v6 = vld [vmem:[#allocation5 + $0x990] sm:$0xff]  ;;  %v7410_v14 = vpop.trf.xlu1 }
 0x344   : > { %3113 = vmatpush.msra.mxu3 %v1015_v6  ;;  %v7406_v39 = vpop.f32.mrf.mxu3  ;;  %v7415_v27 = vpop.f32.mrf.mxu0  ;;  %v5604_v20 = vunpack.i.h.bf16 %v7410_v14  ;;  %3166 = vmatpush.msra.mxu0 %v1043_v43  ;;  %v1037_v6 = vld [vmem:[#allocation5 + $0xa40] sm:$0xff] }
 0x345   : > { %v1013_v43 = vld [vmem:[#allocation5 + $0x980] sm:$0xff] }
 0x346   : > { %v2559_v7 = vpop.f32.mrf.mxu2  ;;  %4896 = vmatmul.lmr.bf16.gmra.16.mxu3  ;;  %v7408_v37 = vpop.trf.xlu2  ;;  %4565 = vllmr.16.mxu0 }
 0x347   : > { %v2560_v60 = vadd.f32 %v2559_v7, %v2495_v53  ;;  %3167 = vmatpush.msra.mxu0 %v1042_v51  ;;  %v1038_v7 = vld [vmem:[#allocation5 + $0xa48] sm:$0xff] }
 0x348   : > { %v7403_v59 = vpop.f32.mrf.mxu1  ;;  %2957 = vmatmul.f32.gmra.mxu0 %v5604_v20  ;;  %v1036_v20 = vld [vmem:[#allocation5 + $0xa38] sm:$0xff] }
 0x349   : > { %v2625_v18 = vadd.f32 %v7346_v42, %v2560_v60  ;;  %v998_v42 = vld [vmem:[#allocation5 + $0x908] sm:$0xff]  ;;  %3168 = vmatpush.msra.mxu0 %v1041_v56  ;;  %v997_v60 = vld [vmem:[#allocation5 + $0x900] sm:$0xff] }
 0x34a   : > { %3049 = vmatpush.msra.mxu2 %v998_v42 }
 0x34b   : > { %v7413_v63 = vadd.f32 %v7354_v23, %v2625_v18  ;;  %4777 = vmatmul.lmr.bf16.gmra.16.mxu2  ;;  %4664 = vmatmul.lmr.bf16.gmra.16.mxu1  ;;  %v1014_v23 = vld [vmem:[#allocation5 + $0x988] sm:$0xff]  ;;  %v7427_v31 = vpop.trf.xlu1 }
 0x34c   : > { %3114 = vmatpush.msra.mxu3 %v1014_v23  ;;  %v7423_v50 = vpop.f32.mrf.mxu3  ;;  %3169 = vmatpush.msra.mxu0 %v1040_v12  ;;  %v7432_v53 = vpop.f32.mrf.mxu0  ;;  %v5609_v38 = vunpack.i.h.bf16 %v7427_v31  ;;  %v1034_v12 = vld [vmem:[#allocation5 + $0xa28] sm:$0xff] }
 0x34d   : > { %3050 = vmatpush.msra.mxu2 %v997_v60 }
 0x34e   : > { %v2562_v25 = vpop.f32.mrf.mxu2  ;;  %4897 = vmatmul.lmr.bf16.gmra.16.mxu3  ;;  %v7425_v35 = vpop.trf.xlu2  ;;  %3170 = vmatpush.msra.mxu0 %v1039_v9 }
 0x34f   : > { %v2563_v22 = vadd.f32 %v2562_v25, %v2498_v52  ;;  %3115 = vmatpush.msra.mxu3 %v1013_v43 }
 0x350   : > { %v7420_v54 = vpop.f32.mrf.mxu1  ;;  %3171 = vmatpush.msra.mxu0 %v1038_v7  ;;  %v5661_v7 = vunpack.i.h.bf16 %v7408_v37 }
 0x351   : > { %v2628_v16 = vadd.f32 %v7364_v36, %v2563_v22  ;;  %v2501_v36 = vadd.f32 %v7348_v8, %v7170_v46  ;;  %2960 = vmatmul.f32.gmra.mxu0 %v5609_v38  ;;  %v1035_v46 = vld [vmem:[#allocation5 + $0xa30] sm:$0xff] }
 0x352   : > { %3172 = vmatpush.msra.mxu0 %v1037_v6 }
 0x353   : > { %v7430_v15 = vadd.f32 %v7373_v55, %v2628_v16  ;;  %4778 = vmatmul.lmr.bf16.gmra.16.mxu2  ;;  %4665 = vmatmul.lmr.bf16.gmra.16.mxu1  ;;  %v5656_v55 = vunpack.i.h.bf16 %v7388_v11  ;;  %v7445_v8 = vpop.trf.xlu1  ;;  %v1033_v16 = vld [vmem:[#allocation5 + $0xa20] sm:$0xff] }
 0x354   : > { %v7441_v52 = vpop.f32.mrf.mxu3  ;;  %3173 = vmatpush.msra.mxu0 %v1036_v20  ;;  %v7450_v22 = vpop.f32.mrf.mxu0  ;;  %v5614_v23 = vunpack.i.h.bf16 %v7445_v8 }
 0x356   : > { %v2565_v62 = vpop.f32.mrf.mxu2  ;;  %4898 = vmatmul.lmr.bf16.gmra.16.mxu3  ;;  %v7443_v56 = vpop.trf.xlu2  ;;  %3174 = vmatpush.msra.mxu0 %v1035_v46  ;;  %v1092_v46 = vld [vmem:[#allocation5 + $0xbf8] sm:$0xff] }
 0x357   : > { %v2566_v18 = vadd.f32 %v2565_v62, %v2501_v36 }
 0x358   : > { %v7438_v51 = vpop.f32.mrf.mxu1  ;;  %3175 = vmatpush.msra.mxu0 %v1034_v12 }
 0x359   : > { %v2631_v42 = vadd.f32 %v7385_v17, %v2566_v18  ;;  %v2504_v17 = vadd.f32 %v7367_v34, %v7185_v57  ;;  %2963 = vmatmul.f32.gmra.mxu0 %v5614_v23  ;;  %v1031_v18 = vld [vmem:[#allocation5 + $0xa10] sm:$0xff]  ;;  %v1060_v57 = vld [vmem:[#allocation5 + $0xaf8] sm:$0xff]  ;;  %v5653_v34 = vunpack.i.l.bf16 %v7388_v11  ;;  %v2507_v23 = vadd.f32 %v7383_v45, %v7202_v47  ;;  %v1029_v11 = vld [vmem:[#allocation5 + $0xa00] sm:$0xff] }
 0x35a   : > { %3176 = vmatpush.msra.mxu0 %v1033_v16  ;;  %v1091_v16 = vld [vmem:[#allocation5 + $0xbf0] sm:$0xff]  ;;  %v5658_v45 = vunpack.i.l.bf16 %v7408_v37 }
 0x35b   : > { %v7448_v25 = vadd.f32 %v7396_v26, %v2631_v42  ;;  %4779 = vmatmul.lmr.bf16.gmra.16.mxu2  ;;  %2986 = vmatmul.f32.vlgmr.msra.gmra.mxu1 %v5656_v55  ;;  %v1032_v26 = vld [vmem:[#allocation5 + $0xa18] sm:$0xff]  ;;  %v7464_v55 = vpop.trf.xlu1  ;;  %v1030_v42 = vld [vmem:[#allocation5 + $0xa08] sm:$0xff]  ;;  %v1059_v47 = vld [vmem:[#allocation5 + $0xaf0] sm:$0xff] }
 0x35c   : > { %v7459_v6 = vpop.f32.mrf.mxu3  ;;  %3177 = vmatpush.msra.mxu0 %v1032_v26  ;;  %3230 = vmatpush.msra.mxu1 %v1060_v57  ;;  %v5619_v20 = vunpack.i.h.bf16 %v7464_v55  ;;  %v2510_v57 = vadd.f32 %v7403_v59, %v7220_v29 }
 0x35e   : > { %v2568_v9 = vpop.f32.mrf.mxu2  ;;  %4899 = vmatmul.lmr.bf16.gmra.16.mxu3  ;;  %v7461_v62 = vpop.trf.xlu2  ;;  %3178 = vmatpush.msra.mxu0 %v1031_v18 }
 0x35f   : > { %v2569_v38 = vadd.f32 %v2568_v9, %v2504_v17  ;;  %3231 = vmatpush.msra.mxu1 %v1059_v47 }
 0x360   : > { %v7456_v60 = vpop.f32.mrf.mxu1  ;;  %3179 = vmatpush.msra.mxu0 %v1030_v42  ;;  %v1090_v42 = vld [vmem:[#allocation5 + $0xbe8] sm:$0xff] }
 0x361   : > { %v2634_v36 = vadd.f32 %v7406_v39, %v2569_v38  ;;  %v7470_v39 = vpop.f32.mrf.mxu0  ;;  %2966 = vmatmul.f32.gmra.mxu0 %v5619_v20  ;;  %v5671_v20 = vunpack.i.h.bf16 %v7443_v56 }
 0x362   : > { %3180 = vmatpush.msra.mxu0 %v1029_v11  ;;  %v1058_v11 = vld [vmem:[#allocation5 + $0xae8] sm:$0xff] }
 0x363   : > { %v7467_v43 = vadd.f32 %v7415_v27, %v2634_v36  ;;  %4780 = vmatmul.lmr.bf16.gmra.16.mxu2  ;;  %2989 = vmatmul.f32.gmra.mxu1 %v5661_v7  ;;  %v5666_v27 = vunpack.i.h.bf16 %v7425_v35 }
 0x364   : > { %3232 = vmatpush.msra.mxu1 %v1058_v11  ;;  %v675_v11 = vld [vmem:[%s6193_s17 + $0xaf0] sm:$0xff] }
 0x366   : > { %v2571_v12 = vpop.f32.mrf.mxu2  ;;  %3116 = vmatmul.f32.vlgmr.msra.gmra.mxu3 %v5653_v34  ;;  %v7480_v26 = vpop.trf.xlu2 }
 0x367   : > { %v2572_v17 = vadd.f32 %v2571_v12, %v2507_v23  ;;  %3360 = vmatpush.msra.mxu3 %v1092_v46  ;;  %v5663_v12 = vunpack.i.l.bf16 %v7425_v35  ;;  %v1089_v35 = vld [vmem:[#allocation5 + $0xbe0] sm:$0xff] }
 0x368   : > { %v7475_v9 = vpop.f32.mrf.mxu1 }
 0x369   : > { %v2637_v38 = vadd.f32 %v7423_v50, %v2572_v17  ;;  %v7478_v7 = vpop.f32.mrf.mxu3  ;;  %3361 = vmatpush.msra.mxu3 %v1091_v16  ;;  %v7486_v18 = vpop.f32.mrf.mxu0  ;;  %4566 = vmatmul.lmr.bf16.vlgmr.msra.gmra.16.mxu0  ;;  %v2513_v17 = vadd.f32 %v7420_v54, %v7237_v19  ;;  %v1057_v54 = vld [vmem:[#allocation5 + $0xae0] sm:$0xff] }
 0x36a   : > { %3233 = vmatpush.msra.mxu1 %v1057_v54  ;;  %v5673_v54 = vunpack.i.l.bf16 %v7461_v62 }
 0x36b   : > { %v7484_v36 = vadd.f32 %v7432_v53, %v2637_v38  ;;  %4781 = vmatmul.lmr.bf16.gmra.16.mxu2  ;;  %2992 = vmatmul.f32.gmra.mxu1 %v5666_v27  ;;  %v5676_v38 = vunpack.i.h.bf16 %v7461_v62 }
 0x36c   : > { %3362 = vmatpush.msra.mxu3 %v1090_v42  ;;  %v2728_v42 = vadd.f32 %v7438_v51, %v7254_v61 }
 0x36e   : > { %v2574_v50 = vpop.f32.mrf.mxu2  ;;  %3119 = vmatmul.f32.gmra.mxu3 %v5658_v45  ;;  %v7496_v23 = vpop.trf.xlu2  ;;  %v1076_v45 = vld [vmem:[#allocation5 + $0xb78] sm:$0xff] }
 0x36f   : > { %v2575_v34 = vadd.f32 %v2574_v50, %v2510_v57  ;;  %3363 = vmatpush.msra.mxu3 %v1089_v35 }
 0x370   : > { %v7491_v46 = vpop.f32.mrf.mxu1 }
 0x371   : > { %v2640_v37 = vadd.f32 %v7441_v52, %v2575_v34  ;;  %v7494_v53 = vpop.f32.mrf.mxu3  ;;  %v7502_v59 = vpop.f32.mrf.mxu0  ;;  %v5541_v52 = vunpack.i.l.bf16 %v7197_v30  ;;  %4567 = vmatmul.lmr.bf16.gmra.16.mxu0  ;;  %v5668_v30 = vunpack.i.l.bf16 %v7443_v56  ;;  %v1075_v34 = vld [vmem:[#allocation5 + $0xb70] sm:$0xff] }
 0x373   : > { %v7500_v29 = vadd.f32 %v7450_v22, %v2640_v37  ;;  %4782 = vmatmul.lmr.bf16.gmra.16.mxu2  ;;  %2995 = vmatmul.f32.gmra.mxu1 %v5671_v20  ;;  %v676_v20 = vld [vmem:[%s6193_s17 + $0xaf8] sm:$0xff]  ;;  %v1074_v37 = vld [vmem:[#allocation5 + $0xb68] sm:$0xff] }
 0x374   : > { %4666 = vmatpush.lsf.msrb.mxu1 %v676_v20  ;;  %v1071_v20 = vld [vmem:[#allocation5 + $0xb50] sm:$0xff] }
 0x376   : > { %v2577_v27 = vpop.f32.mrf.mxu2  ;;  %3122 = vmatmul.f32.gmra.mxu3 %v5663_v12  ;;  %v7513_v19 = vpop.trf.xlu2  ;;  %4667 = vmatpush.lsf.msrb.mxu1 %v675_v11 }
 0x377   : > { %v2578_v16 = vadd.f32 %v2577_v27, %v2513_v17  ;;  %v5681_v17 = vunpack.i.h.bf16 %v7480_v26  ;;  %v1073_v27 = vld [vmem:[#allocation5 + $0xb60] sm:$0xff] }
 0x378   : > { %v7508_v47 = vpop.f32.mrf.mxu1 }
 0x379   : > { %v2643_v22 = vadd.f32 %v7459_v6, %v2578_v16  ;;  %v7511_v57 = vpop.f32.mrf.mxu3  ;;  %v7520_v6 = vpop.f32.mrf.mxu0  ;;  %4568 = vmatmul.lmr.bf16.gmra.16.mxu0  ;;  %v674_v16 = vld [vmem:[%s6193_s17 + $0xae8] sm:$0xff] }
 0x37a   : > { %4668 = vmatpush.lsf.msrb.mxu1 %v674_v16 }
 0x37b   : > { %v7517_v50 = vadd.f32 %v7470_v39, %v2643_v22  ;;  %3051 = vmatmul.f32.vlgmr.msra.gmra.mxu2 %v5541_v52  ;;  %2998 = vmatmul.f32.gmra.mxu1 %v5676_v38  ;;  %v5546_v39 = vunpack.i.l.bf16 %v7215_v13  ;;  %v1088_v52 = vld [vmem:[#allocation5 + $0xbd8] sm:$0xff] }
 0x37c   : > { %3295 = vmatpush.msra.mxu2 %v1076_v45  ;;  %3364 = vmatpush.msra.mxu3 %v1088_v52  ;;  %v1072_v13 = vld [vmem:[#allocation5 + $0xb58] sm:$0xff]  ;;  %v673_v45 = vld [vmem:[%s6193_s17 + $0xae0] sm:$0xff]  ;;  %v670_v52 = vld [vmem:[%s6193_s17 + $0xac8] sm:$0xff] }
 0x37d   : > { %v1056_v22 = vld [vmem:[#allocation5 + $0xad8] sm:$0xff] }
 0x37e   : > { %v2792_v12 = vpop.f32.mrf.mxu2  ;;  %3296 = vmatpush.msra.mxu2 %v1075_v34  ;;  %3125 = vmatmul.f32.gmra.mxu3 %v5668_v30  ;;  %v7533_v35 = vpop.trf.xlu2  ;;  %v672_v34 = vld [vmem:[%s6193_s17 + $0xad8] sm:$0xff] }
 0x37f   : > { %v2793_v56 = vadd.f32 %v2792_v12, %v2728_v42  ;;  %3234 = vmatpush.msra.mxu1 %v1056_v22  ;;  %v2731_v42 = vadd.f32 %v7456_v60, %v7271_v32  ;;  %v5686_v12 = vunpack.i.h.bf16 %v7496_v23 }
 0x380   : > { %v7528_v38 = vpop.f32.mrf.mxu1  ;;  %3297 = vmatpush.msra.mxu2 %v1074_v37  ;;  %v671_v37 = vld [vmem:[%s6193_s17 + $0xad0] sm:$0xff] }
 0x381   : > { %v2858_v61 = vadd.f32 %v7478_v7, %v2793_v56  ;;  %v7531_v51 = vpop.f32.mrf.mxu3  ;;  %v7541_v7 = vpop.f32.mrf.mxu0  ;;  %4669 = vmatpush.lsf.msrb.mxu1 %v673_v45  ;;  %4569 = vmatmul.lmr.bf16.gmra.16.mxu0  ;;  %v1087_v56 = vld [vmem:[#allocation5 + $0xbd0] sm:$0xff]  ;;  %v668_v45 = vld [vmem:[%s6193_s17 + $0xab8] sm:$0xff] }
 0x382   : > { %3298 = vmatpush.msra.mxu2 %v1073_v27  ;;  %3365 = vmatpush.msra.mxu3 %v1087_v56  ;;  %v1055_v27 = vld [vmem:[#allocation5 + $0xad0] sm:$0xff]  ;;  %v1069_v56 = vld [vmem:[#allocation5 + $0xb40] sm:$0xff] }
 0x383   : > { %v7538_v30 = vadd.f32 %v7486_v18, %v2858_v61  ;;  %3054 = vmatmul.f32.gmra.mxu2 %v5546_v39  ;;  %3001 = vmatmul.f32.gmra.mxu1 %v5681_v17  ;;  %v5551_v18 = vunpack.i.l.bf16 %v7232_v0  ;;  %v5678_v0 = vunpack.i.l.bf16 %v7480_v26  ;;  %v669_v61 = vld [vmem:[%s6193_s17 + $0xac0] sm:$0xff] }
 0x384   : > { %3299 = vmatpush.msra.mxu2 %v1072_v13  ;;  %4670 = vmatpush.lsf.msrb.mxu1 %v672_v34  ;;  %v1070_v13 = vld [vmem:[#allocation5 + $0xb48] sm:$0xff]  ;;  %v5691_v34 = vunpack.i.h.bf16 %v7513_v19 }
 0x386   : > { %v2795_v11 = vpop.f32.mrf.mxu2  ;;  %3128 = vmatmul.f32.gmra.mxu3 %v5673_v54  ;;  %3300 = vmatpush.msra.mxu2 %v1071_v20  ;;  %v7553_v17 = vpop.trf.xlu2  ;;  %v667_v20 = vld [vmem:[%s6193_s17 + $0xab0] sm:$0xff] }
 0x387   : > { %v2796_v62 = vadd.f32 %v2795_v11, %v2731_v42  ;;  %4671 = vmatpush.lsf.msrb.mxu1 %v671_v37  ;;  %v1086_v42 = vld [vmem:[#allocation5 + $0xbc8] sm:$0xff] }
 0x388   : > { %v7548_v39 = vpop.f32.mrf.mxu1  ;;  %3301 = vmatpush.msra.mxu2 %v1070_v13  ;;  %3366 = vmatpush.msra.mxu3 %v1086_v42  ;;  %v1085_v13 = vld [vmem:[#allocation5 + $0xbc0] sm:$0xff]  ;;  %v708_v42 = vld [vmem:[%s6193_s17 + $0xbf8] sm:$0xff] }
 0x389   : > { %v2861_v32 = vadd.f32 %v7494_v53, %v2796_v62  ;;  %v7551_v60 = vpop.f32.mrf.mxu3  ;;  %3235 = vmatpush.msra.mxu1 %v1055_v27  ;;  %v7561_v22 = vpop.f32.mrf.mxu0  ;;  %v2734_v53 = vadd.f32 %v7475_v9, %v7288_v24  ;;  %4570 = vmatmul.lmr.bf16.gmra.16.mxu0  ;;  %v1054_v62 = vld [vmem:[#allocation5 + $0xac8] sm:$0xff]  ;;  %v2737_v27 = vadd.f32 %v7491_v46, %v7305_v49 }
 0x38a   : > { %3302 = vmatpush.msra.mxu2 %v1069_v56  ;;  %3367 = vmatpush.msra.mxu3 %v1085_v13  ;;  %v706_v13 = vld [vmem:[%s6193_s17 + $0xbe8] sm:$0xff] }
 0x38b   : > { %v7558_v16 = vadd.f32 %v7502_v59, %v2861_v32  ;;  %3057 = vmatmul.f32.gmra.mxu2 %v5551_v18  ;;  %3004 = vmatmul.f32.gmra.mxu1 %v5686_v12  ;;  %v5556_v59 = vunpack.i.l.bf16 %v7249_v58  ;;  %v5683_v58 = vunpack.i.l.bf16 %v7496_v23  ;;  %v666_v18 = vld [vmem:[%s6193_s17 + $0xaa8] sm:$0xff]  ;;  %v664_v23 = vld [vmem:[%s6193_s17 + $0xa98] sm:$0xff] }
 0x38c   : > { %4672 = vmatpush.lsf.msrb.mxu1 %v670_v52  ;;  %4900 = vmatpush.lsf.msrb.mxu3 %v708_v42 }
 0x38e   : > { %v2798_v54 = vpop.f32.mrf.mxu2  ;;  %3131 = vmatmul.f32.gmra.mxu3 %v5678_v0  ;;  %4673 = vmatpush.lsf.msrb.mxu1 %v669_v61  ;;  %v7574_v11 = vpop.trf.xlu2  ;;  %v5696_v61 = vunpack.i.h.bf16 %v7533_v35 }
 0x38f   : > { %v2799_v26 = vadd.f32 %v2798_v54, %v2734_v53  ;;  %v663_v54 = vld [vmem:[%s6193_s17 + $0xa90] sm:$0xff] }
 0x390   : > { %v7569_v37 = vpop.f32.mrf.mxu1  ;;  %4674 = vmatpush.lsf.msrb.mxu1 %v668_v45 }
 0x391   : > { %v2864_v24 = vadd.f32 %v7511_v57, %v2799_v26  ;;  %v7572_v9 = vpop.f32.mrf.mxu3  ;;  %v7581_v32 = vpop.f32.mrf.mxu0  ;;  %v665_v57 = vld [vmem:[%s6193_s17 + $0xaa0] sm:$0xff]  ;;  %4571 = vmatmul.lmr.bf16.gmra.16.mxu0  ;;  %v5688_v26 = vunpack.i.l.bf16 %v7513_v19  ;;  %v2740_v19 = vadd.f32 %v7508_v47, %v7320_v48 }
 0x392   : > { %4675 = vmatpush.lsf.msrb.mxu1 %v667_v20  ;;  %v1068_v20 = vld [vmem:[#allocation5 + $0xb38] sm:$0xff] }
 0x393   : > { %v7579_v12 = vadd.f32 %v7520_v6, %v2864_v24  ;;  %3060 = vmatmul.f32.gmra.mxu2 %v5556_v59  ;;  %3007 = vmatmul.f32.gmra.mxu1 %v5691_v34  ;;  %v5561_v6 = vunpack.i.l.bf16 %v7266_v10  ;;  %v1053_v10 = vld [vmem:[#allocation5 + $0xac0] sm:$0xff]  ;;  %v692_v59 = vld [vmem:[%s6193_s17 + $0xb78] sm:$0xff] }
 0x394   : > { %3236 = vmatpush.msra.mxu1 %v1054_v62  ;;  %4783 = vmatpush.lsf.msrb.mxu2 %v692_v59  ;;  %v691_v62 = vld [vmem:[%s6193_s17 + $0xb70] sm:$0xff]  ;;  %v705_v59 = vld [vmem:[%s6193_s17 + $0xbe0] sm:$0xff] }
 0x396   : > { %4676 = vmatpush.lsf.msrb.mxu1 %v666_v18  ;;  %v2801_v52 = vpop.f32.mrf.mxu2  ;;  %3134 = vmatmul.f32.gmra.mxu3 %v5683_v58  ;;  %v7594_v45 = vpop.trf.xlu2  ;;  %v661_v58 = vld [vmem:[%s6193_s17 + $0xa80] sm:$0xff]  ;;  %v690_v18 = vld [vmem:[%s6193_s17 + $0xb68] sm:$0xff] }
 0x397   : > { %v2802_v0 = vadd.f32 %v2801_v52, %v2737_v27  ;;  %3303 = vmatpush.msra.mxu2 %v1068_v20  ;;  %v5701_v27 = vunpack.i.h.bf16 %v7553_v17  ;;  %v1084_v52 = vld [vmem:[#allocation5 + $0xbb8] sm:$0xff] }
 0x398   : > { %4677 = vmatpush.lsf.msrb.mxu1 %v665_v57  ;;  %v7589_v53 = vpop.f32.mrf.mxu1  ;;  %v5566_v57 = vunpack.i.l.bf16 %v7283_v5  ;;  %3368 = vmatpush.msra.mxu3 %v1084_v52  ;;  %v1052_v5 = vld [vmem:[#allocation5 + $0xab8] sm:$0xff]  ;;  %v5698_v52 = vunpack.i.l.bf16 %v7553_v17  ;;  %v683_v17 = vld [vmem:[%s6193_s17 + $0xb30] sm:$0xff] }
 0x399   : > { %v2867_v49 = vadd.f32 %v7531_v51, %v2802_v0  ;;  %v7592_v46 = vpop.f32.mrf.mxu3  ;;  %v662_v51 = vld [vmem:[%s6193_s17 + $0xa88] sm:$0xff]  ;;  %v7604_v24 = vpop.f32.mrf.mxu0  ;;  %4572 = vmatmul.lmr.bf16.gmra.16.mxu0  ;;  %4784 = vmatpush.lsf.msrb.mxu2 %v691_v62  ;;  %v5571_v62 = vunpack.i.l.bf16 %v7300_v1  ;;  %v703_v1 = vld [vmem:[%s6193_s17 + $0xbd0] sm:$0xff] }
 0x39a   : > { %4678 = vmatpush.lsf.msrb.mxu1 %v664_v23  ;;  %v707_v23 = vld [vmem:[%s6193_s17 + $0xbf0] sm:$0xff] }
 0x39b   : > { %v7600_v34 = vadd.f32 %v7541_v7, %v2867_v49  ;;  %3063 = vmatmul.f32.gmra.mxu2 %v5561_v6  ;;  %3010 = vmatmul.f32.gmra.mxu1 %v5696_v61  ;;  %v689_v61 = vld [vmem:[%s6193_s17 + $0xb60] sm:$0xff]  ;;  %v5693_v49 = vunpack.i.l.bf16 %v7533_v35  ;;  %v687_v35 = vld [vmem:[%s6193_s17 + $0xb50] sm:$0xff] }
 0x39c   : > { %3237 = vmatpush.msra.mxu1 %v1053_v10  ;;  %4785 = vmatpush.lsf.msrb.mxu2 %v690_v18  ;;  %v1067_v10 = vld [vmem:[#allocation5 + $0xb30] sm:$0xff] }
 0x39d   : > { %4901 = vmatpush.lsf.msrb.mxu3 %v707_v23 }
 0x39e   : > { %4679 = vmatpush.lsf.msrb.mxu1 %v663_v54  ;;  %v2804_v7 = vpop.f32.mrf.mxu2  ;;  %3137 = vmatmul.f32.gmra.mxu3 %v5688_v26  ;;  %v7619_v6 = vpop.trf.xlu2 }
 0x39f   : > { %v2805_v56 = vadd.f32 %v2804_v7, %v2740_v19  ;;  %4786 = vmatpush.lsf.msrb.mxu2 %v689_v61  ;;  %4902 = vmatpush.lsf.msrb.mxu3 %v706_v13  ;;  %v5706_v19 = vunpack.i.h.bf16 %v7574_v11  ;;  %v686_v7 = vld [vmem:[%s6193_s17 + $0xb48] sm:$0xff]  ;;  %v2746_v13 = vadd.f32 %v7548_v39, %v7358_v33 }
 0x3a0   : > { %4680 = vmatpush.lsf.msrb.mxu1 %v662_v51  ;;  %v7614_v0 = vpop.f32.mrf.mxu1  ;;  %v2743_v51 = vadd.f32 %v7528_v38, %v7339_v28  ;;  %v702_v61 = vld [vmem:[%s6193_s17 + $0xbc8] sm:$0xff] }
 0x3a1   : > { %v2870_v48 = vadd.f32 %v7551_v60, %v2805_v56  ;;  %v7617_v47 = vpop.f32.mrf.mxu3  ;;  %v688_v60 = vld [vmem:[%s6193_s17 + $0xb58] sm:$0xff]  ;;  %v7628_v26 = vpop.f32.mrf.mxu0  ;;  %3304 = vmatpush.msra.mxu2 %v1067_v10  ;;  %4573 = vmatmul.lmr.bf16.gmra.16.mxu0  ;;  %v5576_v10 = vunpack.i.l.bf16 %v7315_v21  ;;  %v1050_v33 = vld [vmem:[#allocation5 + $0xaa8] sm:$0xff] }
 0x3a2   : > { %4681 = vmatpush.lsf.msrb.mxu1 %v661_v58  ;;  %4903 = vmatpush.lsf.msrb.mxu3 %v705_v59  ;;  %v1083_v58 = vld [vmem:[#allocation5 + $0xbb0] sm:$0xff]  ;;  %v5711_v59 = vunpack.i.h.bf16 %v7594_v45  ;;  %v700_v21 = vld [vmem:[%s6193_s17 + $0xbb8] sm:$0xff] }
 0x3a3   : > { %4682 = vllmr.16.mxu1  ;;  %v7625_v54 = vadd.f32 %v7561_v22, %v2870_v48  ;;  %3066 = vmatmul.f32.gmra.mxu2 %v5566_v57  ;;  %v704_v22 = vld [vmem:[%s6193_s17 + $0xbd8] sm:$0xff]  ;;  %v1051_v57 = vld [vmem:[#allocation5 + $0xab0] sm:$0xff]  ;;  %v1066_v48 = vld [vmem:[#allocation5 + $0xb28] sm:$0xff] }
 0x3a4   : > { %3238 = vmatpush.msra.mxu1 %v1052_v5  ;;  %4787 = vmatpush.lsf.msrb.mxu2 %v688_v60 }
 0x3a5   : > { %3013 = vmatmul.f32.gmra.mxu1 %v5701_v27  ;;  %3369 = vmatpush.msra.mxu3 %v1083_v58  ;;  %v685_v27 = vld [vmem:[%s6193_s17 + $0xb40] sm:$0xff] }
 0x3a6   : > { %v2807_v20 = vpop.f32.mrf.mxu2  ;;  %3140 = vmatmul.f32.gmra.mxu3 %v5693_v49  ;;  %4788 = vmatpush.lsf.msrb.mxu2 %v687_v35  ;;  %v7643_v56 = vpop.trf.xlu2  ;;  %v682_v35 = vld [vmem:[%s6193_s17 + $0xb28] sm:$0xff]  ;;  %v1049_v58 = vld [vmem:[#allocation5 + $0xaa0] sm:$0xff] }
 0x3a7   : > { %v2808_v42 = vadd.f32 %v2807_v20, %v2743_v51  ;;  %4904 = vmatpush.lsf.msrb.mxu3 %v704_v22  ;;  %3239 = vmatpush.msra.mxu1 %v1051_v57  ;;  %v1082_v51 = vld [vmem:[#allocation5 + $0xba8] sm:$0xff]  ;;  %v699_v57 = vld [vmem:[%s6193_s17 + $0xbb0] sm:$0xff] }
 0x3a8   : > { %v7638_v18 = vpop.f32.mrf.mxu1  ;;  %4789 = vmatpush.lsf.msrb.mxu2 %v686_v7 }
 0x3a9   : > { %v2873_v28 = vadd.f32 %v7572_v9, %v2808_v42  ;;  %v7641_v38 = vpop.f32.mrf.mxu3  ;;  %v684_v9 = vld [vmem:[%s6193_s17 + $0xb38] sm:$0xff]  ;;  %v7652_v5 = vpop.f32.mrf.mxu0  ;;  %4905 = vmatpush.lsf.msrb.mxu3 %v703_v1  ;;  %4574 = vmatmul.lmr.bf16.gmra.16.mxu0 }
 0x3aa   : > { %4790 = vmatpush.lsf.msrb.mxu2 %v685_v27  ;;  %3240 = vmatpush.msra.mxu1 %v1050_v33  ;;  %v2749_v27 = vadd.f32 %v7569_v37, %v7376_v44  ;;  %v1064_v33 = vld [vmem:[#allocation5 + $0xb18] sm:$0xff] }
 0x3ab   : > { %v7649_v23 = vadd.f32 %v7581_v32, %v2873_v28  ;;  %3069 = vmatmul.f32.gmra.mxu2 %v5571_v62  ;;  %v701_v32 = vld [vmem:[%s6193_s17 + $0xbc0] sm:$0xff]  ;;  %4906 = vmatpush.lsf.msrb.mxu3 %v702_v61  ;;  %v5581_v61 = vunpack.i.l.bf16 %v7333_v40 }
 0x3ac   : > { %3305 = vmatpush.msra.mxu2 %v1066_v48  ;;  %v681_v62 = vld [vmem:[%s6193_s17 + $0xb20] sm:$0xff]  ;;  %3241 = vmatpush.msra.mxu1 %v1049_v58 }
 0x3ad   : > { %3016 = vmatmul.f32.gmra.mxu1 %v5706_v19  ;;  %3370 = vmatpush.msra.mxu3 %v1082_v51  ;;  %v5703_v19 = vunpack.i.l.bf16 %v7574_v11  ;;  %v1065_v28 = vld [vmem:[#allocation5 + $0xb20] sm:$0xff]  ;;  %v1048_v11 = vld [vmem:[#allocation5 + $0xa98] sm:$0xff]  ;;  %v1046_v51 = vld [vmem:[#allocation5 + $0xa88] sm:$0xff] }
 0x3ae   : > { %v2810_v49 = vpop.f32.mrf.mxu2  ;;  %3143 = vmatmul.f32.gmra.mxu3 %v5698_v52  ;;  %4791 = vmatpush.lsf.msrb.mxu2 %v684_v9  ;;  %v7667_v42 = vpop.trf.xlu2  ;;  %v679_v52 = vld [vmem:[%s6193_s17 + $0xb10] sm:$0xff]  ;;  %v697_v40 = vld [vmem:[%s6193_s17 + $0xba0] sm:$0xff] }
 0x3af   : > { %v2811_v60 = vadd.f32 %v2810_v49, %v2746_v13  ;;  %4907 = vmatpush.lsf.msrb.mxu3 %v701_v32  ;;  %v5716_v13 = vunpack.i.h.bf16 %v7619_v6  ;;  %v1047_v49 = vld [vmem:[#allocation5 + $0xa90] sm:$0xff]  ;;  %3242 = vmatpush.msra.mxu1 %v1048_v11  ;;  %v694_v11 = vld [vmem:[%s6193_s17 + $0xb88] sm:$0xff] }
 0x3b0   : > { %v7662_v20 = vpop.f32.mrf.mxu1  ;;  %4792 = vmatpush.lsf.msrb.mxu2 %v683_v17  ;;  %v1081_v17 = vld [vmem:[#allocation5 + $0xba0] sm:$0xff] }
 0x3b1   : > { %v2876_v39 = vadd.f32 %v7592_v46, %v2811_v60  ;;  %v7665_v22 = vpop.f32.mrf.mxu3  ;;  %v680_v46 = vld [vmem:[%s6193_s17 + $0xb18] sm:$0xff]  ;;  %v7676_v1 = vpop.f32.mrf.mxu0  ;;  %4908 = vmatpush.lsf.msrb.mxu3 %v700_v21  ;;  %4575 = vmatmul.lmr.bf16.gmra.16.mxu0 }
 0x3b2   : > { %4793 = vmatpush.lsf.msrb.mxu2 %v682_v35  ;;  %3243 = vmatpush.msra.mxu1 %v1047_v49  ;;  %v696_v21 = vld [vmem:[%s6193_s17 + $0xb98] sm:$0xff]  ;;  %v1079_v49 = vld [vmem:[#allocation5 + $0xb90] sm:$0xff] }
 0x3b3   : > { %v7673_v7 = vadd.f32 %v7604_v24, %v2876_v39  ;;  %3072 = vmatmul.f32.gmra.mxu2 %v5576_v10  ;;  %v698_v24 = vld [vmem:[%s6193_s17 + $0xba8] sm:$0xff]  ;;  %4909 = vmatpush.lsf.msrb.mxu3 %v699_v57  ;;  %v1080_v57 = vld [vmem:[#allocation5 + $0xb98] sm:$0xff] }
 0x3b4   : > { %4794 = vmatpush.lsf.msrb.mxu2 %v681_v62  ;;  %v678_v10 = vld [vmem:[%s6193_s17 + $0xb08] sm:$0xff]  ;;  %v2752_v62 = vadd.f32 %v7589_v53, %v7394_v2  ;;  %3244 = vmatpush.msra.mxu1 %v1046_v51 }
 0x3b5   : > { %3019 = vmatmul.f32.gmra.mxu1 %v5711_v59  ;;  %4910 = vmatpush.lsf.msrb.mxu3 %v698_v24  ;;  %v5708_v59 = vunpack.i.l.bf16 %v7594_v45  ;;  %v1045_v45 = vld [vmem:[#allocation5 + $0xa80] sm:$0xff]  ;;  %v5713_v24 = vunpack.i.l.bf16 %v7619_v6 }
 0x3b6   : > { %3306 = vmatpush.msra.mxu2 %v1065_v28  ;;  %v2813_v9 = vpop.f32.mrf.mxu2  ;;  %3146 = vmatmul.f32.gmra.mxu3 %v5703_v19  ;;  %v7690_v60 = vpop.trf.xlu2  ;;  %v5721_v28 = vunpack.i.h.bf16 %v7643_v56 }
 0x3b7   : > { %v2814_v48 = vadd.f32 %v2813_v9, %v2749_v27  ;;  %3371 = vmatpush.msra.mxu3 %v1081_v17  ;;  %3245 = vmatpush.msra.mxu1 %v1045_v45  ;;  %v5726_v17 = vunpack.i.h.bf16 %v7667_v42 }
 0x3b8   : > { %4795 = vmatpush.lsf.msrb.mxu2 %v680_v46  ;;  %v7685_v44 = vpop.f32.mrf.mxu1  ;;  %v5586_v46 = vunpack.i.l.bf16 %v7352_v41  ;;  %v1063_v41 = vld [vmem:[#allocation5 + $0xb10] sm:$0xff] }
 0x3b9   : > { %v2879_v37 = vadd.f32 %v7617_v47, %v2814_v48  ;;  %v7688_v32 = vpop.f32.mrf.mxu3  ;;  %v677_v47 = vld [vmem:[%s6193_s17 + $0xb00] sm:$0xff]  ;;  %v7699_v39 = vpop.f32.mrf.mxu0  ;;  %4911 = vmatpush.lsf.msrb.mxu3 %v697_v40  ;;  %4576 = vmatmul.lmr.bf16.gmra.16.mxu0  ;;  %v2755_v48 = vadd.f32 %v7614_v0, %v7413_v63  ;;  %v1062_v63 = vld [vmem:[#allocation5 + $0xb08] sm:$0xff] }
 0x3ba   : > { %4796 = vmatpush.lsf.msrb.mxu2 %v679_v52  ;;  %v693_v52 = vld [vmem:[%s6193_s17 + $0xb80] sm:$0xff] }
 0x3bb   : > { %v7696_v35 = vadd.f32 %v7628_v26, %v2879_v37  ;;  %3075 = vmatmul.f32.gmra.mxu2 %v5581_v61  ;;  %v695_v26 = vld [vmem:[%s6193_s17 + $0xb90] sm:$0xff]  ;;  %4912 = vmatpush.lsf.msrb.mxu3 %v696_v21 }
 0x3bc   : > { %4797 = vmatpush.lsf.msrb.mxu2 %v678_v10  ;;  %v2758_v10 = vadd.f32 %v7638_v18, %v7430_v15  ;;  %v5723_v15 = vunpack.i.l.bf16 %v7667_v42  ;;  %v5728_v42 = vunpack.i.l.bf16 %v7690_v60 }
 0x3bd   : > { %3022 = vmatmul.f32.gmra.mxu1 %v5716_v13  ;;  %4913 = vmatpush.lsf.msrb.mxu3 %v695_v26  ;;  %v5591_v13 = vunpack.i.l.bf16 %v7371_v3  ;;  %v5718_v3 = vunpack.i.l.bf16 %v7643_v56  ;;  %v1061_v56 = vld [vmem:[#allocation5 + $0xb00] sm:$0xff] }
 0x3be   : > { %3307 = vmatpush.msra.mxu2 %v1064_v33  ;;  %v2816_v19 = vpop.f32.mrf.mxu2  ;;  %3149 = vmatmul.f32.gmra.mxu3 %v5708_v59  ;;  %v1078_v33 = vld [vmem:[#allocation5 + $0xb88] sm:$0xff] }
 0x3bf   : > { %v2817_v58 = vadd.f32 %v2816_v19, %v2752_v62  ;;  %3372 = vmatpush.msra.mxu3 %v1080_v57 }
 0x3c0   : > { %4798 = vmatpush.lsf.msrb.mxu2 %v677_v47  ;;  %v7707_v27 = vpop.f32.mrf.mxu1  ;;  %v5731_v47 = vunpack.i.h.bf16 %v7690_v60 }
 0x3c1   : > { %v7710_v2 = vadd.f32 %v7641_v38, %v2817_v58  ;;  %v2890_v53 = vpop.f32.mrf.mxu3  ;;  %4914 = vmatpush.lsf.msrb.mxu3 %v694_v11  ;;  %v7714_v9 = vpop.f32.mrf.mxu0  ;;  %4577 = vmatmul.lmr.bf16.gmra.16.mxu0  ;;  %v5601_v58 = vunpack.i.l.bf16 %v7410_v14  ;;  %v2764_v11 = vadd.f32 %v7685_v44, %v7467_v43  ;;  %v5606_v14 = vunpack.i.l.bf16 %v7427_v31 }
 0x3c2   : > { %4799 = vllmr.16.mxu2  ;;  %v2767_v60 = vadd.f32 %v7707_v27, %v7484_v36  ;;  %v5611_v43 = vunpack.i.l.bf16 %v7445_v8  ;;  %v5616_v36 = vunpack.i.l.bf16 %v7464_v55 }
 0x3c3   : > { %3078 = vmatmul.f32.gmra.mxu2 %v5586_v46  ;;  %4915 = vmatpush.lsf.msrb.mxu3 %v693_v52 }
 0x3c4   : > { %3308 = vmatpush.msra.mxu2 %v1063_v41 }
 0x3c5   : > { %3025 = vmatmul.f32.gmra.mxu1 %v5721_v28  ;;  %4916 = vllmr.16.mxu3 }
 0x3c6   : > { %v2819_v61 = vpop.f32.mrf.mxu2  ;;  %3152 = vmatmul.f32.gmra.mxu3 %v5713_v24  ;;  %3309 = vmatpush.msra.mxu2 %v1062_v63 }
 0x3c7   : > { %v2820_v38 = vadd.f32 %v2819_v61, %v2755_v48  ;;  %3373 = vmatpush.msra.mxu3 %v1079_v49 }
 0x3c8   : > { %v7721_v37 = vpop.f32.mrf.mxu1  ;;  %3310 = vmatpush.msra.mxu2 %v1061_v56 }
 0x3c9   : > { %v7724_v40 = vadd.f32 %v7665_v22, %v2820_v38  ;;  %v2893_v6 = vpop.f32.mrf.mxu3  ;;  %v7726_v0 = vpop.f32.mrf.mxu0  ;;  %v5596_v22 = vunpack.i.l.bf16 %v7391_v4  ;;  %4578 = vmatmul.lmr.bf16.gmra.16.mxu0  ;;  %3374 = vmatpush.msra.mxu3 %v1078_v33  ;;  %v2761_v4 = vadd.f32 %v7662_v20, %v7448_v25 }
 0x3cb   : > { %3081 = vmatmul.f32.gmra.mxu2 %v5591_v13 }
 0x3cd   : > { %3028 = vmatmul.f32.gmra.mxu1 %v5726_v17  ;;  %v2770_v17 = vadd.f32 %v7721_v37, %v7500_v29 }
 0x3ce   : > { %v2822_v59 = vpop.f32.mrf.mxu2  ;;  %3155 = vmatmul.f32.gmra.mxu3 %v5718_v3 }
 0x3cf   : > { %v2823_v51 = vadd.f32 %v2822_v59, %v2758_v10 }
 0x3d0   : > { %v2772_v21 = vpop.f32.mrf.mxu1 }
 0x3d1   : > { %v7734_v62 = vadd.f32 %v7688_v32, %v2823_v51  ;;  %v2896_v45 = vpop.f32.mrf.mxu3  ;;  %v7736_v19 = vpop.f32.mrf.mxu0  ;;  %4579 = vmatmul.lmr.bf16.gmra.16.mxu0  ;;  %v1077_v32 = vld [vmem:[#allocation5 + $0xb80] sm:$0xff]  ;;  %v2773_v10 = vadd.f32 %v2772_v21, %v7517_v50 }
 0x3d2   : > { %3375 = vmatpush.msra.mxu3 %v1077_v32 }
 0x3d3   : > { %3084 = vmatmul.f32.gmra.mxu2 %v5596_v22 }
 0x3d5   : > { %3031 = vmatmul.f32.gmra.mxu1 %v5731_v47 }
 0x3d6   : > { %v2825_v18 = vpop.f32.mrf.mxu2  ;;  %3158 = vmatmul.f32.gmra.mxu3 %v5723_v15 }
 0x3d7   : > { %v2826_v26 = vadd.f32 %v2825_v18, %v2761_v4 }
 0x3d8   : > { %v2987_v46 = vpop.f32.mrf.mxu1 }
 0x3d9   : > { %v7742_v28 = vadd.f32 %v2890_v53, %v2826_v26  ;;  %v2899_v57 = vpop.f32.mrf.mxu3  ;;  %v7747_v20 = vpop.f32.mrf.mxu0  ;;  %4580 = vmatmul.lmr.bf16.gmra.16.mxu0  ;;  %v2988_v22 = vadd.f32 %v2987_v46, %v7538_v30 }
 0x3db   : > { %3087 = vmatmul.f32.gmra.mxu2 %v5601_v58 }
 0x3dd   : > { %4683 = vmatmul.lmr.bf16.vlgmr.msra.gmra.16.mxu1 }
 0x3de   : > { %v2828_v25 = vpop.f32.mrf.mxu2  ;;  %3161 = vmatmul.f32.gmra.mxu3 %v5728_v42 }
 0x3df   : > { %v2829_v52 = vadd.f32 %v2828_v25, %v2764_v11 }
 0x3e0   : > { %v2990_v41 = vpop.f32.mrf.mxu1 }
 0x3e1   : > { %v7750_v53 = vadd.f32 %v2893_v6, %v2829_v52  ;;  %v2902_v24 = vpop.f32.mrf.mxu3  ;;  %4581 = vmatmul.lmr.bf16.gmra.16.mxu0  ;;  %v7755_v38 = vpop.f32.mrf.mxu0  ;;  %v2991_v21 = vadd.f32 %v2990_v41, %v7558_v16 }
 0x3e3   : > { %3090 = vmatmul.f32.gmra.mxu2 %v5606_v14 }
 0x3e5   : > { %4684 = vmatmul.lmr.bf16.gmra.16.mxu1 }
 0x3e6   : > { %v2831_v48 = vpop.f32.mrf.mxu2  ;;  %4917 = vmatmul.lmr.bf16.vlgmr.msra.gmra.16.mxu3 }
 0x3e7   : > { %v2832_v61 = vadd.f32 %v2831_v48, %v2767_v60 }
 0x3e8   : > { %v2993_v44 = vpop.f32.mrf.mxu1 }
 0x3e9   : > { %v7757_v31 = vadd.f32 %v2896_v45, %v2832_v61  ;;  %v3117_v13 = vpop.f32.mrf.mxu3  ;;  %v7764_v3 = vpop.f32.mrf.mxu0  ;;  %v2994_v46 = vadd.f32 %v2993_v44, %v7579_v12 }
 0x3eb   : > { %3093 = vmatmul.f32.gmra.mxu2 %v5611_v43 }
 0x3ed   : > { %4685 = vmatmul.lmr.bf16.gmra.16.mxu1 }
 0x3ee   : > { %v2834_v49 = vpop.f32.mrf.mxu2  ;;  %4918 = vmatmul.lmr.bf16.gmra.16.mxu3 }
 0x3ef   : > { %v2835_v27 = vadd.f32 %v2834_v49, %v2770_v17 }
 0x3f0   : > { %v2996_v6 = vpop.f32.mrf.mxu1 }
 0x3f1   : > { %v7762_v8 = vadd.f32 %v2899_v57, %v2835_v27  ;;  %v3120_v63 = vpop.f32.mrf.mxu3  ;;  %v7769_v55 = vpop.f32.mrf.mxu0  ;;  %v2997_v14 = vadd.f32 %v2996_v6, %v7600_v34  ;;  %v2950_v34 = vadd.f32 %v7676_v1, %v7724_v40 }
 0x3f3   : > { %3096 = vmatmul.f32.gmra.mxu2 %v5616_v36 }
 0x3f5   : > { %4686 = vmatmul.lmr.bf16.gmra.16.mxu1 }
 0x3f6   : > { %v2837_v59 = vpop.f32.mrf.mxu2  ;;  %4919 = vmatmul.lmr.bf16.gmra.16.mxu3 }
 0x3f7   : > { %v2838_v51 = vadd.f32 %v2837_v59, %v2773_v10 }
 0x3f8   : > { %v2999_v47 = vpop.f32.mrf.mxu1 }
 0x3f9   : > { %v7767_v29 = vadd.f32 %v2902_v24, %v2838_v51  ;;  %v3123_v37 = vpop.f32.mrf.mxu3  ;;  %v7775_v18 = vpop.f32.mrf.mxu0  ;;  %v2947_v24 = vadd.f32 %v7652_v5, %v7710_v2 }
 0x3fb   : > { %4800 = vmatmul.lmr.bf16.vlgmr.msra.gmra.16.mxu2 }
 0x3fd   : > { %4687 = vmatmul.lmr.bf16.gmra.16.mxu1 }
 0x3fe   : > { %v3052_v33 = vpop.f32.mrf.mxu2  ;;  %4920 = vmatmul.lmr.bf16.gmra.16.mxu3 }
 0x3ff   : > { %v3053_v45 = vadd.f32 %v3052_v33, %v2988_v22 }
 0x400   : > { %v3002_v56 = vpop.f32.mrf.mxu1 }
 0x401   : > { %v7772_v15 = vadd.f32 %v3117_v13, %v3053_v45  ;;  %v3126_v50 = vpop.f32.mrf.mxu3  ;;  %v7780_v25 = vpop.f32.mrf.mxu0  ;;  %v3000_v13 = vadd.f32 %v2999_v47, %v7625_v54  ;;  %v2953_v54 = vadd.f32 %v7699_v39, %v7734_v62 }
 0x403   : > { %4801 = vmatmul.lmr.bf16.gmra.16.mxu2 }
 0x405   : > { %4688 = vmatmul.lmr.bf16.gmra.16.mxu1 }
 0x406   : > { %v3055_v4 = vpop.f32.mrf.mxu2  ;;  %4921 = vmatmul.lmr.bf16.gmra.16.mxu3 }
 0x407   : > { %v3056_v26 = vadd.f32 %v3055_v4, %v2991_v21 }
 0x408   : > { %v3005_v58 = vpop.f32.mrf.mxu1 }
 0x409   : > { %v7777_v32 = vadd.f32 %v3120_v63, %v3056_v26  ;;  %v3129_v30 = vpop.f32.mrf.mxu3  ;;  %v7789_v44 = vpop.f32.mrf.mxu0  ;;  %v3003_v63 = vadd.f32 %v3002_v56, %v7649_v23  ;;  %v2956_v23 = vadd.f32 %v7714_v9, %v7742_v28 }
 0x40b   : > { %4802 = vmatmul.lmr.bf16.gmra.16.mxu2 }
 0x40d   : > { %4689 = vmatmul.lmr.bf16.gmra.16.mxu1 }
 0x40e   : > { %v3058_v57 = vpop.f32.mrf.mxu2  ;;  %4922 = vmatmul.lmr.bf16.gmra.16.mxu3 }
 0x40f   : > { %v3059_v42 = vadd.f32 %v3058_v57, %v2994_v46  ;;  %v4081_v57 = vld [vmem:[#allocation8 + $0x78] sm:$0xff] }
 0x410   : > { %v3008_v11 = vpop.f32.mrf.mxu1  ;;  %4221 = vmatpush.msra.mxu0 %v4081_v57 }
 0x411   : > { %v7782_v16 = vadd.f32 %v3123_v37, %v3059_v42  ;;  %v3132_v52 = vpop.f32.mrf.mxu3  ;;  %v7796_v6 = vpop.f32.mrf.mxu0  ;;  %v3006_v37 = vadd.f32 %v3005_v58, %v7673_v7  ;;  %v3009_v21 = vadd.f32 %v3008_v11, %v7696_v35  ;;  %v2959_v7 = vadd.f32 %v7726_v0, %v7750_v53 }
 0x412   : > { %v2962_v35 = vadd.f32 %v7736_v19, %v7757_v31 }
 0x413   : > { %4803 = vmatmul.lmr.bf16.gmra.16.mxu2 }
 0x415   : > { %4690 = vmatmul.lmr.bf16.gmra.16.mxu1 }
 0x416   : > { %v3061_v41 = vpop.f32.mrf.mxu2  ;;  %4923 = vmatmul.lmr.bf16.gmra.16.mxu3 }
 0x417   : > { %v3062_v60 = vadd.f32 %v3061_v41, %v2997_v14 }
 0x418   : > { %v3011_v48 = vpop.f32.mrf.mxu1 }
 0x419   : > { %v7787_v12 = vadd.f32 %v3126_v50, %v3062_v60  ;;  %v3012_v61 = vadd.f32 %v3011_v48, %v2947_v24  ;;  %v3135_v43 = vpop.f32.mrf.mxu3  ;;  %v7804_v33 = vpop.f32.mrf.mxu0  ;;  %v4080_v24 = vld [vmem:[#allocation8 + $0x70] sm:$0xff]  ;;  %v2965_v48 = vadd.f32 %v7747_v20, %v7762_v8 }
 0x41a   : > { %4222 = vmatpush.msra.mxu0 %v4080_v24  ;;  %v4073_v24 = vld [vmem:[#allocation8 + $0x38] sm:$0xff] }
 0x41b   : > { %4804 = vmatmul.lmr.bf16.gmra.16.mxu2 }
 0x41d   : > { %4691 = vmatmul.lmr.bf16.gmra.16.mxu1 }
 0x41e   : > { %v3064_v17 = vpop.f32.mrf.mxu2  ;;  %4924 = vmatmul.lmr.bf16.gmra.16.mxu3 }
 0x41f   : > { %v3065_v49 = vadd.f32 %v3064_v17, %v3000_v13  ;;  %v4079_v17 = vld [vmem:[#allocation8 + $0x68] sm:$0xff] }
 0x420   : > { %4223 = vmatpush.msra.mxu0 %v4079_v17  ;;  %v4070_v17 = vld [vmem:[#allocation8 + $0x20] sm:$0xff] }
 0x421   : > { %v7794_v5 = vadd.f32 %v3129_v30, %v3065_v49  ;;  %v3138_v27 = vpop.f32.mrf.mxu3  ;;  %v7813_v30 = vpop.f32.mrf.mxu0 }
 0x422   : > { %v3014_v36 = vpop.f32.mrf.mxu1 }
 0x423   : > { %v3015_v2 = vadd.f32 %v3014_v36, %v2950_v34  ;;  %4805 = vmatmul.lmr.bf16.gmra.16.mxu2  ;;  %v2968_v36 = vadd.f32 %v7755_v38, %v7767_v29  ;;  %v4077_v38 = vld [vmem:[#allocation8 + $0x58] sm:$0xff] }
 0x425   : > { %4692 = vmatmul.lmr.bf16.gmra.16.mxu1 }
 0x426   : > { %v3067_v10 = vpop.f32.mrf.mxu2  ;;  %4925 = vmatmul.lmr.bf16.gmra.16.mxu3 }
 0x427   : > { %v3068_v59 = vadd.f32 %v3067_v10, %v3003_v63 }
 0x429   : > { %v7801_v1 = vadd.f32 %v3132_v52, %v3068_v59  ;;  %v3141_v47 = vpop.f32.mrf.mxu3  ;;  %v7821_v41 = vpop.f32.mrf.mxu0 }
 0x42a   : > { %v3017_v51 = vpop.f32.mrf.mxu1 }
 0x42b   : > { %v3018_v40 = vadd.f32 %v3017_v51, %v2953_v54  ;;  %4806 = vmatmul.lmr.bf16.gmra.16.mxu2 }
 0x42d   : > { %4693 = vmatmul.lmr.bf16.gmra.16.mxu1 }
 0x42e   : > { %v3070_v22 = vpop.f32.mrf.mxu2  ;;  %4926 = vmatmul.lmr.bf16.gmra.16.mxu3 }
 0x42f   : > { %v3071_v45 = vadd.f32 %v3070_v22, %v3006_v37 }
 0x431   : > { %v7808_v39 = vadd.f32 %v3135_v43, %v3071_v45  ;;  %v3144_v50 = vpop.f32.mrf.mxu3  ;;  %v7827_v34 = vpop.f32.mrf.mxu0 }
 0x432   : > { %v3020_v56 = vpop.f32.mrf.mxu1 }
 0x433   : > { %v3021_v62 = vadd.f32 %v3020_v56, %v2956_v23  ;;  %4807 = vmatmul.lmr.bf16.gmra.16.mxu2 }
 0x435   : > { %4694 = vmatmul.lmr.bf16.gmra.16.mxu1 }
 0x436   : > { %v3073_v4 = vpop.f32.mrf.mxu2  ;;  %4927 = vmatmul.lmr.bf16.gmra.16.mxu3 }
 0x437   : > { %v3074_v26 = vadd.f32 %v3073_v4, %v3009_v21 }
 0x439   : > { %v7815_v9 = vadd.f32 %v3138_v27, %v3074_v26  ;;  %v3147_v46 = vpop.f32.mrf.mxu3  ;;  %v7833_v54 = vpop.f32.mrf.mxu0 }
 0x43a   : > { %v3023_v58 = vpop.f32.mrf.mxu1 }
 0x43b   : > { %v3024_v28 = vadd.f32 %v3023_v58, %v2959_v7  ;;  %4808 = vmatmul.lmr.bf16.gmra.16.mxu2  ;;  %v4076_v58 = vld [vmem:[#allocation8 + $0x50] sm:$0xff] }
 0x43d   : > { %4695 = vmatmul.lmr.bf16.gmra.16.mxu1 }
 0x43e   : > { %v3076_v42 = vpop.f32.mrf.mxu2  ;;  %4928 = vmatmul.lmr.bf16.gmra.16.mxu3 }
 0x43f   : > { %v3077_v11 = vadd.f32 %v3076_v42, %v3012_v61 }
 0x441   : > { %v7819_v0 = vadd.f32 %v3141_v47, %v3077_v11  ;;  %v3150_v14 = vpop.f32.mrf.mxu3  ;;  %v7837_v23 = vpop.f32.mrf.mxu0 }
 0x442   : > { %v3026_v52 = vpop.f32.mrf.mxu1 }
 0x443   : > { %v3027_v53 = vadd.f32 %v3026_v52, %v2962_v35  ;;  %4809 = vmatmul.lmr.bf16.gmra.16.mxu2 }
 0x445   : > { %4696 = vmatmul.lmr.bf16.gmra.16.mxu1 }
 0x446   : > { %v3079_v60 = vpop.f32.mrf.mxu2  ;;  %4929 = vmatmul.lmr.bf16.gmra.16.mxu3 }
 0x447   : > { %v3080_v43 = vadd.f32 %v3079_v60, %v3015_v2  ;;  %v4078_v2 = vld [vmem:[#allocation8 + $0x60] sm:$0xff] }
 0x448   : > { %4224 = vmatpush.msra.mxu0 %v4078_v2  ;;  %v4069_v2 = vld [vmem:[#allocation8 + $0x18] sm:$0xff] }
 0x449   : > { %v7825_v19 = vadd.f32 %v3144_v50, %v3080_v43  ;;  %v3153_v61 = vpop.f32.mrf.mxu3  ;;  %v3218_v26 = vpop.f32.mrf.mxu0  ;;  %v4072_v43 = vld [vmem:[#allocation8 + $0x30] sm:$0xff] }
 0x44a   : > { %v3029_v13 = vpop.f32.mrf.mxu1  ;;  %4225 = vmatpush.msra.mxu0 %v4077_v38 }
 0x44b   : > { %v3030_v31 = vadd.f32 %v3029_v13, %v2965_v48  ;;  %4810 = vmatmul.lmr.bf16.gmra.16.mxu2 }
 0x44c   : > { %4226 = vmatpush.msra.mxu0 %v4076_v58 }
 0x44d   : > { %4697 = vmatmul.lmr.bf16.gmra.16.mxu1 }
 0x44e   : > { %v3082_v49 = vpop.f32.mrf.mxu2  ;;  %4930 = vmatmul.lmr.bf16.gmra.16.mxu3 }
 0x44f   : > { %v3083_v27 = vadd.f32 %v3082_v49, %v3018_v40 }
 0x451   : > { %v7831_v20 = vadd.f32 %v3147_v46, %v3083_v27  ;;  %v3156_v10 = vpop.f32.mrf.mxu3  ;;  %v4075_v46 = vld [vmem:[#allocation8 + $0x48] sm:$0xff]  ;;  %v7849_v52 = vpop.f32.mrf.mxu0 }
 0x452   : > { %v3032_v63 = vpop.f32.mrf.mxu1  ;;  %4227 = vmatpush.msra.mxu0 %v4075_v46 }
 0x453   : > { %v3033_v8 = vadd.f32 %v3032_v63, %v2968_v36  ;;  %4811 = vmatmul.lmr.bf16.gmra.16.mxu2 }
 0x455   : > { %4698 = vmatmul.lmr.bf16.gmra.16.mxu1 }
 0x456   : > { %v3085_v59 = vpop.f32.mrf.mxu2  ;;  %4931 = vmatmul.lmr.bf16.gmra.16.mxu3 }
 0x457   : > { %v3086_v51 = vadd.f32 %v3085_v59, %v3021_v62  ;;  %v4068_v59 = vld [vmem:[#allocation8 + $0x10] sm:$0xff] }
 0x459   : > { %v7835_v37 = vadd.f32 %v3150_v14, %v3086_v51  ;;  %v3159_v22 = vpop.f32.mrf.mxu3  ;;  %v3224_v27 = vpop.f32.mrf.mxu0  ;;  %v3186_v51 = vadd.f32 %v7769_v55, %v7777_v32  ;;  %v7873_v55 = vadd.f32 %v7804_v33, %v7808_v39  ;;  %v7877_v32 = vadd.f32 %v7813_v30, %v7815_v9 }
 0x45a   : > { %v3247_v47 = vpop.f32.mrf.mxu1 }
 0x45b   : > { %4812 = vmatmul.lmr.bf16.gmra.16.mxu2  ;;  %v7894_v30 = vadd.f32 %v7837_v23, %v7835_v37 }
 0x45e   : > { %v3088_v29 = vpop.f32.mrf.mxu2  ;;  %4932 = vmatmul.lmr.bf16.gmra.16.mxu3 }
 0x45f   : > { %v3089_v40 = vadd.f32 %v3088_v29, %v3024_v28  ;;  %v4067_v29 = vld [vmem:[#allocation8 + $0x8] sm:$0xff] }
 0x461   : > { %v7839_v56 = vadd.f32 %v3153_v61, %v3089_v40  ;;  %v3162_v7 = vpop.f32.mrf.mxu3  ;;  %v3183_v61 = vadd.f32 %v7764_v3, %v7772_v15  ;;  %v3189_v3 = vadd.f32 %v7775_v18, %v7782_v16  ;;  %v3192_v15 = vadd.f32 %v7780_v25, %v7787_v12 }
 0x462   : > { %v3250_v45 = vpop.f32.mrf.mxu1  ;;  %v7869_v40 = vadd.f32 %v7796_v6, %v7801_v1  ;;  %v7881_v25 = vadd.f32 %v7821_v41, %v7819_v0  ;;  %v7885_v16 = vadd.f32 %v7827_v34, %v7825_v19  ;;  %v7889_v12 = vadd.f32 %v7833_v54, %v7831_v20 }
 0x463   : > { %4813 = vmatmul.lmr.bf16.gmra.16.mxu2  ;;  %v3248_v49 = vadd.f32 %v3247_v47, %v3183_v61  ;;  %v3195_v47 = vadd.f32 %v7789_v44, %v7794_v5  ;;  %v3251_v44 = vadd.f32 %v3250_v45, %v3186_v51  ;;  %v4066_v5 = vld [vmem:[#allocation8] sm:$0xff]  ;;  %v7897_v9 = vadd.f32 %v3218_v26, %v7839_v56 }
 0x466   : > { %v3091_v50 = vpop.f32.mrf.mxu2 }
 0x467   : > { %v3092_v21 = vadd.f32 %v3091_v50, %v3027_v53  ;;  %v4074_v53 = vld [vmem:[#allocation8 + $0x40] sm:$0xff]  ;;  %v3227_v50 = vpop.f32.mrf.mxu0 }
 0x468   : > { %4228 = vmatpush.msra.mxu0 %v4074_v53 }
 0x469   : > { %v7843_v4 = vadd.f32 %v3156_v10, %v3092_v21  ;;  %v3377_v11 = vpop.f32.mrf.mxu3 }
 0x46a   : > { %v7841_v62 = vpop.f32.mrf.mxu1  ;;  %4229 = vmatpush.msra.mxu0 %v4073_v24 }
 0x46b   : > { %4814 = vmatmul.lmr.bf16.gmra.16.mxu2  ;;  %v7900_v0 = vadd.f32 %v7841_v62, %v3189_v3  ;;  %v7909_v62 = vadd.f32 %v7849_v52, %v7843_v4 }
 0x46c   : > { %4230 = vmatpush.msra.mxu0 %v4072_v43 }
 0x46e   : > { %v3094_v28 = vpop.f32.mrf.mxu2 }
 0x46f   : > { %v3095_v57 = vadd.f32 %v3094_v28, %v3030_v31  ;;  %v4071_v31 = vld [vmem:[#allocation8 + $0x28] sm:$0xff] }
 0x470   : > { %4231 = vmatpush.msra.mxu0 %v4071_v31 }
 0x471   : > { %v7847_v35 = vadd.f32 %v3159_v22, %v3095_v57  ;;  %v3380_v36 = vpop.f32.mrf.mxu3 }
 0x472   : > { %v7845_v42 = vpop.f32.mrf.mxu1  ;;  %4232 = vmatpush.msra.mxu0 %v4070_v17 }
 0x473   : > { %4815 = vmatmul.lmr.bf16.gmra.16.mxu2  ;;  %v3257_v26 = vadd.f32 %v7845_v42, %v3192_v15  ;;  %v7913_v58 = vadd.f32 %v3224_v27, %v7847_v35 }
 0x474   : > { %4233 = vmatpush.msra.mxu0 %v4069_v2 }
 0x476   : > { %v3097_v14 = vpop.f32.mrf.mxu2  ;;  %4234 = vmatpush.msra.mxu0 %v4068_v59 }
 0x477   : > { %v3098_v60 = vadd.f32 %v3097_v14, %v3033_v8 }
 0x478   : > { %4235 = vmatpush.msra.mxu0 %v4067_v29 }
 0x479   : > { %v7853_v13 = vadd.f32 %v3162_v7, %v3098_v60  ;;  %v7905_v45 = vpop.f32.mrf.mxu3 }
 0x47a   : > { %v7851_v48 = vpop.f32.mrf.mxu1  ;;  %4236 = vmatpush.msra.mxu0 %v4066_v5 }
 0x47b   : > { %v7916_v14 = vadd.f32 %v7851_v48, %v3195_v47  ;;  %v7919_v24 = vadd.f32 %v3227_v50, %v7853_v13 }
 0x47e   : > { %v3312_v63 = vpop.f32.mrf.mxu2 }
 0x47f   : > { %v3313_v8 = vadd.f32 %v3312_v63, %v3248_v49 }
 0x481   : > { %v3378_v38 = vadd.f32 %v3377_v11, %v3313_v8 }
 0x482   : > { %v7857_v10 = vpop.f32.mrf.mxu1 }
 0x483   : > { %v3425_v18 = vmax.f32 %v3378_v38, 0.0 }
 0x485   : > { %v3457_v6 = vrot.slane %v3425_v18, 2  ;;  %v3458_v1 = vrot.slane %v3425_v18, 4  ;;  %v3459_v33 = vrot.slane %v3425_v18, 6  ;;  %v3554_v39 = vsel %vm3553_vm0, %v3425_v18, 0.0 }
 0x486   : > { %v3555_v41 = vrot.slane %v3554_v39, 4  ;;  %v3315_v19 = vpop.f32.mrf.mxu2 }
 0x487   : > { %v3561_v34 = vsel %vm3553_vm0, %v3457_v6, 0.0  ;;  %v3568_v20 = vsel %vm3553_vm0, %v3458_v1, 0.0  ;;  %v3575_v54 = vsel %vm3553_vm0, %v3459_v33, 0.0  ;;  %v3316_v22 = vadd.f32 %v3315_v19, %v3251_v44  ;;  %v3386_v6 = vpop.f32.mrf.mxu3 }
 0x488   : > { %v3556_v37 = vadd.f32 %v3555_v41, %v3554_v39  ;;  %v3562_v23 = vrot.slane %v3561_v34, 4  ;;  %v3569_v21 = vrot.slane %v3568_v20, 4  ;;  %v3576_v56 = vrot.slane %v3575_v54, 4 }
 0x489   : > { %v3381_v28 = vadd.f32 %v3380_v36, %v3316_v22  ;;  %v7927_v41 = vadd.f32 %v7857_v10, %v7869_v40 }
 0x48a   : > { %v3265_v7 = vpop.f32.mrf.mxu1  ;;  %v3557_v46 = vrot.slane %v3556_v37, 2  ;;  %v3563_v57 = vadd.f32 %v3562_v23, %v3561_v34  ;;  %v3570_v11 = vadd.f32 %v3569_v21, %v3568_v20  ;;  %v3577_v53 = vadd.f32 %v3576_v56, %v3575_v54 }
 0x48b   : > { %v3426_v60 = vmax.f32 %v3381_v28, 0.0 }
 0x48c   : > { %v3558_v4 = vadd.f32 %v3557_v46, %v3556_v37  ;;  %v3564_v52 = vrot.slane %v3563_v57, 2  ;;  %v3571_v43 = vrot.slane %v3570_v11, 2  ;;  %v3578_v42 = vrot.slane %v3577_v53, 2 }
 0x48d   : > { %v3460_v31 = vrot.slane %v3426_v60, 2  ;;  %v3461_v35 = vrot.slane %v3426_v60, 4  ;;  %v3462_v61 = vrot.slane %v3426_v60, 6  ;;  %v3582_v17 = vsel %vm3553_vm0, %v3426_v60, 0.0 }
 0x48e   : > { %v3559_v49 = vrot.slane %v3558_v4, 1  ;;  %v3565_v36 = vadd.f32 %v3564_v52, %v3563_v57  ;;  %v3572_v27 = vadd.f32 %v3571_v43, %v3570_v11  ;;  %v3579_v63 = vadd.f32 %v3578_v42, %v3577_v53  ;;  %v3318_v48 = vpop.f32.mrf.mxu2 }
 0x48f   : > { %v3583_v2 = vrot.slane %v3582_v17, 4  ;;  %v3589_v13 = vsel %vm3553_vm0, %v3460_v31, 0.0  ;;  %v3596_v8 = vsel %vm3553_vm0, %v3461_v35, 0.0  ;;  %v3603_v59 = vsel %vm3553_vm0, %v3462_v61, 0.0 }
 0x490   : > { %v3560_v51 = vadd.f32 %v3559_v49, %v3558_v4  ;;  %v3566_v38 = vrot.slane %v3565_v36, 1  ;;  %v3573_v3 = vrot.slane %v3572_v27, 1  ;;  %v3580_v15 = vrot.slane %v3579_v63, 1 }
 0x491   : > { %v3584_v29 = vadd.f32 %v3583_v2, %v3582_v17  ;;  %v3590_v18 = vrot.slane %v3589_v13, 4  ;;  %v3597_v44 = vrot.slane %v3596_v8, 4  ;;  %v3604_v5 = vrot.slane %v3603_v59, 4  ;;  %v3389_v2 = vpop.f32.mrf.mxu3 }
 0x492   : > { %v3268_v47 = vpop.f32.mrf.mxu1  ;;  %v3567_v1 = vadd.f32 %v3566_v38, %v3565_v36  ;;  %v3574_v33 = vadd.f32 %v3573_v3, %v3572_v27  ;;  %v3581_v39 = vadd.f32 %v3580_v15, %v3579_v63  ;;  %v4002_v22 = vmul.f32 0.5, %v3560_v51 }
 0x493   : > { %v3585_v19 = vrot.slane %v3584_v29, 2  ;;  %v3591_v34 = vadd.f32 %v3590_v18, %v3589_v13  ;;  %v3598_v20 = vadd.f32 %v3597_v44, %v3596_v8  ;;  %v3605_v54 = vadd.f32 %v3604_v5, %v3603_v59 }
 0x494   : > { %v4003_v50 = vmul.f32 0.5, %v3567_v1  ;;  %v4004_v37 = vmul.f32 0.5, %v3574_v33  ;;  %v3319_v23 = vadd.f32 %v3318_v48, %v7900_v0  ;;  %v7932_v11 = vadd.f32 %v3265_v7, %v7873_v55 }
 0x495   : > { %v3586_v21 = vadd.f32 %v3585_v19, %v3584_v29  ;;  %v3592_v56 = vrot.slane %v3591_v34, 2  ;;  %v3599_v28 = vrot.slane %v3598_v20, 2  ;;  %v3606_v46 = vrot.slane %v3605_v54, 2 }
 0x496   : > { %v4151_v57 = vsel %vm4150_vm1, %v4003_v50, %v4002_v22  ;;  %v3384_v10 = vadd.f32 %v7905_v45, %v3319_v23  ;;  %v3321_v40 = vpop.f32.mrf.mxu2  ;;  %v7935_v53 = vmul.f32 0.5, %v3581_v39  ;;  %v7940_v42 = vadd.f32 %v3268_v47, %v7877_v32 }
 0x497   : > { %v3587_v60 = vrot.slane %v3586_v21, 1  ;;  %v3593_v4 = vadd.f32 %v3592_v56, %v3591_v34  ;;  %v3322_v52 = vadd.f32 %v3321_v40, %v3257_v26  ;;  %v7937_v43 = vadd.f32 %v3599_v28, %v3598_v20 }
 0x498   : > { %v3427_v0 = vmax.f32 %v3384_v10, 0.0  ;;  %v7942_v35 = vadd.f32 %v3606_v46, %v3605_v54  ;;  %v7945_v45 = vsel %vm4152_vm2, %v4004_v37, %v4151_v57 }
 0x499   : > { %v3588_v55 = vadd.f32 %v3587_v60, %v3586_v21  ;;  %v3594_v7 = vrot.slane %v3593_v4, 1  ;;  %v3387_v61 = vadd.f32 %v3386_v6, %v3322_v52  ;;  %v3601_v57 = vrot.slane %v7937_v43, 1 }
 0x49a   : > { %v3271_v31 = vpop.f32.mrf.mxu1  ;;  %v3463_v17 = vrot.slane %v3427_v0, 2  ;;  %v3464_v49 = vrot.slane %v3427_v0, 4  ;;  %v3465_v36 = vrot.slane %v3427_v0, 6  ;;  %v3610_v26 = vsel %vm3553_vm0, %v3427_v0, 0.0 }
 0x49b   : > { %v7948_v27 = vmul.f32 0.5, %v3588_v55  ;;  %v3611_v63 = vrot.slane %v3610_v26, 4  ;;  %v3428_v48 = vmax.f32 %v3387_v61, 0.0  ;;  %v7951_v32 = vadd.f32 %v3271_v31, %v7881_v25 }
 0x49c   : > { %v3617_v13 = vsel %vm3553_vm0, %v3463_v17, 0.0  ;;  %v3624_v8 = vsel %vm3553_vm0, %v3464_v49, 0.0  ;;  %v3631_v59 = vsel %vm3553_vm0, %v3465_v36, 0.0  ;;  %v3595_v51 = vadd.f32 %v3594_v7, %v3593_v4  ;;  %v3392_v36 = vpop.f32.mrf.mxu3 }
 0x49d   : > { %v3612_v38 = vadd.f32 %v3611_v63, %v3610_v26  ;;  %v3618_v3 = vrot.slane %v3617_v13, 4  ;;  %v3625_v15 = vrot.slane %v3624_v8, 4  ;;  %v3632_v47 = vrot.slane %v3631_v59, 4 }
 0x49e   : > { %v3466_v29 = vrot.slane %v3428_v48, 2  ;;  %v3467_v18 = vrot.slane %v3428_v48, 4  ;;  %v3468_v44 = vrot.slane %v3428_v48, 6  ;;  %v3638_v5 = vsel %vm3553_vm0, %v3428_v48, 0.0  ;;  %v3324_v6 = vpop.f32.mrf.mxu2 }
 0x49f   : > { %v3613_v25 = vrot.slane %v3612_v38, 2  ;;  %v3619_v1 = vadd.f32 %v3618_v3, %v3617_v13  ;;  %v3626_v33 = vadd.f32 %v3625_v15, %v3624_v8  ;;  %v3633_v39 = vadd.f32 %v3632_v47, %v3631_v59 }
 0x4a0   : > { %v3639_v19 = vrot.slane %v3638_v5, 4  ;;  %v3645_v34 = vsel %vm3553_vm0, %v3466_v29, 0.0  ;;  %v3652_v20 = vsel %vm3553_vm0, %v3467_v18, 0.0  ;;  %v7960_v54 = vsel %vm3553_vm0, %v3468_v44, 0.0 }
 0x4a1   : > { %v3614_v50 = vadd.f32 %v3613_v25, %v3612_v38  ;;  %v3620_v37 = vrot.slane %v3619_v1, 2  ;;  %v3627_v23 = vrot.slane %v3626_v33, 2  ;;  %v3634_v21 = vrot.slane %v3633_v39, 2 }
 0x4a2   : > { %v3274_v22 = vpop.f32.mrf.mxu1  ;;  %v3640_v56 = vadd.f32 %v3639_v19, %v3638_v5  ;;  %v3646_v28 = vrot.slane %v3645_v34, 4  ;;  %v3653_v46 = vrot.slane %v3652_v20, 4  ;;  %v3660_v31 = vrot.slane %v7960_v54, 4 }
 0x4a3   : > { %v3615_v10 = vrot.slane %v3614_v50, 1  ;;  %v3621_v40 = vadd.f32 %v3620_v37, %v3619_v1  ;;  %v3628_v60 = vadd.f32 %v3627_v23, %v3626_v33  ;;  %v7963_v4 = vadd.f32 %v3634_v21, %v3633_v39 }
 0x4a4   : > { %v3641_v52 = vrot.slane %v3640_v56, 2  ;;  %v7965_v0 = vadd.f32 %v3646_v28, %v3645_v34  ;;  %v3325_v55 = vadd.f32 %v3324_v6, %v7916_v14  ;;  %v7969_v49 = vadd.f32 %v3653_v46, %v3652_v20 }
 0x4a5   : > { %v3616_v7 = vadd.f32 %v3615_v10, %v3614_v50  ;;  %v3622_v61 = vrot.slane %v3621_v40, 1  ;;  %v3629_v17 = vrot.slane %v3628_v60, 1  ;;  %v3636_v26 = vrot.slane %v7963_v4, 1 }
 0x4a6   : > { %v7972_v63 = vadd.f32 %v3641_v52, %v3640_v56  ;;  %v3648_v48 = vrot.slane %v7965_v0, 2  ;;  %v3390_v13 = vadd.f32 %v3389_v2, %v3325_v55  ;;  %v3327_v8 = vpop.f32.mrf.mxu2  ;;  %v7976_v3 = vadd.f32 %v3274_v22, %v7885_v16 }
 0x4a7   : > { %v3623_v59 = vadd.f32 %v3622_v61, %v3621_v40  ;;  %v3630_v38 = vadd.f32 %v3629_v17, %v3628_v60  ;;  %v3602_v14 = vadd.f32 %v3601_v57, %v7937_v43  ;;  %v7979_v15 = vmul.f32 0.5, %v3616_v7  ;;  %v3395_v40 = vpop.f32.mrf.mxu3 }
 0x4a8   : > { %v3429_v47 = vmax.f32 %v3390_v13, 0.0  ;;  %v3608_v29 = vrot.slane %v7942_v35, 1  ;;  %v4007_v18 = vmul.f32 0.5, %v3595_v51  ;;  %v3643_v6 = vrot.slane %v7972_v63, 1 }
 0x4a9   : > { %v7982_v5 = vmul.f32 0.5, %v3623_v59  ;;  %v4008_v2 = vmul.f32 0.5, %v3602_v14  ;;  %v4155_v25 = vsel %vm4154_vm3, %v7935_v53, %v7945_v45  ;;  %v7998_v60 = vmul.f32 0.5, %v3630_v38 }
 0x4aa   : > { %v3277_v44 = vpop.f32.mrf.mxu1  ;;  %v3469_v16 = vrot.slane %v3429_v47, 2  ;;  %v3470_v1 = vrot.slane %v3429_v47, 4  ;;  %v3471_v33 = vrot.slane %v3429_v47, 6  ;;  %v3666_v43 = vsel %vm3553_vm0, %v3429_v47, 0.0 }
 0x4ab   : > { %v3667_v39 = vrot.slane %v3666_v43, 4  ;;  %v3609_v19 = vadd.f32 %v3608_v29, %v7942_v35  ;;  %v4157_v51 = vsel %vm4156_vm4, %v7948_v27, %v4155_v25  ;;  %v3328_v35 = vadd.f32 %v3327_v8, %v7927_v41 }
 0x4ac   : > { %v3673_v34 = vsel %vm3553_vm0, %v3469_v16, 0.0  ;;  %v3680_v20 = vsel %vm3553_vm0, %v3470_v1, 0.0  ;;  %v3687_v22 = vsel %vm3553_vm0, %v3471_v33, 0.0  ;;  %v4159_v53 = vsel %vm4158_vm5, %v4007_v18, %v4157_v51 }
 0x4ad   : > { %v3668_v45 = vadd.f32 %v3667_v39, %v3666_v43  ;;  %v3674_v50 = vrot.slane %v3673_v34, 4  ;;  %v3681_v37 = vrot.slane %v3680_v20, 4  ;;  %v3688_v23 = vrot.slane %v3687_v22, 4 }
 0x4ae   : > { %v4009_v21 = vmul.f32 0.5, %v3609_v19  ;;  %v4161_v56 = vsel %vm4160_vm6, %v4008_v2, %v4159_v53  ;;  %v3330_v27 = vpop.f32.mrf.mxu2  ;;  %v3393_v55 = vadd.f32 %v3392_v36, %v3328_v35  ;;  %v8003_v8 = vadd.f32 %v3277_v44, %v7889_v12 }
 0x4af   : > { %v3669_v28 = vrot.slane %v3668_v45, 2  ;;  %v3675_v46 = vadd.f32 %v3674_v50, %v3673_v34  ;;  %v3682_v57 = vadd.f32 %v3681_v37, %v3680_v20  ;;  %v3689_v10 = vadd.f32 %v3688_v23, %v3687_v22 }
 0x4b0   : > { %v4163_v52 = vsel %vm4162_vm7, %v4009_v21, %v4161_v56  ;;  %v3331_v7 = vadd.f32 %v3330_v27, %v7932_v11  ;;  %v3430_v41 = vmax.f32 %v3393_v55, 0.0  ;;  %v3637_v12 = vadd.f32 %v3636_v26, %v7963_v4 }
 0x4b1   : > { %v3670_v17 = vadd.f32 %v3669_v28, %v3668_v45  ;;  %v3676_v13 = vrot.slane %v3675_v46, 2  ;;  %v3683_v59 = vrot.slane %v3682_v57, 2  ;;  %v3690_v14 = vrot.slane %v3689_v10, 2  ;;  %4237 = vmatmul.f32.vlgmr.msra.gmra.mxu0 %v4163_v52 }
 0x4b2   : > { %v3280_v61 = vpop.f32.mrf.mxu1  ;;  %v3396_v47 = vadd.f32 %v3395_v40, %v3331_v7  ;;  %v3472_v11 = vrot.slane %v3430_v41, 2  ;;  %v3473_v25 = vrot.slane %v3430_v41, 4  ;;  %v3474_v16 = vrot.slane %v3430_v41, 6 }
 0x4b3   : > { %v8006_v29 = vadd.f32 %v3280_v61, %v7894_v30  ;;  %v3671_v38 = vrot.slane %v3670_v17, 1  ;;  %v3677_v18 = vadd.f32 %v3676_v13, %v3675_v46  ;;  %v3684_v2 = vadd.f32 %v3683_v59, %v3682_v57 }
 0x4b4   : > { %v8008_v36 = vadd.f32 %v3690_v14, %v3689_v10  ;;  %v3694_v1 = vsel %vm3553_vm0, %v3430_v41, 0.0  ;;  %v3701_v30 = vsel %vm3553_vm0, %v3472_v11, 0.0  ;;  %v3708_v19 = vsel %vm3553_vm0, %v3473_v25, 0.0 }
 0x4b5   : > { %v3672_v33 = vadd.f32 %v3671_v38, %v3670_v17  ;;  %v3678_v43 = vrot.slane %v3677_v18, 1  ;;  %v3685_v39 = vrot.slane %v3684_v2, 1  ;;  %v3695_v44 = vrot.slane %v3694_v1, 4 }
 0x4b6   : > { %v8017_v51 = vsel %vm3553_vm0, %v3474_v16, 0.0  ;;  %v3692_v22 = vrot.slane %v8008_v36, 1  ;;  %v3702_v53 = vrot.slane %v3701_v30, 4  ;;  %v3709_v37 = vrot.slane %v3708_v19, 4  ;;  %v3333_v13 = vpop.f32.mrf.mxu2 }
 0x4b7   : > { %v3679_v34 = vadd.f32 %v3678_v43, %v3677_v18  ;;  %v3686_v20 = vadd.f32 %v3685_v39, %v3684_v2  ;;  %v8020_v45 = vmul.f32 0.5, %v3672_v33  ;;  %v3696_v50 = vadd.f32 %v3695_v44, %v3694_v1  ;;  %v3398_v2 = vpop.f32.mrf.mxu3 }
 0x4b8   : > { %v3431_v23 = vmax.f32 %v3396_v47, 0.0  ;;  %v8026_v26 = vadd.f32 %v3702_v53, %v3701_v30  ;;  %v3716_v56 = vrot.slane %v8017_v51, 4  ;;  %v3644_v46 = vadd.f32 %v3643_v6, %v7972_v63 }
 0x4b9   : > { %v8022_v21 = vmul.f32 0.5, %v3679_v34  ;;  %v8024_v4 = vmul.f32 0.5, %v3686_v20  ;;  %v3697_v35 = vrot.slane %v3696_v50, 2  ;;  %v8032_v57 = vadd.f32 %v3709_v37, %v3708_v19 }
 0x4ba   : > { %v3475_v27 = vrot.slane %v3431_v23, 2  ;;  %v3476_v28 = vrot.slane %v3431_v23, 4  ;;  %v3477_v10 = vrot.slane %v3431_v23, 6  ;;  %v3722_v40 = vsel %vm3553_vm0, %v3431_v23, 0.0  ;;  %v3283_v16 = vpop.f32.mrf.mxu1 }
 0x4bb   : > { %v3649_v52 = vadd.f32 %v3648_v48, %v7965_v0  ;;  %v3704_v55 = vrot.slane %v8026_v26, 2  ;;  %v3723_v7 = vrot.slane %v3722_v40, 4  ;;  %v3698_v41 = vadd.f32 %v3697_v35, %v3696_v50 }
 0x4bc   : > { %v3729_v61 = vsel %vm3553_vm0, %v3475_v27, 0.0  ;;  %v3736_v17 = vsel %vm3553_vm0, %v3476_v28, 0.0  ;;  %v3743_v63 = vsel %vm3553_vm0, %v3477_v10, 0.0  ;;  %v3655_v18 = vrot.slane %v7969_v49, 2 }
 0x4bd   : > { %v3730_v59 = vrot.slane %v3729_v61, 4  ;;  %v3737_v14 = vrot.slane %v3736_v17, 4  ;;  %v3650_v6 = vrot.slane %v3649_v52, 1  ;;  %v3724_v47 = vadd.f32 %v3723_v7, %v3722_v40 }
 0x4be   : > { %v3744_v38 = vrot.slane %v3743_v63, 4  ;;  %v3661_v25 = vadd.f32 %v3660_v31, %v7960_v54  ;;  %v3656_v43 = vadd.f32 %v3655_v18, %v7969_v49  ;;  %v4013_v39 = vmul.f32 0.5, %v3637_v12 }
 0x4bf   : > { %v3731_v0 = vadd.f32 %v3730_v59, %v3729_v61  ;;  %v3738_v48 = vadd.f32 %v3737_v14, %v3736_v17  ;;  %v3651_v11 = vadd.f32 %v3650_v6, %v3649_v52  ;;  %v3725_v1 = vrot.slane %v3724_v47, 2  ;;  %v3336_v14 = vpop.f32.mrf.mxu2 }
 0x4c0   : > { %v3745_v33 = vadd.f32 %v3744_v38, %v3743_v63  ;;  %v3662_v19 = vrot.slane %v3661_v25, 2  ;;  %v4014_v34 = vmul.f32 0.5, %v3644_v46  ;;  %v3657_v50 = vrot.slane %v3656_v43, 1 }
 0x4c1   : > { %v3732_v44 = vrot.slane %v3731_v0, 2  ;;  %v3739_v30 = vrot.slane %v3738_v48, 2  ;;  %v3726_v20 = vadd.f32 %v3725_v1, %v3724_v47  ;;  %v4015_v37 = vmul.f32 0.5, %v3651_v11 }
 0x4c2   : > { %v3746_v53 = vrot.slane %v3745_v33, 2  ;;  %v3663_v27 = vadd.f32 %v3662_v19, %v3661_v25  ;;  %v4164_v54 = vsel %vm4150_vm1, %v7982_v5, %v7979_v15  ;;  %v3658_v49 = vadd.f32 %v3657_v50, %v3656_v43 }
 0x4c3   : > { %v3733_v23 = vadd.f32 %v3732_v44, %v3731_v0  ;;  %v3740_v35 = vadd.f32 %v3739_v30, %v3738_v48  ;;  %v3727_v31 = vrot.slane %v3726_v20, 1  ;;  %v4165_v12 = vsel %vm4152_vm2, %v7998_v60, %v4164_v54  ;;  %v3401_v0 = vpop.f32.mrf.mxu3 }
 0x4c4   : > { %v8050_v28 = vadd.f32 %v3746_v53, %v3745_v33  ;;  %v3664_v40 = vrot.slane %v3663_v27, 1  ;;  %v4166_v52 = vsel %vm4154_vm3, %v4013_v39, %v4165_v12  ;;  %v3699_v7 = vrot.slane %v3698_v41, 1  ;;  %v3286_v33 = vpop.f32.mrf.mxu1 }
 0x4c5   : > { %v3734_v10 = vrot.slane %v3733_v23, 1  ;;  %v3741_v46 = vrot.slane %v3740_v35, 1  ;;  %v3728_v61 = vadd.f32 %v3727_v31, %v3726_v20  ;;  %v4016_v17 = vmul.f32 0.5, %v3658_v49 }
 0x4c6   : > { %v4167_v59 = vsel %vm4156_vm4, %v4014_v34, %v4166_v52  ;;  %v3665_v5 = vadd.f32 %v3664_v40, %v3663_v27  ;;  %v3748_v47 = vrot.slane %v8050_v28, 1  ;;  %v3334_v18 = vadd.f32 %v3333_v13, %v7940_v42 }
 0x4c7   : > { %v3735_v63 = vadd.f32 %v3734_v10, %v3733_v23  ;;  %v3742_v15 = vadd.f32 %v3741_v46, %v3740_v35  ;;  %v4168_v6 = vsel %vm4158_vm5, %v4015_v37, %v4167_v59  ;;  %v8058_v38 = vmul.f32 0.5, %v3728_v61  ;;  %v3339_v54 = vpop.f32.mrf.mxu2 }
 0x4c8   : > { %v4169_v60 = vsel %vm4160_vm6, %v4016_v17, %v4168_v6  ;;  %v4017_v11 = vmul.f32 0.5, %v3665_v5  ;;  %v8065_v25 = vadd.f32 %v3283_v16, %v7897_v9  ;;  %v3337_v1 = vadd.f32 %v3336_v14, %v7951_v32 }
 0x4c9   : > { %v8062_v48 = vmul.f32 0.5, %v3735_v63  ;;  %v8068_v43 = vmul.f32 0.5, %v3742_v15  ;;  %v3399_v39 = vadd.f32 %v3398_v2, %v3334_v18  ;;  %v3693_v44 = vadd.f32 %v3692_v22, %v8008_v36 }
 0x4ca   : > { %v3700_v30 = vadd.f32 %v3699_v7, %v3698_v41  ;;  %v4170_v42 = vsel %vm4162_vm7, %v4017_v11, %v4169_v60  ;;  %v3402_v13 = vadd.f32 %v3401_v0, %v3337_v1  ;;  %v3705_v19 = vadd.f32 %v3704_v55, %v8026_v26 }
 0x4cb   : > { %v3711_v9 = vrot.slane %v8032_v57, 2  ;;  %4240 = vmatmul.f32.gmra.mxu0 %v4170_v42  ;;  %v3432_v32 = vmax.f32 %v3399_v39, 0.0  ;;  %v8079_v16 = vadd.f32 %v3286_v33, %v7909_v62  ;;  %v3717_v2 = vadd.f32 %v3716_v56, %v8017_v51  ;;  %v3404_v60 = vpop.f32.mrf.mxu3 }
 0x4cc   : > { %v8084_v36 = vmul.f32 0.5, %v3693_v44  ;;  %v3433_v22 = vmax.f32 %v3402_v13, 0.0  ;;  %v3706_v41 = vrot.slane %v3705_v19, 1  ;;  %v8087_v20 = vmul.f32 0.5, %v3700_v30  ;;  %v3289_v44 = vpop.f32.mrf.mxu1 }
 0x4cd   : > { %v3712_v34 = vadd.f32 %v3711_v9, %v8032_v57  ;;  %v3478_v26 = vrot.slane %v3432_v32, 2  ;;  %v3479_v55 = vrot.slane %v3432_v32, 4  ;;  %v3480_v53 = vrot.slane %v3432_v32, 6 }
 0x4ce   : > { %v3750_v50 = vsel %vm3553_vm0, %v3432_v32, 0.0  ;;  %v3481_v62 = vrot.slane %v3433_v22, 2  ;;  %v3482_v23 = vrot.slane %v3433_v22, 4  ;;  %v3483_v35 = vrot.slane %v3433_v22, 6 }
 0x4cf   : > { %v3751_v37 = vrot.slane %v3750_v50, 4  ;;  %v3757_v27 = vsel %vm3553_vm0, %v3478_v26, 0.0  ;;  %v3764_v51 = vsel %vm3553_vm0, %v3479_v55, 0.0  ;;  %v8093_v56 = vsel %vm3553_vm0, %v3480_v53, 0.0 }
 0x4d0   : > { %v3778_v57 = vsel %vm3553_vm0, %v3433_v22, 0.0  ;;  %v3758_v49 = vrot.slane %v3757_v27, 4  ;;  %v3765_v12 = vrot.slane %v3764_v51, 4  ;;  %v4171_v10 = vsel %vm4150_vm1, %v8022_v21, %v8020_v45 }
 0x4d1   : > { %v3752_v31 = vadd.f32 %v3751_v37, %v3750_v50  ;;  %v3779_v46 = vrot.slane %v3778_v57, 4  ;;  %v3785_v40 = vsel %vm3553_vm0, %v3481_v62, 0.0  ;;  %v3792_v52 = vsel %vm3553_vm0, %v3482_v23, 0.0 }
 0x4d2   : > { %v3799_v7 = vsel %vm3553_vm0, %v3483_v35, 0.0  ;;  %v8102_v17 = vadd.f32 %v3758_v49, %v3757_v27  ;;  %v3772_v59 = vrot.slane %v8093_v56, 4  ;;  %v3786_v14 = vrot.slane %v3785_v40, 4  ;;  %v3342_v27 = vpop.f32.mrf.mxu2 }
 0x4d3   : > { %v3753_v61 = vrot.slane %v3752_v31, 2  ;;  %v8105_v63 = vadd.f32 %v3765_v12, %v3764_v51  ;;  %v3780_v15 = vadd.f32 %v3779_v46, %v3778_v57  ;;  %v3793_v5 = vrot.slane %v3792_v52, 4 }
 0x4d4   : > { %v3800_v6 = vrot.slane %v3799_v7, 4  ;;  %v3787_v21 = vadd.f32 %v3786_v14, %v3785_v40  ;;  %v3707_v18 = vadd.f32 %v3706_v41, %v3705_v19  ;;  %v3713_v0 = vrot.slane %v3712_v34, 1 }
 0x4d5   : > { %v8107_v45 = vadd.f32 %v3753_v61, %v3752_v31  ;;  %v3781_v11 = vrot.slane %v3780_v15, 2  ;;  %v3794_v1 = vadd.f32 %v3793_v5, %v3792_v52  ;;  %v3718_v39 = vrot.slane %v3717_v2, 2  ;;  %v3407_v61 = vpop.f32.mrf.mxu3 }
 0x4d6   : > { %v3801_v33 = vadd.f32 %v3800_v6, %v3799_v7  ;;  %v3760_v42 = vrot.slane %v8102_v17, 2  ;;  %v3788_v13 = vrot.slane %v3787_v21, 2  ;;  %v3714_v9 = vadd.f32 %v3713_v0, %v3712_v34 }
 0x4d7   : > { %v3755_v30 = vrot.slane %v8107_v45, 1  ;;  %v3782_v32 = vadd.f32 %v3781_v11, %v3780_v15  ;;  %v3795_v22 = vrot.slane %v3794_v1, 2  ;;  %v3719_v55 = vadd.f32 %v3718_v39, %v3717_v2 }
 0x4d8   : > { %v3802_v26 = vrot.slane %v3801_v33, 2  ;;  %v3789_v53 = vadd.f32 %v3788_v13, %v3787_v21  ;;  %v4023_v50 = vmul.f32 0.5, %v3707_v18  ;;  %v4172_v19 = vsel %vm4152_vm2, %v8024_v4, %v4171_v10  ;;  %v3292_v21 = vpop.f32.mrf.mxu1 }
 0x4d9   : > { %v3340_v41 = vadd.f32 %v3339_v54, %v7976_v3  ;;  %v3783_v37 = vrot.slane %v3782_v32, 1  ;;  %v3796_v62 = vadd.f32 %v3795_v22, %v3794_v1  ;;  %v3720_v35 = vrot.slane %v3719_v55, 1 }
 0x4da   : > { %v8114_v23 = vadd.f32 %v3802_v26, %v3801_v33  ;;  %v3790_v51 = vrot.slane %v3789_v53, 1  ;;  %v4024_v57 = vmul.f32 0.5, %v3714_v9  ;;  %v4173_v34 = vsel %vm4154_vm3, %v8084_v36, %v4172_v19 }
 0x4db   : > { %v3405_v31 = vadd.f32 %v3404_v60, %v3340_v41  ;;  %v3784_v2 = vadd.f32 %v3783_v37, %v3782_v32  ;;  %v3797_v49 = vrot.slane %v3796_v62, 1  ;;  %v3721_v12 = vadd.f32 %v3720_v35, %v3719_v55 }
 0x4dc   : > { %v8119_v46 = vadd.f32 %v3289_v44, %v7913_v58  ;;  %v3791_v4 = vadd.f32 %v3790_v51, %v3789_v53  ;;  %v4174_v3 = vsel %vm4156_vm4, %v8087_v20, %v4173_v34  ;;  %v3343_v10 = vadd.f32 %v3342_v27, %v8003_v8  ;;  %v3345_v34 = vpop.f32.mrf.mxu2 }
 0x4dd   : > { %v3434_v54 = vmax.f32 %v3405_v31, 0.0  ;;  %v3798_v40 = vadd.f32 %v3797_v49, %v3796_v62  ;;  %v3804_v52 = vrot.slane %v8114_v23, 1  ;;  %v4025_v7 = vmul.f32 0.5, %v3721_v12 }
 0x4de   : > { %v4175_v36 = vsel %vm4158_vm5, %v4023_v50, %v4174_v3  ;;  %v8126_v14 = vmul.f32 0.5, %v3784_v2  ;;  %v8129_v6 = vmul.f32 0.5, %v3791_v4  ;;  %v3408_v1 = vadd.f32 %v3407_v61, %v3343_v10  ;;  %v3410_v4 = vpop.f32.mrf.mxu3 }
 0x4df   : > { %v4176_v15 = vsel %vm4160_vm6, %v4024_v57, %v4175_v36  ;;  %v3484_v58 = vrot.slane %v3434_v54, 2  ;;  %v3485_v5 = vrot.slane %v3434_v54, 4  ;;  %v3486_v60 = vrot.slane %v3434_v54, 6 }
 0x4e0   : > { %v4177_v20 = vsel %vm4162_vm7, %v4025_v7, %v4176_v15  ;;  %v3806_v8 = vsel %vm3553_vm0, %v3434_v54, 0.0  ;;  %v8135_v33 = vmul.f32 0.5, %v3798_v40  ;;  %v3435_v22 = vmax.f32 %v3408_v1, 0.0 }
 0x4e1   : > { %4243 = vmatmul.f32.gmra.mxu0 %v4177_v20  ;;  %v3807_v18 = vrot.slane %v3806_v8, 4  ;;  %v3813_v0 = vsel %vm3553_vm0, %v3484_v58, 0.0  ;;  %v3820_v11 = vsel %vm3553_vm0, %v3485_v5, 0.0  ;;  %v8138_v13 = vsel %vm3553_vm0, %v3486_v60, 0.0 }
 0x4e2   : > { %v3814_v39 = vrot.slane %v3813_v0, 4  ;;  %v3821_v44 = vrot.slane %v3820_v11, 4  ;;  %v3828_v32 = vrot.slane %v8138_v13, 4  ;;  %v8142_v26 = vadd.f32 %v3292_v21, %v7919_v24 }
 0x4e3   : > { %v3808_v9 = vadd.f32 %v3807_v18, %v3806_v8  ;;  %v3749_v50 = vadd.f32 %v3748_v47, %v8050_v28  ;;  %v3761_v19 = vadd.f32 %v3760_v42, %v8102_v17  ;;  %v3487_v37 = vrot.slane %v3435_v22, 2 }
 0x4e4   : > { %v8144_v55 = vadd.f32 %v3814_v39, %v3813_v0  ;;  %v8146_v53 = vadd.f32 %v3821_v44, %v3820_v11  ;;  %v3488_v62 = vrot.slane %v3435_v22, 4  ;;  %v3489_v35 = vrot.slane %v3435_v22, 6 }
 0x4e5   : > { %v3809_v41 = vrot.slane %v3808_v9, 2  ;;  %v3834_v27 = vsel %vm3553_vm0, %v3435_v22, 0.0  ;;  %v3756_v24 = vadd.f32 %v3755_v30, %v8107_v45  ;;  %v3762_v51 = vrot.slane %v3761_v19, 1 }
 0x4e6   : > { %v3767_v57 = vrot.slane %v8105_v63, 2  ;;  %v3835_v2 = vrot.slane %v3834_v27, 4  ;;  %v3841_v28 = vsel %vm3553_vm0, %v3487_v37, 0.0  ;;  %v3848_v47 = vsel %vm3553_vm0, %v3488_v62, 0.0 }
 0x4e7   : > { %v3810_v31 = vadd.f32 %v3809_v41, %v3808_v9  ;;  %v3842_v17 = vrot.slane %v3841_v28, 4  ;;  %v3849_v42 = vrot.slane %v3848_v47, 4  ;;  %v3855_v49 = vsel %vm3553_vm0, %v3489_v35, 0.0  ;;  %v3348_v35 = vpop.f32.mrf.mxu2 }
 0x4e8   : > { %v3763_v12 = vadd.f32 %v3762_v51, %v3761_v19  ;;  %v3836_v54 = vadd.f32 %v3835_v2, %v3834_v27  ;;  %v3856_v10 = vrot.slane %v3855_v49, 4  ;;  %v3768_v45 = vadd.f32 %v3767_v57, %v8105_v63 }
 0x4e9   : > { %v3811_v3 = vrot.slane %v3810_v31, 1  ;;  %v3843_v30 = vadd.f32 %v3842_v17, %v3841_v28  ;;  %v3850_v40 = vadd.f32 %v3849_v42, %v3848_v47  ;;  %v3773_v7 = vadd.f32 %v3772_v59, %v8093_v56  ;;  %v3413_v28 = vpop.f32.mrf.mxu3 }
 0x4ea   : > { %v4029_v36 = vmul.f32 0.5, %v3749_v50  ;;  %v3837_v61 = vrot.slane %v3836_v54, 2  ;;  %v3857_v15 = vadd.f32 %v3856_v10, %v3855_v49  ;;  %v3769_v58 = vrot.slane %v3768_v45, 1 }
 0x4eb   : > { %v4030_v5 = vmul.f32 0.5, %v3756_v24  ;;  %v3844_v20 = vrot.slane %v3843_v30, 2  ;;  %v3851_v60 = vrot.slane %v3850_v40, 2  ;;  %v3774_v8 = vrot.slane %v3773_v7, 2 }
 0x4ec   : > { %v4031_v21 = vmul.f32 0.5, %v3763_v12  ;;  %v3838_v18 = vadd.f32 %v3837_v61, %v3836_v54  ;;  %v3858_v0 = vrot.slane %v3857_v15, 2  ;;  %v3770_v11 = vadd.f32 %v3769_v58, %v3768_v45 }
 0x4ed   : > { %v4178_v63 = vsel %vm4150_vm1, %v8062_v48, %v8058_v38  ;;  %v3845_v1 = vadd.f32 %v3844_v20, %v3843_v30  ;;  %v3852_v39 = vadd.f32 %v3851_v60, %v3850_v40  ;;  %v3775_v44 = vadd.f32 %v3774_v8, %v3773_v7 }
 0x4ee   : > { %v4179_v56 = vsel %vm4152_vm2, %v8068_v43, %v4178_v63  ;;  %v3839_v59 = vrot.slane %v3838_v18, 1  ;;  %v8169_v9 = vadd.f32 %v3858_v0, %v3857_v15  ;;  %v4032_v22 = vmul.f32 0.5, %v3770_v11 }
 0x4ef   : > { %v4180_v50 = vsel %vm4154_vm3, %v4029_v36, %v4179_v56  ;;  %v3846_v19 = vrot.slane %v3845_v1, 1  ;;  %v3853_v41 = vrot.slane %v3852_v39, 1  ;;  %v3776_v37 = vrot.slane %v3775_v44, 1  ;;  %v3351_v0 = vpop.f32.mrf.mxu2 }
 0x4f0   : > { %v4181_v62 = vsel %vm4156_vm4, %v4030_v5, %v4180_v50  ;;  %v3816_v38 = vrot.slane %v8144_v55, 2  ;;  %v3840_v48 = vadd.f32 %v3839_v59, %v3838_v18  ;;  %v3346_v24 = vadd.f32 %v3345_v34, %v8006_v29 }
 0x4f1   : > { %v4182_v27 = vsel %vm4158_vm5, %v4031_v21, %v4181_v62  ;;  %v3847_v43 = vadd.f32 %v3846_v19, %v3845_v1  ;;  %v3854_v51 = vadd.f32 %v3853_v41, %v3852_v39  ;;  %v3777_v57 = vadd.f32 %v3776_v37, %v3775_v44  ;;  %v3416_v37 = vpop.f32.mrf.mxu3 }
 0x4f2   : > { %v4183_v2 = vsel %vm4160_vm6, %v4032_v22, %v4182_v27  ;;  %v3860_v47 = vrot.slane %v8169_v9, 1  ;;  %v3411_v17 = vadd.f32 %v3410_v4, %v3346_v24  ;;  %v3349_v42 = vadd.f32 %v3348_v35, %v8065_v25 }
 0x4f3   : > { %v3805_v49 = vadd.f32 %v3804_v52, %v8114_v23  ;;  %v8182_v12 = vmul.f32 0.5, %v3840_v48  ;;  %v8184_v54 = vmul.f32 0.5, %v3847_v43  ;;  %v4033_v29 = vmul.f32 0.5, %v3777_v57 }
 0x4f4   : > { %v3812_v34 = vadd.f32 %v3811_v3, %v3810_v31  ;;  %v3436_v10 = vmax.f32 %v3411_v17, 0.0  ;;  %v3414_v45 = vadd.f32 %v3413_v28, %v3349_v42  ;;  %v3817_v30 = vadd.f32 %v3816_v38, %v8144_v55 }
 0x4f5   : > { %v3823_v40 = vrot.slane %v8146_v53, 2  ;;  %v8188_v7 = vmul.f32 0.5, %v3854_v51  ;;  %v4184_v25 = vsel %vm4162_vm7, %v4033_v29, %v4183_v2  ;;  %v3829_v23 = vadd.f32 %v3828_v32, %v8138_v13 }
 0x4f6   : > { %v8194_v52 = vmul.f32 0.5, %v3805_v49  ;;  %4246 = vmatmul.f32.gmra.mxu0 %v4184_v25  ;;  %v3490_v4 = vrot.slane %v3436_v10, 2  ;;  %v3491_v36 = vrot.slane %v3436_v10, 4  ;;  %v3492_v31 = vrot.slane %v3436_v10, 6 }
 0x4f7   : > { %v3862_v3 = vsel %vm3553_vm0, %v3436_v10, 0.0  ;;  %v3437_v55 = vmax.f32 %v3414_v45, 0.0  ;;  %v3818_v15 = vrot.slane %v3817_v30, 1  ;;  %v4038_v58 = vmul.f32 0.5, %v3812_v34 }
 0x4f8   : > { %v3863_v61 = vrot.slane %v3862_v3, 4  ;;  %v3869_v5 = vsel %vm3553_vm0, %v3490_v4, 0.0  ;;  %v3876_v20 = vsel %vm3553_vm0, %v3491_v36, 0.0  ;;  %v8200_v60 = vsel %vm3553_vm0, %v3492_v31, 0.0 }
 0x4f9   : > { %v3824_v13 = vadd.f32 %v3823_v40, %v8146_v53  ;;  %v3870_v8 = vrot.slane %v3869_v5, 4  ;;  %v3877_v21 = vrot.slane %v3876_v20, 4  ;;  %v3830_v18 = vrot.slane %v3829_v23, 2 }
 0x4fa   : > { %v3864_v32 = vadd.f32 %v3863_v61, %v3862_v3  ;;  %v3493_v11 = vrot.slane %v3437_v55, 2  ;;  %v3494_v63 = vrot.slane %v3437_v55, 4  ;;  %v3495_v1 = vrot.slane %v3437_v55, 6 }
 0x4fb   : > { %v3890_v39 = vsel %vm3553_vm0, %v3437_v55, 0.0  ;;  %v8204_v56 = vadd.f32 %v3870_v8, %v3869_v5  ;;  %v3884_v59 = vrot.slane %v8200_v60, 4  ;;  %v3819_v41 = vadd.f32 %v3818_v15, %v3817_v30  ;;  %v3354_v15 = vpop.f32.mrf.mxu2 }
 0x4fc   : > { %v3865_v44 = vrot.slane %v3864_v32, 2  ;;  %v3891_v22 = vrot.slane %v3890_v39, 4  ;;  %v3897_v50 = vsel %vm3553_vm0, %v3493_v11, 0.0  ;;  %v3904_v53 = vsel %vm3553_vm0, %v3494_v63, 0.0  ;;  %v3419_v11 = vpop.f32.mrf.mxu3 }
 0x4fd   : > { %v3911_v19 = vsel %vm3553_vm0, %v3495_v1, 0.0  ;;  %v8212_v35 = vadd.f32 %v3877_v21, %v3876_v20  ;;  %v3898_v48 = vrot.slane %v3897_v50, 4  ;;  %v3905_v27 = vrot.slane %v3904_v53, 4 }
 0x4fe   : > { %v8210_v62 = vadd.f32 %v3865_v44, %v3864_v32  ;;  %v3892_v38 = vadd.f32 %v3891_v22, %v3890_v39  ;;  %v3912_v24 = vrot.slane %v3911_v19, 4  ;;  %v3825_v43 = vrot.slane %v3824_v13, 1 }
 0x4ff   : > { %v3831_v51 = vadd.f32 %v3830_v18, %v3829_v23  ;;  %v3872_v57 = vrot.slane %v8204_v56, 2  ;;  %v3899_v28 = vadd.f32 %v3898_v48, %v3897_v50  ;;  %v4039_v17 = vmul.f32 0.5, %v3819_v41 }
 0x500   : > { %v3893_v2 = vrot.slane %v3892_v38, 2  ;;  %v3906_v42 = vadd.f32 %v3905_v27, %v3904_v53  ;;  %v3913_v49 = vadd.f32 %v3912_v24, %v3911_v19  ;;  %v3826_v29 = vadd.f32 %v3825_v43, %v3824_v13 }
 0x501   : > { %v3832_v34 = vrot.slane %v3831_v51, 1  ;;  %v3900_v45 = vrot.slane %v3899_v28, 2  ;;  %v4185_v30 = vsel %vm4150_vm1, %v8129_v6, %v8126_v14  ;;  %v3352_v40 = vadd.f32 %v3351_v0, %v8079_v16 }
 0x502   : > { %v3894_v10 = vadd.f32 %v3893_v2, %v3892_v38  ;;  %v3907_v25 = vrot.slane %v3906_v42, 2  ;;  %v3914_v4 = vrot.slane %v3913_v49, 2  ;;  %v4040_v36 = vmul.f32 0.5, %v3826_v29 }
 0x503   : > { %v3833_v23 = vadd.f32 %v3832_v34, %v3831_v51  ;;  %v3901_v3 = vadd.f32 %v3900_v45, %v3899_v28  ;;  %v4186_v61 = vsel %vm4152_vm2, %v8135_v33, %v4185_v30  ;;  %v3417_v55 = vadd.f32 %v3416_v37, %v3352_v40 }
 0x504   : > { %v3895_v31 = vrot.slane %v3894_v10, 1  ;;  %v3867_v5 = vrot.slane %v8210_v62, 1  ;;  %v3908_v20 = vadd.f32 %v3907_v25, %v3906_v42  ;;  %v8222_v13 = vadd.f32 %v3914_v4, %v3913_v49 }
 0x505   : > { %v4187_v14 = vsel %vm4154_vm3, %v8194_v52, %v4186_v61  ;;  %v3902_v6 = vrot.slane %v3901_v3, 1  ;;  %v3438_v8 = vmax.f32 %v3417_v55, 0.0  ;;  %v4041_v18 = vmul.f32 0.5, %v3833_v23 }
 0x506   : > { %v3896_v16 = vadd.f32 %v3895_v31, %v3894_v10  ;;  %v4188_v32 = vsel %vm4156_vm4, %v4038_v58, %v4187_v14  ;;  %v3909_v21 = vrot.slane %v3908_v20, 1  ;;  %v3355_v33 = vadd.f32 %v3354_v15, %v8119_v46 }
 0x507   : > { %v4189_v0 = vsel %vm4158_vm5, %v4039_v17, %v4188_v32  ;;  %v3903_v63 = vadd.f32 %v3902_v6, %v3901_v3  ;;  %v3916_v1 = vrot.slane %v8222_v13, 1  ;;  %v3496_v44 = vrot.slane %v3438_v8, 2 }
 0x508   : > { %v4190_v39 = vsel %vm4160_vm6, %v4040_v36, %v4189_v0  ;;  %v3910_v22 = vadd.f32 %v3909_v21, %v3908_v20  ;;  %v3497_v50 = vrot.slane %v3438_v8, 4  ;;  %v3498_v53 = vrot.slane %v3438_v8, 6 }
 0x509   : > { %v4191_v52 = vsel %vm4162_vm7, %v4041_v18, %v4190_v39  ;;  %v8232_v58 = vmul.f32 0.5, %v3896_v16  ;;  %v3918_v19 = vsel %vm3553_vm0, %v3438_v8, 0.0  ;;  %v3925_v41 = vsel %vm3553_vm0, %v3496_v44, 0.0 }
 0x50a   : > { %4249 = vmatmul.f32.gmra.mxu0 %v4191_v52  ;;  %v3420_v46 = vadd.f32 %v3419_v11, %v3355_v33  ;;  %v8236_v37 = vmul.f32 0.5, %v3903_v63  ;;  %v3919_v38 = vrot.slane %v3918_v19, 4  ;;  %v3926_v48 = vrot.slane %v3925_v41, 4 }
 0x50b   : > { %v3932_v27 = vsel %vm3553_vm0, %v3497_v50, 0.0  ;;  %v8239_v24 = vmul.f32 0.5, %v3910_v22  ;;  %v8242_v51 = vsel %vm3553_vm0, %v3498_v53, 0.0  ;;  %v3861_v49 = vadd.f32 %v3860_v47, %v8169_v9 }
 0x50c   : > { %v3933_v43 = vrot.slane %v3932_v27, 4  ;;  %v3439_v2 = vmax.f32 %v3420_v46, 0.0  ;;  %v3920_v28 = vadd.f32 %v3919_v38, %v3918_v19  ;;  %v8244_v17 = vadd.f32 %v3926_v48, %v3925_v41  ;;  %v3357_v46 = vpop.f32.mrf.mxu2 }
 0x50d   : > { %v3940_v42 = vrot.slane %v8242_v51, 4  ;;  %v3868_v45 = vadd.f32 %v3867_v5, %v8210_v62  ;;  %v3873_v4 = vadd.f32 %v3872_v57, %v8204_v56  ;;  %v3879_v5 = vrot.slane %v8212_v35, 2 }
 0x50e   : > { %v3499_v29 = vrot.slane %v3439_v2, 2  ;;  %v3500_v34 = vrot.slane %v3439_v2, 4  ;;  %v3501_v10 = vrot.slane %v3439_v2, 6  ;;  %v3921_v30 = vrot.slane %v3920_v28, 2 }
 0x50f   : > { %v8251_v40 = vadd.f32 %v3933_v43, %v3932_v27  ;;  %v3946_v25 = vsel %vm3553_vm0, %v3439_v2, 0.0  ;;  %v3928_v47 = vrot.slane %v8244_v17, 2  ;;  %v3874_v15 = vrot.slane %v3873_v4, 1 }
 0x510   : > { %v3947_v23 = vrot.slane %v3946_v25, 4  ;;  %v3953_v36 = vsel %vm3553_vm0, %v3499_v29, 0.0  ;;  %v3960_v31 = vsel %vm3553_vm0, %v3500_v34, 0.0  ;;  %v3967_v9 = vsel %vm3553_vm0, %v3501_v10, 0.0  ;;  %v3422_v34 = vpop.f32.mrf.mxu3 }
 0x511   : > { %v3954_v3 = vrot.slane %v3953_v36, 4  ;;  %v3961_v62 = vrot.slane %v3960_v31, 4  ;;  %v3968_v61 = vrot.slane %v3967_v9, 4  ;;  %v3885_v56 = vadd.f32 %v3884_v59, %v8200_v60 }
 0x512   : > { %v3948_v55 = vadd.f32 %v3947_v23, %v3946_v25  ;;  %v3922_v57 = vadd.f32 %v3921_v30, %v3920_v28  ;;  %v3875_v32 = vadd.f32 %v3874_v15, %v3873_v4  ;;  %v3880_v8 = vadd.f32 %v3879_v5, %v8212_v35 }
 0x513   : > { %v3955_v20 = vadd.f32 %v3954_v3, %v3953_v36  ;;  %v3962_v14 = vadd.f32 %v3961_v62, %v3960_v31  ;;  %v3969_v16 = vadd.f32 %v3968_v61, %v3967_v9  ;;  %v3886_v21 = vrot.slane %v3885_v56, 2 }
 0x514   : > { %v3949_v6 = vrot.slane %v3948_v55, 2  ;;  %v4045_v11 = vmul.f32 0.5, %v3861_v49  ;;  %v3881_v39 = vrot.slane %v3880_v8, 1  ;;  %v4046_v22 = vmul.f32 0.5, %v3868_v45 }
 0x515   : > { %v3956_v18 = vrot.slane %v3955_v20, 2  ;;  %v3963_v0 = vrot.slane %v3962_v14, 2  ;;  %v3970_v33 = vrot.slane %v3969_v16, 2  ;;  %v3887_v44 = vadd.f32 %v3886_v21, %v3885_v56 }
 0x516   : > { %v3950_v63 = vadd.f32 %v3949_v6, %v3948_v55  ;;  %v4047_v59 = vmul.f32 0.5, %v3875_v32  ;;  %v3882_v19 = vadd.f32 %v3881_v39, %v3880_v8  ;;  %v4192_v35 = vsel %vm4150_vm1, %v8184_v54, %v8182_v12 }
 0x517   : > { %v3957_v52 = vadd.f32 %v3956_v18, %v3955_v20  ;;  %v3964_v50 = vadd.f32 %v3963_v0, %v3962_v14  ;;  %v8266_v60 = vadd.f32 %v3970_v33, %v3969_v16  ;;  %v3888_v41 = vrot.slane %v3887_v44, 1 }
 0x518   : > { %v3951_v53 = vrot.slane %v3950_v63, 1  ;;  %v3923_v38 = vrot.slane %v3922_v57, 1  ;;  %v4193_v43 = vsel %vm4152_vm2, %v8188_v7, %v4192_v35  ;;  %v4048_v49 = vmul.f32 0.5, %v3882_v19 }
 0x519   : > { %v3958_v48 = vrot.slane %v3957_v52, 1  ;;  %v3965_v27 = vrot.slane %v3964_v50, 1  ;;  %v3889_v28 = vadd.f32 %v3888_v41, %v3887_v44  ;;  %v4194_v29 = vsel %vm4154_vm3, %v4045_v11, %v4193_v43 }
 0x51a   : > { %v3952_v2 = vadd.f32 %v3951_v53, %v3950_v63  ;;  %v3972_v45 = vrot.slane %v8266_v60, 1  ;;  %v4195_v30 = vsel %vm4156_vm4, %v4046_v22, %v4194_v29  ;;  %v3358_v12 = vadd.f32 %v3357_v46, %v8142_v26 }
 0x51b   : > { %v3959_v10 = vadd.f32 %v3958_v48, %v3957_v52  ;;  %v3966_v54 = vadd.f32 %v3965_v27, %v3964_v50  ;;  %v4049_v25 = vmul.f32 0.5, %v3889_v28  ;;  %v4196_v4 = vsel %vm4158_vm5, %v4047_v59, %v4195_v30 }
 0x51c   : > { %v3917_v7 = vadd.f32 %v3916_v1, %v8222_v13  ;;  %v4058_v23 = vmul.f32 0.5, %v3952_v2  ;;  %v4197_v31 = vsel %vm4160_vm6, %v4048_v49, %v4196_v4  ;;  %v3423_v9 = vadd.f32 %v3422_v34, %v3358_v12  ;;  %v5733_v12 = vld [vmem:[#allocation10] ss:$0 sm:$0xff] }
 0x51d   : > { %v4059_v36 = vmul.f32 0.5, %v3959_v10  ;;  %v4198_v3 = vsel %vm4162_vm7, %v4049_v25, %v4197_v31  ;;  %v3924_v62 = vadd.f32 %v3923_v38, %v3922_v57  ;;  %v3929_v61 = vadd.f32 %v3928_v47, %v8244_v17 }
 0x51e   : > { %v3935_v26 = vrot.slane %v8251_v40, 2  ;;  %4252 = vmatmul.f32.gmra.mxu0 %v4198_v3  ;;  %v3440_v55 = vmax.f32 %v3423_v9, 0.0  ;;  %v3941_v15 = vadd.f32 %v3940_v42, %v8242_v51  ;;  %v4053_v5 = vmul.f32 0.5, %v3917_v7 }
 0x51f   : > { %v4199_v13 = vsel %vm4150_vm1, %v8236_v37, %v8232_v58  ;;  %v3930_v1 = vrot.slane %v3929_v61, 1  ;;  %v4054_v20 = vmul.f32 0.5, %v3924_v62  ;;  %v4060_v44 = vmul.f32 0.5, %v3966_v54 }
 0x520   : > { %v3936_v56 = vadd.f32 %v3935_v26, %v8251_v40  ;;  %v4200_v17 = vsel %vm4152_vm2, %v8239_v24, %v4199_v13  ;;  %v3502_v47 = vrot.slane %v3440_v55, 2  ;;  %v3503_v57 = vrot.slane %v3440_v55, 4 }
 0x521   : > { %v3504_v14 = vrot.slane %v3440_v55, 6  ;;  %v3974_v16 = vsel %vm3553_vm0, %v3440_v55, 0.0  ;;  %v3931_v32 = vadd.f32 %v3930_v1, %v3929_v61  ;;  %v3942_v42 = vrot.slane %v3941_v15, 2 }
 0x522   : > { %v3975_v6 = vrot.slane %v3974_v16, 4  ;;  %v3937_v51 = vrot.slane %v3936_v56, 1  ;;  %v3981_v8 = vsel %vm3553_vm0, %v3502_v47, 0.0  ;;  %v3988_v58 = vsel %vm3553_vm0, %v3503_v57, 0.0 }
 0x523   : > { %v3995_v37 = vsel %vm3553_vm0, %v3504_v14, 0.0  ;;  %v4201_v40 = vsel %vm4154_vm3, %v4053_v5, %v4200_v17  ;;  %v3982_v18 = vrot.slane %v3981_v8, 4  ;;  %v3989_v24 = vrot.slane %v3988_v58, 4 }
 0x524   : > { %v3976_v21 = vadd.f32 %v3975_v6, %v3974_v16  ;;  %v3996_v0 = vrot.slane %v3995_v37, 4  ;;  %v3938_v33 = vadd.f32 %v3937_v51, %v3936_v56  ;;  %v3943_v11 = vadd.f32 %v3942_v42, %v3941_v15 }
 0x525   : > { %v4055_v63 = vmul.f32 0.5, %v3931_v32  ;;  %v4202_v39 = vsel %vm4156_vm4, %v4054_v20, %v4201_v40  ;;  %v3983_v52 = vadd.f32 %v3982_v18, %v3981_v8  ;;  %v3990_v50 = vadd.f32 %v3989_v24, %v3988_v58 }
 0x526   : > { %v3977_v22 = vrot.slane %v3976_v21, 2  ;;  %v3944_v59 = vrot.slane %v3943_v11, 1  ;;  %v4056_v53 = vmul.f32 0.5, %v3938_v33  ;;  %v3997_v41 = vadd.f32 %v3996_v0, %v3995_v37 }
 0x527   : > { %v4203_v19 = vsel %vm4158_vm5, %v4055_v63, %v4202_v39  ;;  %v3984_v46 = vrot.slane %v3983_v52, 2  ;;  %v3973_v38 = vadd.f32 %v3972_v45, %v8266_v60  ;;  %v3991_v48 = vrot.slane %v3990_v50, 2 }
 0x528   : > { %v3978_v35 = vadd.f32 %v3977_v22, %v3976_v21  ;;  %v3945_v27 = vadd.f32 %v3944_v59, %v3943_v11  ;;  %v4204_v43 = vsel %vm4160_vm6, %v4056_v53, %v4203_v19  ;;  %v3998_v2 = vrot.slane %v3997_v41, 2 }
 0x529   : > { %v4206_v28 = vsel %vm4150_vm1, %v4059_v36, %v4058_v23  ;;  %v3985_v29 = vadd.f32 %v3984_v46, %v3983_v52  ;;  %v3992_v34 = vadd.f32 %v3991_v48, %v3990_v50  ;;  %v4061_v31 = vmul.f32 0.5, %v3973_v38 }
 0x52a   : > { %v3979_v49 = vrot.slane %v3978_v35, 1  ;;  %v4057_v10 = vmul.f32 0.5, %v3945_v27  ;;  %v3999_v30 = vadd.f32 %v3998_v2, %v3997_v41  ;;  %v4207_v7 = vsel %vm4152_vm2, %v4060_v44, %v4206_v28 }
 0x52b   : > { %v3986_v25 = vrot.slane %v3985_v29, 1  ;;  %v3993_v4 = vrot.slane %v3992_v34, 1  ;;  %v4208_v61 = vsel %vm4154_vm3, %v4061_v31, %v4207_v7 }
 0x52c   : > { %v3980_v54 = vadd.f32 %v3979_v49, %v3978_v35  ;;  %v4205_v60 = vsel %vm4162_vm7, %v4057_v10, %v4204_v43  ;;  %v4000_v45 = vrot.slane %v3999_v30, 1 }
 0x52d   : > { %4255 = vmatmul.f32.gmra.mxu0 %v4205_v60  ;;  %v3987_v9 = vadd.f32 %v3986_v25, %v3985_v29  ;;  %v3994_v3 = vadd.f32 %v3993_v4, %v3992_v34 }
 0x52e   : > { %v4062_v23 = vmul.f32 0.5, %v3980_v54  ;;  %v4238_v36 = vpop.f32.mrf.mxu0  ;;  %v4001_v62 = vadd.f32 %v4000_v45, %v3999_v30 }
 0x52f   : > { %v4239_v26 = vadd.f32 %v5733_v12, %v4238_v36  ;;  %v4063_v55 = vmul.f32 0.5, %v3987_v9  ;;  %v4064_v15 = vmul.f32 0.5, %v3994_v3 }
 0x530   : > { %v4209_v5 = vsel %vm4156_vm4, %v4062_v23, %v4208_v61  ;;  %v4065_v13 = vmul.f32 0.5, %v4001_v62 }
 0x531   : > { %4262 = vst [vmem:[%s8309_s24] sm:$0xff] %v4239_v26  ;;  %v4210_v1 = vsel %vm4158_vm5, %v4063_v55, %v4209_v5 }
 0x532   : > { %v4211_v56 = vsel %vm4160_vm6, %v4064_v15, %v4210_v1 }
 0x533   : > { %v4212_v20 = vsel %vm4162_vm7, %v4065_v13, %v4211_v56 }
 0x535   : > { %4258 = vmatmul.f32.gmra.mxu0 %v4212_v20 }
 0x548   : > { %v4241_v17 = vpop.f32.mrf.mxu0 }
 0x549   : > { %v4242_v47 = vadd.f32 %v5733_v12, %v4241_v17 }
 0x54b   : > { %4263 = vst [vmem:[%s8309_s24 + $0x8] sm:$0xff] %v4242_v47 }
 0x55e   : > { %v4244_v57 = vpop.f32.mrf.mxu0 }
 0x55f   : > { %v4245_v14 = vadd.f32 %v5733_v12, %v4244_v57 }
 0x561   : > { %4264 = vst [vmem:[%s8309_s24 + $0x10] sm:$0xff] %v4245_v14 }
 0x573   : > { %v4247_v16 = vpop.f32.mrf.mxu0 }
 0x574   : > { %v4248_v6 = vadd.f32 %v5733_v12, %v4247_v16 }
 0x576   : > { %4265 = vst [vmem:[%s8309_s24 + $0x18] sm:$0xff] %v4248_v6 }
 0x587   : > { %v4250_v32 = vpop.f32.mrf.mxu0 }
 0x588   : > { %v4251_v51 = vadd.f32 %v5733_v12, %v4250_v32 }
 0x58a   : > { %4266 = vst [vmem:[%s8309_s24 + $0x20] sm:$0xff] %v4251_v51 }
 0x59b   : > { %v4253_v42 = vpop.f32.mrf.mxu0 }
 0x59c   : > { %v4254_v8 = vadd.f32 %v5733_v12, %v4253_v42 }
 0x59e   : > { %4267 = vst [vmem:[%s8309_s24 + $0x28] sm:$0xff] %v4254_v8 }
 0x5aa   : > { %v4256_v58 = vpop.f32.mrf.mxu0 }
 0x5ab   : > { %v4257_v37 = vadd.f32 %v5733_v12, %v4256_v58 }
 0x5ad   : > { %4268 = vst [vmem:[%s8309_s24 + $0x30] sm:$0xff] %v4257_v37 }
 0x5b2   : > { %v4259_v40 = vpop.f32.mrf.mxu0 }
 0x5b3   : > { %v4260_v21 = vadd.f32 %v5733_v12, %v4259_v40 }
 0x5b5   : > { %4269 = vst [vmem:[%s8309_s24 + $0x38] sm:$0xff] %v4260_v21 }
 0x5b6   : > { %5911 = shalt.err (!%p5908_p13)
}
 0x5b7   : > { %s5999_s2 = smov 128   ;;  %s6000_s4 = smov 8  }
 0x5b8   : > { %4954 = dma.vmem_to_hbm [thread:$0]  (%p6162_p5), %s4286_s12, 1024, %s4288_s13, %s4271_s15, %s5999_s2, %s5999_s2, %s6000_s4  }
 0x5b9 PF: > { %s8403_s6 = sld [smem:[#allocation16_spill]]  ;;  %p4986_p0 = scmp.ge.s32.totalorder %s5990_s25, 2 }
 0x5bb   : > { %p4974_p3 = pnand %p4986_p0, %p6102_p6 }
 0x5bd   : > { %p4975_p7 = pneg %p4974_p3 }
 0x5bf   : > { %s4302_s18 = sand.u32 1, %s8403_s6  }
 0x5c0   : > { %s4303_s24 = scalar_lea.sflag [#allocation4], %s4302_s18 }
 0x5c1   : > { %5957 = dma.done.wait (%p4975_p7), %s4303_s24, 1024  }
 0x5c2   : > { %5959 = vsyncadd (%p4975_p7), %s4303_s24, 4294966272  ;;  %s23_s25 = sadd.s32 1, %s5990_s25   ;;  %s8405_s22 = sld [smem:[#allocation17_spill]] }
 0x5c3   : > { %p20_p9 = scmp.ge.s32.totalorder %s23_s25, 6   ;;  %s8406_s1 = sld [smem:[#allocation19_spill]] }
 0x5c4   : > { %s8407_s24 = sld [smem:[#allocation20_spill]]  ;;  %s8408_s18 = smov %s5966_s19 }
 0x5c5   : > { %s8409_s19 = smov %s5970_s20  ;;  %s8410_s20 = smov %s6175_s3 }
 0x5c6   : > { %s8411_s21 = smov %s5982_s23  ;;  %22 = sbr.rel (!%p20_p9) target bundleno = 14 (0xe), region = 101 }
 0x5c9   : > { %s8412_s23 = smov %s8406_s1 }
 0x5cb   :  { %4309 = vsyncpa [#allocation3], 1 }
 0x5cc   :  { %4311 = vsyncpa [#allocation3 + $0x1], 1 }
 0x5cd   :  { %4312 = vsyncpa [#allocation6], 1 }
 0x5ce   :  { %4313 = vsyncpa [#allocation9], 1 }
 0x5cf   :  { %4314 = vsyncpa [#allocation4], 1 }
 0x5d0   :  { %4316 = vsyncpa [#allocation4 + $0x1], 1 }

</bundles_post_ra>
